<compile_context>
chip_gen: v7x
topology: tpu7x:2x2x1
jax: 0.10.0
libtpu: 0.0.40
codegen_flags: <defaults>
</compile_context>

<pallas_src>
import functools
import math

import jax
import jax.numpy as jnp
from jax.experimental import pallas as pl
from jax.experimental.pallas import tpu as pltpu


def _round_up(x, m):
    return (x + m - 1) // m * m


def transformer_layer_kernel(d_model,
                             q_ref, v_ref,
                             wvo_ref, bvo_ref,
                             g0_ref, be0_ref, g1_ref, be1_ref,
                             w1_ref, b1_ref, w2_ref, b2_ref,
                             o_ref):
    eps = 1e-5
    q = q_ref[...]                       # (tile_n, d_pad) f32, padded lanes are zero
    v = v_ref[...]
    d_pad = q.shape[-1]

    def mm(x, w_ref):
        w = w_ref[...]
        prec = jax.lax.Precision.HIGHEST if w.dtype == jnp.float32 else None
        return jnp.dot(x.astype(w.dtype), w,
                       preferred_element_type=jnp.float32, precision=prec)

    # LayerNorm mask over the first d_model (true) lanes; padded lanes are zero by construction.
    if d_pad == d_model:
        mask = None
    else:
        lane = jax.lax.broadcasted_iota(jnp.int32, (1, d_pad), 1)
        mask = (lane < d_model).astype(jnp.float32)
    inv_d = 1.0 / d_model

    def layer_norm(x, g_ref, b_ref):
        if mask is None:
            mu = jnp.mean(x, axis=-1, keepdims=True)
            diff = x - mu
        else:
            mu = jnp.sum(x * mask, axis=-1, keepdims=True) * inv_d
            diff = (x - mu) * mask
        var = jnp.sum(diff * diff, axis=-1, keepdims=True) * inv_d
        return diff * jax.lax.rsqrt(var + eps) * g_ref[...] + b_ref[...]

    # --- MultiHeadAttention ---------------------------------------------------
    # seq_len == 1  =>  softmax over a single key position is exactly 1.0, so the attention
    # context equals the V projection and the V/output projections are constant-folded into
    # one matrix (wvo) in the wrapper.  Q/K projections are dead code.
    attn_out = mm(v, wvo_ref) + bvo_ref[...]

    # --- residual + LayerNorm 0 (dropout = identity in eval) -------------------
    x = layer_norm(attn_out + q, g0_ref, be0_ref)

    # --- feed-forward -----------------------------------------------------------
    h = jnp.maximum(mm(x, w1_ref) + b1_ref[...], 0.0)
    f = mm(h, w2_ref) + b2_ref[...]

    # --- residual + LayerNorm 1 --------------------------------------------------
    o_ref[...] = layer_norm(x + f, g1_ref, be1_ref).astype(o_ref.dtype)


def transformer_layer(q, k, v, params, nheads, *, matmul_dtype=jnp.bfloat16):
    (wq, bq, wk, bk, wv, bv, wo, bo,
     g0, be0, g1, be1, w1, b1, w2, b2) = params
    # seq_len == 1: attention weights are identically 1, so k and the Q/K projection
    # parameters never affect the output -- skip their DMA and compute entirely.
    del k, wq, bq, wk, bk, nheads

    n, d = q.shape
    hid = w1.shape[1]
    d_pad = _round_up(d, 128)
    h_pad = _round_up(hid, 128)

    # Row tile: 256-512 rows keeps the 256-wide MXU busy and amortizes per-grid-step overhead;
    # tiny N collapses to one sublane-aligned tile.
    tile_n = 512 if n >= 512 else (256 if n >= 256 else _round_up(max(n, 8), 8))
    n_pad = _round_up(n, tile_n)
    grid = (n_pad // tile_n,)

    f32 = jnp.float32
    hi = jax.lax.Precision.HIGHEST

    # Constant fold (exact in infinite precision, folded once in f32/HIGHEST on the host):
    #   (v @ Wv + bv) @ Wo + bo  ==  v @ (Wv @ Wo) + (bv @ Wo + bo)
    wvo = jnp.dot(jnp.asarray(wv, f32), jnp.asarray(wo, f32), precision=hi)
    bvo = jnp.dot(jnp.asarray(bv, f32), jnp.asarray(wo, f32), precision=hi) + jnp.asarray(bo, f32)

    def pad2(a, rows, cols, dtype=f32):
        a = jnp.asarray(a, f32)
        return jnp.pad(a, ((0, rows - a.shape[0]), (0, cols - a.shape[1]))).astype(dtype)

    q_p = pad2(q, n_pad, d_pad)
    v_p = pad2(v, n_pad, d_pad)
    wvo_p = pad2(wvo, d_pad, d_pad, matmul_dtype)
    w1_p = pad2(w1, d_pad, h_pad, matmul_dtype)
    w2_p = pad2(w2, h_pad, d_pad, matmul_dtype)
    bvo_p = pad2(bvo, 1, d_pad)
    g0_p, be0_p = pad2(g0, 1, d_pad), pad2(be0, 1, d_pad)
    g1_p, be1_p = pad2(g1, 1, d_pad), pad2(be1, 1, d_pad)
    b1_p, b2_p = pad2(b1, 1, h_pad), pad2(b2, 1, d_pad)

    row_spec = pl.BlockSpec((tile_n, d_pad), lambda i: (i, 0))

    def resident(a):
        # Constant block index -> Pallas keeps the buffer VMEM-resident (no re-DMA per step).
        return pl.BlockSpec(a.shape, lambda i: (0, 0))

    resident_args = (wvo_p, bvo_p, g0_p, be0_p, g1_p, be1_p,
                     w1_p, b1_p, w2_p, b2_p)
    in_specs = [row_spec, row_spec] + [resident(a) for a in resident_args]

    wb = jnp.dtype(matmul_dtype).itemsize
    vmem_needed = (
        2 * 3 * tile_n * d_pad * 4                              # double-buffered q/v/out tiles
        + 2 * (d_pad * d_pad + 2 * d_pad * h_pad) * wb          # resident matmul weights
        + 2 * 8 * (6 * d_pad + h_pad) * 4                       # biases / LN params (sublane padded)
    )
    # TODO(synk): if resident weights ever exceed the v7x 64 MiB VMEM budget, tile the MLP
    # reduction (w1 columns / w2 rows) over an extra "arbitrary" K grid axis with a scratch
    # accumulator instead of keeping the full w1/w2 resident.
    vmem_limit = int(min(max(2 * vmem_needed, 16 << 20), 64 << 20))

    cost = pl.CostEstimate(
        flops=int(2 * n_pad * d_pad * (d_pad + 2 * h_pad)),
        transcendentals=int(2 * n_pad),
        bytes_accessed=int(3 * n_pad * d_pad * 4
                           + (d_pad * d_pad + 2 * d_pad * h_pad) * wb),
    )

    out = pl.pallas_call(
        functools.partial(transformer_layer_kernel, d),
        out_shape=jax.ShapeDtypeStruct((n_pad, d_pad), f32),
        grid=grid,
        in_specs=in_specs,
        out_specs=row_spec,
        compiler_params=pltpu.CompilerParams(
            dimension_semantics=("parallel",),
            vmem_limit_bytes=vmem_limit),
        cost_estimate=cost,
    )(q_p, v_p, *resident_args)
    return out[:n, :d]


def reference(q, k, v, params, nheads):
    """Pure-JAX reference mirroring the PyTorch forward (eval mode) in full f32."""
    (wq, bq, wk, bk, wv, bv, wo, bo, g0, be0, g1, be1, w1, b1, w2, b2) = params
    n, d = q.shape
    h, dk, eps = nheads, d // nheads, 1e-5
    dot = functools.partial(jnp.dot, precision=jax.lax.Precision.HIGHEST)
    qp = dot(q, wq) + bq
    kp = dot(k, wk) + bk
    vp = dot(v, wv) + bv
    q4 = qp.reshape(n, 1, h, dk).transpose(0, 2, 1, 3)
    k4 = kp.reshape(n, 1, h, dk).transpose(0, 2, 1, 3)
    v4 = vp.reshape(n, 1, h, dk).transpose(0, 2, 1, 3)
    scores = jnp.einsum('nhqd,nhkd->nhqk', q4, k4,
                        precision=jax.lax.Precision.HIGHEST) / math.sqrt(dk)
    attn = jax.nn.softmax(scores, axis=-1)
    ctx = jnp.einsum('nhqk,nhkd->nhqd', attn, v4,
                     precision=jax.lax.Precision.HIGHEST)
    ctx = ctx.transpose(0, 2, 1, 3).reshape(n, d)
    a = dot(ctx, wo) + bo

    def ln(x, g, b):
        mu = jnp.mean(x, axis=-1, keepdims=True)
        var = jnp.mean((x - mu) ** 2, axis=-1, keepdims=True)
        return (x - mu) / jnp.sqrt(var + eps) * g + b

    x = ln(a + q, g0, be0)
    f = dot(jnp.maximum(dot(x, w1) + b1, 0.0), w2) + b2
    return ln(x + f, g1, be1)


def make_params(key, d_model, hidden_dim):
    keys = jax.random.split(key, 16)
    s = 0.1

    def lin(kw, kb, din, dout):
        w = s * jax.random.normal(kw, (din, dout), jnp.float32)   # (in, out): x @ W + b
        b = s * jax.random.normal(kb, (1, dout), jnp.float32)
        return w, b

    wq, bq = lin(keys[0], keys[1], d_model, d_model)
    wk, bk = lin(keys[2], keys[3], d_model, d_model)
    wv, bv = lin(keys[4], keys[5], d_model, d_model)
    wo, bo = lin(keys[6], keys[7], d_model, d_model)
    g0 = jnp.ones((1, d_model), jnp.float32) + 0.05 * jax.random.normal(keys[8], (1, d_model))
    be0 = 0.05 * jax.random.normal(keys[9], (1, d_model), jnp.float32)
    g1 = jnp.ones((1, d_model), jnp.float32) + 0.05 * jax.random.normal(keys[10], (1, d_model))
    be1 = 0.05 * jax.random.normal(keys[11], (1, d_model), jnp.float32)
    w1, b1 = lin(keys[12], keys[13], d_model, hidden_dim)
    w2, b2 = lin(keys[14], keys[15], hidden_dim, d_model)
    return (wq, bq, wk, bk, wv, bv, wo, bo, g0, be0, g1, be1, w1, b1, w2, b2)


if __name__ == "__main__":
    d_model, nheads, hidden_dim = 32, 4, 64
    n_rows = 384   # exercises the row grid (2 tiles of 256) + row padding (384 -> 512)

    key = jax.random.PRNGKey(0)
    kq, kk, kv, kp = jax.random.split(key, 4)
    q = jax.random.normal(kq, (n_rows, d_model), jnp.float32)
    k = jax.random.normal(kk, (n_rows, d_model), jnp.float32)
    v = jax.random.normal(kv, (n_rows, d_model), jnp.float32)
    params = make_params(kp, d_model, hidden_dim)
    ref = reference(q, k, v, params, nheads)

    # Strict semantics check: f32 matmuls (HIGHEST precision) must match PyTorch math.
    out_f32 = transformer_layer(q, k, v, params, nheads, matmul_dtype=jnp.float32)
    jax.block_until_ready(out_f32)
    assert out_f32.shape == (n_rows, d_model)
    assert jnp.allclose(out_f32, ref, atol=1e-4, rtol=1e-4), "f32 kernel mismatch"

    # Fast path: bf16 weights/activations into the MXU, f32 accumulation.
    out_bf16 = transformer_layer(q, k, v, params, nheads)
    jax.block_until_ready(out_bf16)
    assert out_bf16.shape == (n_rows, d_model)
    assert jnp.allclose(out_bf16, ref, atol=1e-1, rtol=1e-1), "bf16 kernel mismatch"

    print("KERNEL_OK")
</pallas_src>

<mosaic_0001>
module attributes {stable_mosaic.version = 11 : i64} {
  func.func @transformer_layer_kernel(%arg0: i32, %arg1: memref<256x128xf32, #tpu.memory_space<vmem>>, %arg2: memref<256x128xf32, #tpu.memory_space<vmem>>, %arg3: memref<128x128xf32, #tpu.memory_space<vmem>>, %arg4: memref<1x128xf32, #tpu.memory_space<vmem>>, %arg5: memref<1x128xf32, #tpu.memory_space<vmem>>, %arg6: memref<1x128xf32, #tpu.memory_space<vmem>>, %arg7: memref<1x128xf32, #tpu.memory_space<vmem>>, %arg8: memref<1x128xf32, #tpu.memory_space<vmem>>, %arg9: memref<128x128xf32, #tpu.memory_space<vmem>>, %arg10: memref<1x128xf32, #tpu.memory_space<vmem>>, %arg11: memref<128x128xf32, #tpu.memory_space<vmem>>, %arg12: memref<1x128xf32, #tpu.memory_space<vmem>>, %arg13: memref<256x128xf32, #tpu.memory_space<vmem>>) attributes {dimension_semantics = [#tpu.dimension_semantics<parallel>], iteration_bounds = array<i64: 2>, scalar_prefetch = 0 : i64, scratch_operands = 0 : i64, tpu.core_type = #tpu.core_type<tc>, window_params = [{transform_indices = @transform_0, window_bounds = array<i64: 256, 128>}, {transform_indices = @transform_1, window_bounds = array<i64: 256, 128>}, {pipeline_mode = #tpu.pipeline_mode<synchronous>, transform_indices = @transform_2, window_bounds = array<i64: 128, 128>}, {pipeline_mode = #tpu.pipeline_mode<synchronous>, transform_indices = @transform_3, window_bounds = array<i64: 1, 128>}, {pipeline_mode = #tpu.pipeline_mode<synchronous>, transform_indices = @transform_4, window_bounds = array<i64: 1, 128>}, {pipeline_mode = #tpu.pipeline_mode<synchronous>, transform_indices = @transform_5, window_bounds = array<i64: 1, 128>}, {pipeline_mode = #tpu.pipeline_mode<synchronous>, transform_indices = @transform_6, window_bounds = array<i64: 1, 128>}, {pipeline_mode = #tpu.pipeline_mode<synchronous>, transform_indices = @transform_7, window_bounds = array<i64: 1, 128>}, {pipeline_mode = #tpu.pipeline_mode<synchronous>, transform_indices = @transform_8, window_bounds = array<i64: 128, 128>}, {pipeline_mode = #tpu.pipeline_mode<synchronous>, transform_indices = @transform_9, window_bounds = array<i64: 1, 128>}, {pipeline_mode = #tpu.pipeline_mode<synchronous>, transform_indices = @transform_10, window_bounds = array<i64: 128, 128>}, {pipeline_mode = #tpu.pipeline_mode<synchronous>, transform_indices = @transform_11, window_bounds = array<i64: 1, 128>}, {transform_indices = @transform_12, window_bounds = array<i64: 256, 128>}]} {
    %c0 = arith.constant 0 : index
    %c0_0 = arith.constant 0 : index
    %0 = vector.load %arg1[%c0, %c0_0] : memref<256x128xf32, #tpu.memory_space<vmem>>, vector<256x128xf32>
    %c0_1 = arith.constant 0 : index
    %c0_2 = arith.constant 0 : index
    %1 = vector.load %arg2[%c0_1, %c0_2] : memref<256x128xf32, #tpu.memory_space<vmem>>, vector<256x128xf32>
    %2 = tpu.iota {dimensions = array<i32: 1>} : vector<1x128xi32>
    %c32_i32 = arith.constant 32 : i32
    %3 = vector.broadcast %c32_i32 : i32 to vector<1x128xi32>
    %4 = arith.cmpi slt, %2, %3 : vector<1x128xi32>
    %5 = arith.extui %4 : vector<1x128xi1> to vector<1x128xi32>
    %6 = arith.sitofp %5 : vector<1x128xi32> to vector<1x128xf32>
    %c0_3 = arith.constant 0 : index
    %c0_4 = arith.constant 0 : index
    %7 = vector.load %arg3[%c0_3, %c0_4] : memref<128x128xf32, #tpu.memory_space<vmem>>, vector<128x128xf32>
    %cst = arith.constant dense<0.000000e+00> : vector<256x128xf32>
    %8 = tpu.matmul %1, %7, %cst {dimension_numbers = #tpu.dot_dimension_numbers<[1], [0], [0], [1], [0, 0, 1, 1], [], []>, precision = #tpu.contract_precision<fp32>} : vector<256x128xf32>, vector<128x128xf32>, vector<256x128xf32> -> vector<256x128xf32>
    %c0_5 = arith.constant 0 : index
    %c0_6 = arith.constant 0 : index
    %9 = vector.load %arg4[%c0_5, %c0_6] : memref<1x128xf32, #tpu.memory_space<vmem>>, vector<1x128xf32>
    %10 = vector.broadcast %9 : vector<1x128xf32> to vector<256x128xf32>
    %11 = arith.addf %8, %10 : vector<256x128xf32>
    %12 = arith.addf %11, %0 : vector<256x128xf32>
    %13 = vector.broadcast %6 : vector<1x128xf32> to vector<256x128xf32>
    %14 = arith.mulf %12, %13 : vector<256x128xf32>
    %cst_7 = arith.constant dense<0.000000e+00> : vector<256xf32>
    %15 = vector.multi_reduction <add>, %14, %cst_7 [1] : vector<256x128xf32> to vector<256xf32>
    %16 = vector.shape_cast %15 : vector<256xf32> to vector<256x1xf32>
    %cst_8 = arith.constant 3.125000e-02 : f32
    %17 = vector.broadcast %cst_8 : f32 to vector<256x1xf32>
    %18 = arith.mulf %16, %17 : vector<256x1xf32>
    %19 = vector.broadcast %18 : vector<256x1xf32> to vector<256x128xf32>
    %20 = arith.subf %12, %19 : vector<256x128xf32>
    %21 = vector.broadcast %6 : vector<1x128xf32> to vector<256x128xf32>
    %22 = arith.mulf %20, %21 : vector<256x128xf32>
    %23 = arith.mulf %22, %22 : vector<256x128xf32>
    %cst_9 = arith.constant dense<0.000000e+00> : vector<256xf32>
    %24 = vector.multi_reduction <add>, %23, %cst_9 [1] : vector<256x128xf32> to vector<256xf32>
    %25 = vector.shape_cast %24 : vector<256xf32> to vector<256x1xf32>
    %cst_10 = arith.constant 3.125000e-02 : f32
    %26 = vector.broadcast %cst_10 : f32 to vector<256x1xf32>
    %27 = arith.mulf %25, %26 : vector<256x1xf32>
    %cst_11 = arith.constant 9.99999974E-6 : f32
    %28 = vector.broadcast %cst_11 : f32 to vector<256x1xf32>
    %29 = arith.addf %27, %28 : vector<256x1xf32>
    %30 = math.rsqrt %29 : vector<256x1xf32>
    %31 = vector.broadcast %30 : vector<256x1xf32> to vector<256x128xf32>
    %32 = arith.mulf %22, %31 : vector<256x128xf32>
    %c0_12 = arith.constant 0 : index
    %c0_13 = arith.constant 0 : index
    %33 = vector.load %arg5[%c0_12, %c0_13] : memref<1x128xf32, #tpu.memory_space<vmem>>, vector<1x128xf32>
    %34 = vector.broadcast %33 : vector<1x128xf32> to vector<256x128xf32>
    %35 = arith.mulf %32, %34 : vector<256x128xf32>
    %c0_14 = arith.constant 0 : index
    %c0_15 = arith.constant 0 : index
    %36 = vector.load %arg6[%c0_14, %c0_15] : memref<1x128xf32, #tpu.memory_space<vmem>>, vector<1x128xf32>
    %37 = vector.broadcast %36 : vector<1x128xf32> to vector<256x128xf32>
    %38 = arith.addf %35, %37 : vector<256x128xf32>
    %c0_16 = arith.constant 0 : index
    %c0_17 = arith.constant 0 : index
    %39 = vector.load %arg9[%c0_16, %c0_17] : memref<128x128xf32, #tpu.memory_space<vmem>>, vector<128x128xf32>
    %cst_18 = arith.constant dense<0.000000e+00> : vector<256x128xf32>
    %40 = tpu.matmul %38, %39, %cst_18 {dimension_numbers = #tpu.dot_dimension_numbers<[1], [0], [0], [1], [0, 0, 1, 1], [], []>, precision = #tpu.contract_precision<fp32>} : vector<256x128xf32>, vector<128x128xf32>, vector<256x128xf32> -> vector<256x128xf32>
    %c0_19 = arith.constant 0 : index
    %c0_20 = arith.constant 0 : index
    %41 = vector.load %arg10[%c0_19, %c0_20] : memref<1x128xf32, #tpu.memory_space<vmem>>, vector<1x128xf32>
    %42 = vector.broadcast %41 : vector<1x128xf32> to vector<256x128xf32>
    %43 = arith.addf %40, %42 : vector<256x128xf32>
    %cst_21 = arith.constant 0.000000e+00 : f32
    %44 = vector.broadcast %cst_21 : f32 to vector<256x128xf32>
    %45 = arith.maximumf %43, %44 : vector<256x128xf32>
    %c0_22 = arith.constant 0 : index
    %c0_23 = arith.constant 0 : index
    %46 = vector.load %arg11[%c0_22, %c0_23] : memref<128x128xf32, #tpu.memory_space<vmem>>, vector<128x128xf32>
    %cst_24 = arith.constant dense<0.000000e+00> : vector<256x128xf32>
    %47 = tpu.matmul %45, %46, %cst_24 {dimension_numbers = #tpu.dot_dimension_numbers<[1], [0], [0], [1], [0, 0, 1, 1], [], []>, precision = #tpu.contract_precision<fp32>} : vector<256x128xf32>, vector<128x128xf32>, vector<256x128xf32> -> vector<256x128xf32>
    %c0_25 = arith.constant 0 : index
    %c0_26 = arith.constant 0 : index
    %48 = vector.load %arg12[%c0_25, %c0_26] : memref<1x128xf32, #tpu.memory_space<vmem>>, vector<1x128xf32>
    %49 = vector.broadcast %48 : vector<1x128xf32> to vector<256x128xf32>
    %50 = arith.addf %47, %49 : vector<256x128xf32>
    %51 = arith.addf %38, %50 : vector<256x128xf32>
    %52 = vector.broadcast %6 : vector<1x128xf32> to vector<256x128xf32>
    %53 = arith.mulf %51, %52 : vector<256x128xf32>
    %cst_27 = arith.constant dense<0.000000e+00> : vector<256xf32>
    %54 = vector.multi_reduction <add>, %53, %cst_27 [1] : vector<256x128xf32> to vector<256xf32>
    %55 = vector.shape_cast %54 : vector<256xf32> to vector<256x1xf32>
    %cst_28 = arith.constant 3.125000e-02 : f32
    %56 = vector.broadcast %cst_28 : f32 to vector<256x1xf32>
    %57 = arith.mulf %55, %56 : vector<256x1xf32>
    %58 = vector.broadcast %57 : vector<256x1xf32> to vector<256x128xf32>
    %59 = arith.subf %51, %58 : vector<256x128xf32>
    %60 = vector.broadcast %6 : vector<1x128xf32> to vector<256x128xf32>
    %61 = arith.mulf %59, %60 : vector<256x128xf32>
    %62 = arith.mulf %61, %61 : vector<256x128xf32>
    %cst_29 = arith.constant dense<0.000000e+00> : vector<256xf32>
    %63 = vector.multi_reduction <add>, %62, %cst_29 [1] : vector<256x128xf32> to vector<256xf32>
    %64 = vector.shape_cast %63 : vector<256xf32> to vector<256x1xf32>
    %cst_30 = arith.constant 3.125000e-02 : f32
    %65 = vector.broadcast %cst_30 : f32 to vector<256x1xf32>
    %66 = arith.mulf %64, %65 : vector<256x1xf32>
    %cst_31 = arith.constant 9.99999974E-6 : f32
    %67 = vector.broadcast %cst_31 : f32 to vector<256x1xf32>
    %68 = arith.addf %66, %67 : vector<256x1xf32>
    %69 = math.rsqrt %68 : vector<256x1xf32>
    %70 = vector.broadcast %69 : vector<256x1xf32> to vector<256x128xf32>
    %71 = arith.mulf %61, %70 : vector<256x128xf32>
    %c0_32 = arith.constant 0 : index
    %c0_33 = arith.constant 0 : index
    %72 = vector.load %arg7[%c0_32, %c0_33] : memref<1x128xf32, #tpu.memory_space<vmem>>, vector<1x128xf32>
    %73 = vector.broadcast %72 : vector<1x128xf32> to vector<256x128xf32>
    %74 = arith.mulf %71, %73 : vector<256x128xf32>
    %c0_34 = arith.constant 0 : index
    %c0_35 = arith.constant 0 : index
    %75 = vector.load %arg8[%c0_34, %c0_35] : memref<1x128xf32, #tpu.memory_space<vmem>>, vector<1x128xf32>
    %76 = vector.broadcast %75 : vector<1x128xf32> to vector<256x128xf32>
    %77 = arith.addf %74, %76 : vector<256x128xf32>
    %c0_36 = arith.constant 0 : index
    %c0_37 = arith.constant 0 : index
    %78 = vector.load %arg13[%c0_36, %c0_37] : memref<256x128xf32, #tpu.memory_space<vmem>>, vector<256x128xf32>
    tpu.vector_store %arg13[%c0_36, %c0_37], %77 {strides = array<i32>} : memref<256x128xf32, #tpu.memory_space<vmem>>, vector<256x128xf32>,
    return
  }
  func.func @transform_0(%arg0: i32) -> (i32, i32) {
    %c0_i32 = arith.constant 0 : i32
    %c0_i32_0 = arith.constant 0 : i32
    return %arg0, %c0_i32 : i32, i32
  }
  func.func @transform_1(%arg0: i32) -> (i32, i32) {
    %c0_i32 = arith.constant 0 : i32
    %c0_i32_0 = arith.constant 0 : i32
    return %arg0, %c0_i32 : i32, i32
  }
  func.func @transform_2(%arg0: i32) -> (i32, i32) {
    %c0_i32 = arith.constant 0 : i32
    %c0_i32_0 = arith.constant 0 : i32
    %c0_i32_1 = arith.constant 0 : i32
    return %c0_i32, %c0_i32_0 : i32, i32
  }
  func.func @transform_3(%arg0: i32) -> (i32, i32) {
    %c0_i32 = arith.constant 0 : i32
    %c0_i32_0 = arith.constant 0 : i32
    %c0_i32_1 = arith.constant 0 : i32
    return %c0_i32, %c0_i32_0 : i32, i32
  }
  func.func @transform_4(%arg0: i32) -> (i32, i32) {
    %c0_i32 = arith.constant 0 : i32
    %c0_i32_0 = arith.constant 0 : i32
    %c0_i32_1 = arith.constant 0 : i32
    return %c0_i32, %c0_i32_0 : i32, i32
  }
  func.func @transform_5(%arg0: i32) -> (i32, i32) {
    %c0_i32 = arith.constant 0 : i32
    %c0_i32_0 = arith.constant 0 : i32
    %c0_i32_1 = arith.constant 0 : i32
    return %c0_i32, %c0_i32_0 : i32, i32
  }
  func.func @transform_6(%arg0: i32) -> (i32, i32) {
    %c0_i32 = arith.constant 0 : i32
    %c0_i32_0 = arith.constant 0 : i32
    %c0_i32_1 = arith.constant 0 : i32
    return %c0_i32, %c0_i32_0 : i32, i32
  }
  func.func @transform_7(%arg0: i32) -> (i32, i32) {
    %c0_i32 = arith.constant 0 : i32
    %c0_i32_0 = arith.constant 0 : i32
    %c0_i32_1 = arith.constant 0 : i32
    return %c0_i32, %c0_i32_0 : i32, i32
  }
  func.func @transform_8(%arg0: i32) -> (i32, i32) {
    %c0_i32 = arith.constant 0 : i32
    %c0_i32_0 = arith.constant 0 : i32
    %c0_i32_1 = arith.constant 0 : i32
    return %c0_i32, %c0_i32_0 : i32, i32
  }
  func.func @transform_9(%arg0: i32) -> (i32, i32) {
    %c0_i32 = arith.constant 0 : i32
    %c0_i32_0 = arith.constant 0 : i32
    %c0_i32_1 = arith.constant 0 : i32
    return %c0_i32, %c0_i32_0 : i32, i32
  }
  func.func @transform_10(%arg0: i32) -> (i32, i32) {
    %c0_i32 = arith.constant 0 : i32
    %c0_i32_0 = arith.constant 0 : i32
    %c0_i32_1 = arith.constant 0 : i32
    return %c0_i32, %c0_i32_0 : i32, i32
  }
  func.func @transform_11(%arg0: i32) -> (i32, i32) {
    %c0_i32 = arith.constant 0 : i32
    %c0_i32_0 = arith.constant 0 : i32
    %c0_i32_1 = arith.constant 0 : i32
    return %c0_i32, %c0_i32_0 : i32, i32
  }
  func.func @transform_12(%arg0: i32) -> (i32, i32) {
    %c0_i32 = arith.constant 0 : i32
    %c0_i32_0 = arith.constant 0 : i32
    return %arg0, %c0_i32 : i32, i32
  }
}

</mosaic_0001>

<bundles_post_ra>
// kernel: tpu_custom_call.1
= control target key start
LH: loop header
LB: loop body
LE: loop exit
PB: predicated region body
PF: predicated region fallthrough
CT: control target
= control target key end

     0   :  { %s15943_s0 = inlined_call_operand.hbm [shape: f32[512,128], index: 0, kind: input, shape index: {}]   ;;  %s15944_s1 = inlined_call_operand.hbm [shape: f32[512,128], index: 1, kind: input, shape index: {}]   ;;  %s15945_s2 = inlined_call_operand.hbm [shape: f32[128,128], index: 2, kind: input, shape index: {}]   ;;  %s15946_s3 = inlined_call_operand.vmem [shape: f32[1,128], index: 3, kind: input, shape index: {}]   ;;  %s15947_s4 = inlined_call_operand.vmem [shape: f32[1,128], index: 4, kind: input, shape index: {}]   ;;  %s15948_s5 = inlined_call_operand.vmem [shape: f32[1,128], index: 5, kind: input, shape index: {}]   ;;  %s15949_s6 = inlined_call_operand.vmem [shape: f32[1,128], index: 6, kind: input, shape index: {}]   ;;  %s15950_s7 = inlined_call_operand.vmem [shape: f32[1,128], index: 7, kind: input, shape index: {}]   ;;  %s15951_s8 = inlined_call_operand.hbm [shape: f32[128,128], index: 8, kind: input, shape index: {}]   ;;  %s15952_s9 = inlined_call_operand.vmem [shape: f32[1,128], index: 9, kind: input, shape index: {}]   ;;  %s15953_s10 = inlined_call_operand.hbm [shape: f32[128,128], index: 10, kind: input, shape index: {}]   ;;  %s15954_s11 = inlined_call_operand.vmem [shape: f32[1,128], index: 11, kind: input, shape index: {}]   ;;  %s15955_s12 = inlined_call_operand.hbm [shape: f32[512,128], index: 12, kind: output, shape index: {}]  }
   0x1   :  { %16407 = sst [smem:[#allocation119_spill]] %s15943_s0 }
   0x2   :  { %16408 = sst [smem:[#allocation120_spill]] %s15945_s2 }
   0x3   :  { %16409 = sst [smem:[#allocation121_spill]] %s15949_s6 }
   0x4   :  { %16410 = sst [smem:[#allocation122_spill]] %s15950_s7 }
   0x5   :  { %16411 = sst [smem:[#allocation123_spill]] %s15951_s8 }
   0x6   :  { %16412 = sst [smem:[#allocation124_spill]] %s15953_s10 }
   0x7   :  { %16413 = sst [smem:[#allocation125_spill]] %s15954_s11 }
   0x8   :  { %16414 = sst [smem:[#allocation126_spill]] %s15955_s12 }
   0x9   :  { %17 = vsyncpa [#allocation3], 0 }
   0xa   :  { %19 = vsyncpa [#allocation3 + $0x1], 0 }
   0xb   :  { %20 = vsyncpa [#allocation6], 0 }
   0xc   :  { %22 = vsyncpa [#allocation6 + $0x1], 0 }
   0xd   :  { %23 = vsyncpa [#allocation9], 0 }
   0xe   :  { %24 = vsyncpa [#allocation4], 0 }
   0xf   :  { %26 = vsyncpa [#allocation4 + $0x1], 0  ;;  %s11838_s21 = smov 0   ;;  %s11840_s22 = smov 0  }
  0x10   :  { %s11842_s23 = smov 0   ;;  %s11844_s24 = smov 0  }
  0x11 LB: > { %16415 = sst [smem:[#allocation17_spill]] %s11748_s21  ;;  %s11859_s25 = sadd.s32 4294967295, %s11760_s24   ;;  %s11760_s24 = sphi %s11844_s24, %s17048_s24   ;;  %s11756_s23 = sphi %s11842_s23, %s17047_s23   ;;  %s11752_s22 = sphi %s11840_s22, %s17046_s22   ;;  %s11748_s21 = sphi %s11838_s21, %s17045_s21  }
  0x12   : > { %s7832_s26 = sadd.s32 4294967294, %s11760_s24   ;;  %p52_p0 = scmp.ne.s32.totalorder %s11752_s22, %s11748_s21 }
  0x13   : > { %p15958_p1 = scmp.eq.s32.totalorder %s11859_s25, 0  ;;  %p318_p3 = scmp.eq.s32.totalorder %s7832_s26, 1 }
  0x14   : > { %p7833_p5 = scmp.ge.s32.totalorder %s11760_s24, 1  ;;  %p325_p7 = scmp.lt.s32.totalorder %s11760_s24, 3 }
  0x15   : > { %p11868_p4 = por %p15958_p1, %p52_p0  ;;  %p11873_p6 = por %p318_p3, %p52_p0 }
  0x16   : > { %p11878_p8 = pnand %p7833_p5, %p325_p7  ;;  %s11762_s30 = smov [#allocation7]  }
  0x17   : > { %s16416_s27 = scalar_select %p11868_p4, 1, 0 }
  0x18   : > { %s16417_s28 = scalar_select %p11873_p6, 1, 0 }
  0x19   : > { %s16419_s29 = scalar_select %p11878_p8, 1, 0 }
  0x1a   : > { %16418 = sst [smem:[#allocation18_spill]] %s16417_s28  ;;  %s337_s13 = sshll.u32 %s11762_s30, 4  ;;  %s11882_s13 = int_to_ptr.vmem [resolvable:$true] %s337_s13 }
  0x1b   : > { %p11341_p9 = pneg %p11878_p8  ;;  %s11763_s15 = smov [#allocation8]  }
  0x1c   : > { %s365_s16 = sshll.u32 %s11763_s15, 4  ;;  %s11764_s17 = smov [#allocation10]   ;;  %s11893_s16 = int_to_ptr.vmem [resolvable:$true] %s365_s16 }
  0x1d   : > { %p11889_p11 = pnand %p11341_p9, %p15958_p1  ;;  %s11895_s18 = sshll.u32 %s11764_s17, 4  ;;  %s382_s18 = int_to_ptr.vmem [resolvable:$true] %s11895_s18 }
  0x1e   : > { %s16421_s2 = sld [smem:[#allocation120_spill]] }
  0x1f   : > { %p11905_p13 = pneg %p11889_p11 }
  0x24   : > { %s11538_s26 = scalar_lea.hbm %s16421_s2, 2048 }
  0x25   : > { %p11539_p12 = scmp.ne.s32.totalorder %s16421_s2, %s11538_s26  ;;  %p11545_p5 = scmp.lt.u32.totalorder %s11538_s26, %s16421_s2 }
  0x27   : > { %p11541_p0 = pnand %p11905_p13, %p11539_p12 }
  0x29   : > { %p11542_p3 = pneg %p11541_p0 }
  0x2b   : > { %p11547_p7 = pnand %p11545_p5, %p11542_p3 }
  0x2d   : > { %11550 = shalt.err (!%p11547_p7)
}
  0x2e   : > { %s11551_s28 = scalar_lea.vmem %s11882_s13, 2048  ;;  %p11559_p2 = scmp.lt.s32.totalorder %s11882_s13, %s11882_s13 }
  0x2f   : > { %p11552_p9 = scmp.ne.s32.totalorder %s11882_s13, %s11551_s28  ;;  %p11560_p6 = scmp.lt.s32.totalorder %s11551_s28, %s11551_s28 }
  0x31   : > { %p11554_p10 = pnand %p11552_p9, %p11905_p13  ;;  %p11561_p12 = por %p11560_p6, %p11559_p2 }
  0x33   : > { %p11555_p1 = pneg %p11554_p10 }
  0x35   : > { %p11562_p0 = pnand %p11561_p12, %p11555_p1 }
  0x37   : > { %11565 = shalt.err (!%p11562_p0)
}
  0x38   : > { %s15962_s19 = smov 128   ;;  %s15964_s20 = smov 8  }
  0x39   : > { %11344 = dma.hbm_to_vmem [thread:$0]  (!%p11889_p11), %s16421_s2, 2048, %s11882_s13, [#allocation6], %s15962_s19, %s15962_s19, %s15964_s20  }
  0x3a   : > { %s16423_s8 = sld [smem:[#allocation123_spill]] }
  0x40   : > { %s11566_s28 = scalar_lea.hbm %s16423_s8, 2048 }
  0x41   : > { %p11567_p1 = scmp.ne.s32.totalorder %s16423_s8, %s11566_s28  ;;  %p11573_p10 = scmp.lt.u32.totalorder %s11566_s28, %s16423_s8 }
  0x43   : > { %p11569_p2 = pnand %p11567_p1, %p11905_p13 }
  0x45   : > { %p11570_p6 = pneg %p11569_p2 }
  0x47   : > { %p11575_p3 = pnand %p11573_p10, %p11570_p6 }
  0x49   : > { %11578 = shalt.err (!%p11575_p3)
}
  0x4a   : > { %s11579_s13 = scalar_lea.vmem %s11893_s16, 2048  ;;  %p11587_p12 = scmp.lt.s32.totalorder %s11893_s16, %s11893_s16 }
  0x4b   : > { %p11580_p5 = scmp.ne.s32.totalorder %s11893_s16, %s11579_s13  ;;  %p11588_p0 = scmp.lt.s32.totalorder %s11579_s13, %s11579_s13 }
  0x4d   : > { %p11582_p7 = pnand %p11580_p5, %p11905_p13  ;;  %p11589_p1 = por %p11588_p0, %p11587_p12 }
  0x4f   : > { %p11583_p9 = pneg %p11582_p7 }
  0x51   : > { %p11590_p2 = pnand %p11589_p1, %p11583_p9 }
  0x53   : > { %11593 = shalt.err (!%p11590_p2)
}
  0x54   : > { %11347 = dma.hbm_to_vmem [thread:$0]  (!%p11889_p11), %s16423_s8, 2048, %s11893_s16, [#allocation9], %s15962_s19, %s15962_s19, %s15964_s20  }
  0x55   : > { %s16424_s10 = sld [smem:[#allocation124_spill]] }
  0x5b   : > { %s11594_s26 = scalar_lea.hbm %s16424_s10, 2048 }
  0x5c   : > { %p11595_p6 = scmp.ne.s32.totalorder %s16424_s10, %s11594_s26  ;;  %p11601_p5 = scmp.lt.u32.totalorder %s11594_s26, %s16424_s10 }
  0x5e   : > { %p11597_p10 = pnand %p11595_p6, %p11905_p13 }
  0x60   : > { %p11598_p3 = pneg %p11597_p10 }
  0x62   : > { %p11603_p7 = pnand %p11601_p5, %p11598_p3 }
  0x64   : > { %11606 = shalt.err (!%p11603_p7)
}
  0x65   : > { %s11607_s13 = scalar_lea.vmem %s382_s18, 2048  ;;  %p11615_p1 = scmp.lt.s32.totalorder %s382_s18, %s382_s18 }
  0x66   : > { %p11608_p9 = scmp.ne.s32.totalorder %s382_s18, %s11607_s13  ;;  %p11616_p2 = scmp.lt.s32.totalorder %s11607_s13, %s11607_s13 }
  0x68   : > { %p11610_p12 = pnand %p11608_p9, %p11905_p13  ;;  %p11617_p4 = por %p11616_p2, %p11615_p1 }
  0x6a   : > { %p11611_p0 = pneg %p11610_p12 }
  0x6c   : > { %p11618_p8 = pnand %p11617_p4, %p11611_p0 }
  0x6e   : > { %11621 = shalt.err (!%p11618_p8)
}
  0x6f   : > { %11350 = dma.hbm_to_vmem [thread:$0]  (!%p11889_p11), %s16424_s10, 2048, %s382_s18, [#allocation9], %s15962_s19, %s15962_s19, %s15964_s20  }
  0x70   : > { %s11978_s21 = sadd.s32 1, %s11760_s24   ;;  %s39_s7 = sadd.s32 1, %s11756_s23 }
  0x71   : > { %s36_s14 = ssub.s32 %s11760_s24, %s11978_s21  ;;  %p46_p8 = scmp.ne.s32.totalorder %s11756_s23, %s11752_s22 }
  0x72   : > { %p37_p4 = scmp.eq.s32.totalorder %s36_s14, 0  ;;  %p47_p13 = scmp.eq.s32.totalorder %s11760_s24, 0 }
  0x73   : > { %p11365_p6 = scmp.lt.s32.totalorder %s11760_s24, 2  ;;  %p16426_p3 = scmp.eq.s32.totalorder %s11859_s25, 1 }
  0x74   : > { %s11988_s11 = scalar_select %p37_p4, %s11756_s23, %s39_s7  }
  0x75   : > { %p48_p10 = por %p47_p13, %p46_p8  ;;  %p11992_p5 = por %p16426_p3, %p46_p8 }
  0x76   : > { %16425 = sst [smem:[#allocation19_spill]] %s11988_s11  ;;  %s398_s26 = sand.u32 1, %s11756_s23  }
  0x77   : > { %s7864_s30 = sshll.u32 %s11760_s24, 12  ;;  %s11998_s18 = sshll.u32 %s398_s26, 8 }
  0x78   : > { %s16428_s0 = sld [smem:[#allocation119_spill]]  ;;  %s402_s13 = scalar_lea.vmem [#allocation2], %s11998_s18 }
  0x79   : > { %s409_s16 = sshll.u32 %s402_s13, 4  ;;  %p12006_p11 = pnand %p11365_p6, %p48_p10  ;;  %s12010_s16 = int_to_ptr.vmem [resolvable:$true] %s409_s16 }
  0x7a   : > { %s12015_s15 = scalar_lea.hbm %s15944_s1, %s7864_s30  ;;  %s12017_s17 = scalar_lea.sflag [#allocation3], %s398_s26 }
  0x7b   : > { %p11624_p9 = pneg %p12006_p11 }
  0x7e   : > { %s12003_s28 = scalar_lea.hbm %s16428_s0, %s7864_s30  ;;  %s11627_s2 = scalar_lea.hbm %s16428_s0, 8192 }
  0x7f   : > { %s11622_s19 = scalar_lea.hbm %s12003_s28, 4096  ;;  %p11628_p1 = scmp.lt.u32.totalorder %s12003_s28, %s16428_s0 }
  0x80   : > { %p11623_p7 = scmp.ne.s32.totalorder %s12003_s28, %s11622_s19  ;;  %p11629_p2 = scmp.lt.u32.totalorder %s11627_s2, %s11622_s19 }
  0x81   : > { %p11631_p8 = scmp.lt.u32.totalorder %s11622_s19, %s12003_s28 }
  0x82   : > { %p11625_p12 = pnand %p11624_p9, %p11623_p7  ;;  %p11630_p4 = por %p11629_p2, %p11628_p1 }
  0x84   : > { %p11626_p0 = pneg %p11625_p12  ;;  %p11632_p13 = por %p11631_p8, %p11630_p4 }
  0x86   : > { %p11633_p6 = pnand %p11632_p13, %p11626_p0 }
  0x88   : > { %11636 = shalt.err (!%p11633_p6)
}
  0x89   : > { %s11637_s26 = scalar_lea.vmem %s12010_s16, 4096  ;;  %s11767_s20 = smov [#allocation2]  }
  0x8a   : > { %p11638_p10 = scmp.ne.s32.totalorder %s12010_s16, %s11637_s26  ;;  %s11642_s30 = sshll.u32 %s11767_s20, 4  ;;  %s11643_s30 = int_to_ptr.vmem [resolvable:$false] %s11642_s30 }
  0x8b   : > { %s11644_s8 = scalar_lea.vmem %s11643_s30, 8192  ;;  %p11645_p12 = scmp.lt.s32.totalorder %s12010_s16, %s11643_s30 }
  0x8c   : > { %p11640_p3 = pnand %p11638_p10, %p11624_p9  ;;  %p11646_p1 = scmp.lt.s32.totalorder %s11644_s8, %s11637_s26 }
  0x8e   : > { %p11641_p7 = pneg %p11640_p3  ;;  %p11647_p2 = por %p11646_p1, %p11645_p12 }
  0x90   : > { %p11648_p4 = pnand %p11647_p2, %p11641_p7 }
  0x92   : > { %11651 = shalt.err (!%p11648_p4)
}
  0x93   : > { %s16430_s2 = smov 8   ;;  %s16431_s10 = smov 128  }
  0x94   : > { %11354 = dma.hbm_to_vmem [thread:$0]  (!%p12006_p11), %s12003_s28, 4096, %s12010_s16, %s12017_s17, %s16431_s10, %s16431_s10, %s16430_s2  }
  0x95   : > { %s423_s19 = scalar_lea.vmem [#allocation5], %s11998_s18  ;;  %s419_s7 = sand.u32 1, %s11760_s24  }
  0x96   : > { %s430_s14 = sshll.u32 %s423_s19, 4  ;;  %s12052_s13 = scalar_lea.sflag [#allocation6], %s419_s7  ;;  %s12050_s14 = int_to_ptr.vmem [resolvable:$true] %s430_s14 }
  0x97   : > { %s11652_s26 = scalar_lea.hbm %s12015_s15, 4096  ;;  %s11657_s8 = scalar_lea.hbm %s15944_s1, 8192 }
  0x98   : > { %p11653_p0 = scmp.ne.s32.totalorder %s12015_s15, %s11652_s26  ;;  %p11658_p6 = scmp.lt.u32.totalorder %s12015_s15, %s15944_s1 }
  0x99   : > { %p11659_p10 = scmp.lt.u32.totalorder %s11657_s8, %s11652_s26  ;;  %p11661_p7 = scmp.lt.u32.totalorder %s11652_s26, %s12015_s15 }
  0x9a   : > { %p11655_p8 = pnand %p11653_p0, %p11624_p9 }
  0x9b   : > { %p11660_p3 = por %p11659_p10, %p11658_p6 }
  0x9c   : > { %p11656_p13 = pneg %p11655_p8 }
  0x9d   : > { %p11662_p12 = por %p11661_p7, %p11660_p3 }
  0x9f   : > { %p11663_p1 = pnand %p11662_p12, %p11656_p13 }
  0xa1   : > { %11666 = shalt.err (!%p11663_p1)
}
  0xa2   : > { %s11667_s18 = scalar_lea.vmem %s12050_s14, 4096  ;;  %s11768_s28 = smov [#allocation5]  }
  0xa3   : > { %p11668_p2 = scmp.ne.s32.totalorder %s12050_s14, %s11667_s18  ;;  %s11672_s16 = sshll.u32 %s11768_s28, 4  ;;  %s11673_s16 = int_to_ptr.vmem [resolvable:$false] %s11672_s16 }
  0xa4   : > { %s11674_s0 = scalar_lea.vmem %s11673_s16, 8192  ;;  %p11675_p8 = scmp.lt.s32.totalorder %s12050_s14, %s11673_s16 }
  0xa5   : > { %p11670_p4 = pnand %p11668_p2, %p11624_p9  ;;  %p11676_p6 = scmp.lt.s32.totalorder %s11674_s0, %s11667_s18 }
  0xa7   : > { %p11671_p0 = pneg %p11670_p4  ;;  %p11677_p10 = por %p11676_p6, %p11675_p8 }
  0xa9   : > { %p11678_p3 = pnand %p11677_p10, %p11671_p0 }
  0xab   : > { %11681 = shalt.err (!%p11678_p3)
}
  0xac   : > { %11357 = dma.hbm_to_vmem [thread:$0]  (!%p12006_p11), %s12015_s15, 4096, %s12050_s14, %s12052_s13, %s16431_s10, %s16431_s10, %s16430_s2  }
  0xad   : > { %p16432_p9 = scmp.ne.s32.totalorder %s16419_s29, 0 }
  0xaf   : > { %442 = sbr.rel (%p16432_p9) target bundleno = 2407 (0x967), region = 68 }
  0xb6   : > { %s12084_s11 = sand.u32 1, %s11752_s22   ;;  %p16433_p13 = scmp.ne.s32.totalorder %s16416_s27, 0 }
  0xb7   : > { %s12087_s17 = sshll.u32 %s12084_s11, 8  ;;  %s445_s6 = scalar_lea.sflag [#allocation3], %s12084_s11 }
  0xb8   : > { %s12091_s19 = scalar_lea.vmem [#allocation2], %s12087_s17 }
  0xb9   : > { %11727 = dma.done.wait (%p16433_p13), %s445_s6, 4096  }
  0xba   : > { %11729 = vsyncadd (%p16433_p13), %s445_s6, 4294963200  ;;  %s453_s29 = sand.u32 1, %s11859_s25   ;;  %s12099_s2 = scalar_lea.vmem [#allocation5], %s12087_s17 }
  0xbb   : > { %s454_s15 = scalar_lea.sflag [#allocation6], %s453_s29 }
  0xbc   : > { %11731 = dma.done.wait (%p16433_p13), %s454_s15, 4096  }
  0xbd   : > { %11733 = vsyncadd (%p16433_p13), %s454_s15, 4294963200  ;;  %p16434_p11 = scmp.eq.s32.totalorder %s11859_s25, 0 }
  0xbf   : > { %11735 = dma.done.wait (%p16434_p11), [#allocation6], 2048   ;;  %p16435_p7 = pmov %p16434_p11 }
  0xc1   : > { %11737 = vsyncadd (%p16435_p7), [#allocation6], 4294965248  ;;  %p16436_p12 = pmov %p16435_p7 }
  0xc2   : > { %p16437_p1 = pmov %p16435_p7 }
  0xc3   : > { %11739 = dma.done.wait (%p16436_p12), [#allocation9], 4096  }
  0xc4   : > { %11741 = vsyncadd (%p16437_p1), [#allocation9], 4294963200  ;;  %v587_v0 = vld [vmem:[#allocation7] sm:$0xff]  ;;  %v588_v1 = vld [vmem:[#allocation7 + $0x8] sm:$0xff]  ;;  %s17002_s28 = sld [smem:[#allocation125_spill]]  ;;  %s17036_s6 = sld [smem:[#allocation121_spill]] }
  0xc5   : > { %v12113_v2 = vld [vmem:[#allocation7 + $0x10] sm:$0xff]  ;;  %v611_v3 = vand.u32 4294901760, %v587_v0  ;;  %v614_v4 = vand.u32 4294901760, %v588_v1  ;;  %v12115_v5 = vld [vmem:[#allocation7 + $0x18] sm:$0xff]  ;;  %v12118_v7 = vld [vmem:[#allocation7 + $0x20] sm:$0xff]  ;;  %s17037_s15 = sld [smem:[#allocation122_spill]] }
  0xc6   : > { %v617_v6 = vand.u32 4294901760, %v12113_v2  ;;  %v12120_v8 = vld [vmem:[#allocation7 + $0x28] sm:$0xff]  ;;  %v620_v9 = vand.u32 4294901760, %v12115_v5  ;;  %v623_v11 = vand.u32 4294901760, %v12118_v7  ;;  %v12133_v14 = vld [vmem:[#allocation7 + $0x30] sm:$0xff]  ;;  %v12135_v15 = vld [vmem:[#allocation7 + $0x38] sm:$0xff] }
  0xc7   : > { %v12123_v10 = vpack.c.bf16 %v614_v4, %v611_v3  ;;  %v626_v12 = vand.u32 4294901760, %v12120_v8  ;;  %v550_v16 = vld [vmem:[%s12099_s2] sm:$0xff]  ;;  %v629_v19 = vand.u32 4294901760, %v12133_v14  ;;  %v632_v20 = vand.u32 4294901760, %v12135_v15  ;;  %v12156_v22 = vld [vmem:[#allocation7 + $0x48] sm:$0xff]  ;;  %v12175_v29 = vld [vmem:[#allocation7 + $0x50] sm:$0xff] }
  0xc8   : > { %v12131_v13 = vpack.c.bf16 %v620_v9, %v617_v6  ;;  %v12142_v17 = vand.u32 4294901760, %v550_v16  ;;  %v12154_v21 = vld [vmem:[#allocation7 + $0x40] sm:$0xff]  ;;  %v551_v25 = vld [vmem:[%s12099_s2 + $0x8] sm:$0xff]  ;;  %v15973_v28 = vand.u32 4294901760, %v12156_v22  ;;  %v12177_v30 = vld [vmem:[#allocation7 + $0x58] sm:$0xff]  ;;  %v15971_v35 = vand.u32 4294901760, %v12175_v29 }
  0xc9   : > { %10172 = vmatprep.subr.bf16.mxu1 %v12123_v10  ;;  %10268 = vmatprep.subr.bf16.mxu0 %v12123_v10  ;;  %v12150_v18 = vpack.c.bf16 %v626_v12, %v623_v11  ;;  %v12171_v26 = vpack.c.bf16 %v632_v20, %v629_v19  ;;  %v15974_v27 = vand.u32 4294901760, %v12154_v21  ;;  %v552_v32 = vld [vmem:[%s12099_s2 + $0x10] sm:$0xff]  ;;  %v12181_v33 = vand.u32 4294901760, %v551_v25  ;;  %v553_v34 = vld [vmem:[%s12099_s2 + $0x18] sm:$0xff]  ;;  %v12188_v37 = vld [vmem:[#allocation7 + $0x60] sm:$0xff]  ;;  %s17038_s7 = sld [smem:[#allocation126_spill]] }
  0xca   : > { %10174 = vmatpush3.bf16.msra.mxu1 %v12123_v10  ;;  %10270 = vmatpush3.bf16.msra.mxu0 %v12123_v10  ;;  %v12159_v23 = vsub.f32 %v550_v16, %v12142_v17  ;;  %v15970_v36 = vand.u32 4294901760, %v12177_v30  ;;  %v12190_v39 = vsub.f32 %v587_v0, %v611_v3  ;;  %v12200_v41 = vld [vmem:[#allocation7 + $0x68] sm:$0xff]  ;;  %v12202_v42 = vsub.f32 %v588_v1, %v614_v4  ;;  %v554_v44 = vld [vmem:[%s12099_s2 + $0x20] sm:$0xff]  ;;  %v12210_v47 = vld [vmem:[#allocation7 + $0x70] sm:$0xff]  ;;  %s11770_s20 = smov [#allocation11]  }
  0xcb   : > { %10176 = vmatprep.subr.bf16.mxu1 %v12131_v13  ;;  %10272 = vmatprep.subr.bf16.mxu0 %v12131_v13  ;;  %16439 = vst [vmem:[#allocation21_spill] sm:$0xff] %v12171_v26  ;;  %v12198_v40 = vpack.c.bf16 %v15973_v28, %v15974_v27  ;;  %v12204_v43 = vand.u32 4294901760, %v552_v32  ;;  %v12207_v45 = vand.u32 4294901760, %v553_v34  ;;  %v15969_v46 = vand.u32 4294901760, %v12188_v37  ;;  %v12212_v48 = vld [vmem:[#allocation7 + $0x78] sm:$0xff]  ;;  %v555_v56 = vld [vmem:[%s12099_s2 + $0x28] sm:$0xff] }
  0xcc   : > { %16438 = vst [vmem:[#allocation20_spill] sm:$0xff] %v12159_v23  ;;  %v693_v24 = vand.u32 4294901760, %v12159_v23  ;;  %v12215_v49 = vsub.f32 %v551_v25, %v12181_v33  ;;  %v12223_v50 = vpack.c.bf16 %v15970_v36, %v15971_v35  ;;  %v15968_v51 = vand.u32 4294901760, %v12200_v41  ;;  %v556_v3 = vld [vmem:[%s12099_s2 + $0x30] sm:$0xff]  ;;  %v557_v4 = vld [vmem:[%s12099_s2 + $0x38] sm:$0xff]  ;;  %s11686_s30 = sshll.u32 %s11770_s20, 4  ;;  %s11687_s30 = int_to_ptr.vmem [resolvable:$false] %s11686_s30 }
  0xcd   : > { %16440 = vst [vmem:[#allocation22_spill] sm:$0xff] %v12198_v40  ;;  %v1014_v52 = vand.u32 4294901760, %v12190_v39  ;;  %v12227_v53 = vand.u32 4294901760, %v554_v44  ;;  %v1021_v54 = vand.u32 4294901760, %v12202_v42  ;;  %v12233_v55 = vsub.f32 %v552_v32, %v12204_v43  ;;  %s11688_s8 = scalar_lea.vmem %s11687_s30, 8192 }
  0xce   : > { %10178 = vmatpush3.bf16.msra.mxu1 %v12131_v13  ;;  %10274 = vmatpush3.bf16.msra.mxu0 %v12131_v13  ;;  %v694_v31 = vsub.f32 %v12159_v23, %v693_v24  ;;  %16441 = vst [vmem:[#allocation23_spill] sm:$0xff] %v12215_v49  ;;  %16442 = vst [vmem:[#allocation24_spill] sm:$0xff] %v12223_v50  ;;  %v12239_v57 = vsub.f32 %v12113_v2, %v617_v6  ;;  %v15967_v59 = vand.u32 4294901760, %v12210_v47 }
  0xcf   : > { %10180 = vmatprep.subr.bf16.mxu1 %v12150_v18  ;;  %10276 = vmatprep.subr.bf16.mxu0 %v12150_v18  ;;  %16443 = vst [vmem:[#allocation25_spill] sm:$0xff] %v12233_v55  ;;  %v12244_v58 = vsub.f32 %v12115_v5, %v620_v9  ;;  %v15966_v60 = vand.u32 4294901760, %v12212_v48  ;;  %v12249_v61 = vsub.f32 %v553_v34, %v12207_v45  ;;  %v15976_v62 = vand.u32 4294901760, %v12215_v49 }
  0xd0   : > { %9003 = vmatprep.mubr.f32.mxu0 %v693_v24  ;;  %v695_v38 = vand.u32 4294901760, %v694_v31  ;;  %v12258_v63 = vpack.c.bf16 %v15968_v51, %v15969_v46  ;;  %v1015_v0 = vsub.f32 %v12190_v39, %v1014_v52  ;;  %v12262_v1 = vsub.f32 %v554_v44, %v12227_v53  ;;  %v558_v24 = vld [vmem:[%s12099_s2 + $0x40] sm:$0xff]  ;;  %v559_v51 = vld [vmem:[%s12099_s2 + $0x48] sm:$0xff] }
  0xd1   : > { %16444 = vst [vmem:[#allocation26_spill] sm:$0xff] %v12249_v61  ;;  %v12264_v2 = vand.u32 4294901760, %v555_v56  ;;  %v1022_v5 = vsub.f32 %v12202_v42, %v1021_v54  ;;  %v15972_v6 = vand.u32 4294901760, %v12233_v55  ;;  %v15978_v9 = vand.u32 4294901760, %v12239_v57 }
  0xd2   : > { %10182 = vmatpush3.bf16.msra.mxu1 %v12150_v18  ;;  %10278 = vmatpush3.bf16.msra.mxu0 %v12150_v18  ;;  %16445 = vst [vmem:[#allocation27_spill] sm:$0xff] %v12258_v63  ;;  %16446 = vst [vmem:[#allocation28_spill] sm:$0xff] %v12262_v1  ;;  %v15977_v16 = vand.u32 4294901760, %v12244_v58  ;;  %v12279_v25 = vpack.c.bf16 %v15966_v60, %v15967_v59  ;;  %v15975_v31 = vand.u32 4294901760, %v12249_v61  ;;  %v12299_v60 = vand.u32 4294901760, %v556_v3 }
  0xd3   : > { %10184 = vmatprep.subr.bf16.mxu1 %v12171_v26  ;;  %10280 = vmatprep.subr.bf16.mxu0 %v12171_v26  ;;  %16447 = vst [vmem:[#allocation29_spill] sm:$0xff] %v12264_v2  ;;  %v12285_v32 = vsub.f32 %v12118_v7, %v623_v11  ;;  %v12290_v34 = vsub.f32 %v12120_v8, %v626_v12  ;;  %v12301_v59 = vand.u32 4294901760, %v557_v4  ;;  %v1016_v7 = vand.u32 4294901760, %v1015_v0 }
  0xd4   : > { %8763 = vmatprep.mubr.f32.mxu1 %v695_v38  ;;  %16448 = vst [vmem:[#allocation30_spill] sm:$0xff] %v12279_v25  ;;  %v12295_v38 = vsub.f32 %v12215_v49, %v15976_v62  ;;  %v12297_v44 = vpack.c.bf16 %v1021_v54, %v1014_v52  ;;  %16449 = vst [vmem:[#allocation31_spill] sm:$0xff] %v12299_v60  ;;  %v15980_v11 = vand.u32 4294901760, %v12262_v1  ;;  %v12309_v12 = vand.u32 4294901760, %v558_v24 }
  0xd5   : > { %16450 = vst [vmem:[#allocation32_spill] sm:$0xff] %v12301_v59  ;;  %v12307_v8 = vsub.f32 %v555_v56, %v12264_v2  ;;  %v1023_v52 = vand.u32 4294901760, %v1022_v5  ;;  %v714_v54 = vsub.f32 %v12233_v55, %v15972_v6  ;;  %v1029_v0 = vsub.f32 %v12239_v57, %v15978_v9  ;;  %v560_v9 = vld [vmem:[%s12099_s2 + $0x50] sm:$0xff] }
  0xd6   : > { %10186 = vmatpush3.bf16.msra.mxu1 %v12171_v26  ;;  %10282 = vmatpush3.bf16.msra.mxu0 %v12171_v26  ;;  %16452 = vst [vmem:[#allocation34_spill] sm:$0xff] %v12309_v12  ;;  %v1036_v56 = vsub.f32 %v12244_v58, %v15977_v16  ;;  %v12326_v46 = vsub.f32 %v12249_v61, %v15975_v31  ;;  %v1042_v36 = vand.u32 4294901760, %v12285_v32  ;;  %v1049_v5 = vand.u32 4294901760, %v12290_v34 }
  0xd7   : > { %10188 = vmatprep.subr.bf16.mxu1 %v12198_v40  ;;  %10284 = vmatprep.subr.bf16.mxu0 %v12198_v40  ;;  %16451 = vst [vmem:[#allocation33_spill] sm:$0xff] %v12307_v8  ;;  %v12333_v35 = vsub.f32 %v12133_v14, %v629_v19  ;;  %v12336_v6 = vsub.f32 %v556_v3, %v12299_v60  ;;  %v12341_v27 = vand.u32 4294901760, %v559_v51  ;;  %v705_v14 = vand.u32 4294901760, %v12295_v38 }
  0xd8   : > { %v12339_v28 = vsub.f32 %v557_v4, %v12301_v59  ;;  %v12346_v31 = vsub.f32 %v12135_v15, %v632_v20  ;;  %v12354_v19 = vsub.f32 %v12262_v1, %v15980_v11  ;;  %v12358_v4 = vsub.f32 %v558_v24, %v12309_v12  ;;  %v561_v11 = vld [vmem:[%s12099_s2 + $0x58] sm:$0xff] }
  0xd9   : > { %16453 = vst [vmem:[#allocation35_spill] sm:$0xff] %v12336_v6  ;;  %16455 = vst [vmem:[#allocation37_spill] sm:$0xff] %v12341_v27  ;;  %v10203_v15 = vpack.c.bf16 %v1023_v52, %v1016_v7  ;;  %v715_v20 = vand.u32 4294901760, %v714_v54  ;;  %v1030_v62 = vand.u32 4294901760, %v1029_v0  ;;  %v1037_v16 = vand.u32 4294901760, %v1036_v56 }
  0xda   : > { %10190 = vmatpush3.bf16.msra.mxu1 %v12198_v40  ;;  %10286 = vmatpush3.bf16.msra.mxu0 %v12198_v40  ;;  %16454 = vst [vmem:[#allocation36_spill] sm:$0xff] %v12339_v28  ;;  %16456 = vst [vmem:[#allocation38_spill] sm:$0xff] %v12358_v4  ;;  %v1043_v38 = vsub.f32 %v12285_v32, %v1042_v36  ;;  %v1050_v23 = vsub.f32 %v12290_v34, %v1049_v5  ;;  %v735_v54 = vand.u32 4294901760, %v12354_v19 }
  0xdb   : > { %10192 = vmatprep.subr.bf16.mxu1 %v12223_v50  ;;  %10288 = vmatprep.subr.bf16.mxu0 %v12223_v50  ;;  %v12373_v52 = vsub.f32 %v559_v51, %v12341_v27  ;;  %v16458_v0 = vand.u32 4294901760, %v12307_v8  ;;  %v12384_v24 = vand.u32 4294901760, %v560_v9  ;;  %v10207_v51 = vpack.c.bf16 %v1037_v16, %v1030_v62  ;;  %v563_v27 = vld [vmem:[%s12099_s2 + $0x68] sm:$0xff] }
  0xdc   : > { %v16459_v7 = vand.u32 4294901760, %v12239_v57  ;;  %v16460_v40 = vand.u32 4294901760, %v12244_v58  ;;  %v1051_v12 = vand.u32 4294901760, %v1050_v23  ;;  %v16463_v26 = vand.u32 4294901760, %v12346_v31 }
  0xdd   : > { %16457 = vst [vmem:[#allocation39_spill] sm:$0xff] %v12373_v52  ;;  %v12381_v56 = vsub.f32 %v12307_v8, %v16458_v0  ;;  %v1044_v0 = vand.u32 4294901760, %v1043_v38  ;;  %v16464_v16 = vand.u32 4294901760, %v12215_v49  ;;  %v16466_v60 = vand.u32 4294901760, %v12339_v28 }
  0xde   : > { %10194 = vmatpush3.bf16.msra.mxu1 %v12223_v50  ;;  %10290 = vmatpush3.bf16.msra.mxu0 %v12223_v50  ;;  %v725_v50 = vand.u32 4294901760, %v12326_v46  ;;  %v10303_v3 = vpack.c.bf16 %v16460_v40, %v16459_v7  ;;  %v16462_v46 = vand.u32 4294901760, %v12333_v35  ;;  %v1064_v62 = vsub.f32 %v12346_v31, %v16463_v26 }
  0xdf   : > { %10196 = vmatprep.subr.bf16.mxu1 %v12258_v63  ;;  %10292 = vmatprep.subr.bf16.mxu0 %v12258_v63  ;;  %v16465_v40 = vand.u32 4294901760, %v12336_v6  ;;  %v12410_v23 = vsub.f32 %v12339_v28, %v16466_v60  ;;  %v16468_v26 = vand.u32 4294901760, %v12358_v4  ;;  %v564_v60 = vld [vmem:[%s12099_s2 + $0x70] sm:$0xff]  ;;  %v16471_v38 = vand.u32 4294901760, %v12156_v22 }
  0xe0   : > { %v1057_v59 = vsub.f32 %v12333_v35, %v16462_v46  ;;  %v16467_v46 = vand.u32 4294901760, %v12154_v21 }
  0xe1   : > { %v754_v7 = vsub.f32 %v12336_v6, %v16465_v40  ;;  %v12426_v40 = vand.u32 4294901760, %v563_v27  ;;  %v12432_v49 = vsub.f32 %v12156_v22, %v16471_v38  ;;  %v1065_v38 = vand.u32 4294901760, %v1064_v62  ;;  %v565_v62 = vld [vmem:[%s12099_s2 + $0x78] sm:$0xff] }
  0xe2   : > { %10198 = vmatpush3.bf16.msra.mxu1 %v12258_v63  ;;  %10294 = vmatpush3.bf16.msra.mxu0 %v12258_v63  ;;  %v562_v63 = vld [vmem:[%s12099_s2 + $0x60] sm:$0xff]  ;;  %v12416_v2 = vsub.f32 %v12154_v21, %v16467_v46  ;;  %v16472_v21 = vand.u32 4294901760, %v12233_v55  ;;  %v1058_v22 = vand.u32 4294901760, %v1057_v59  ;;  %v16478_v59 = vand.u32 4294901760, %v12373_v52 }
  0xe3   : > { %10200 = vmatprep.subr.bf16.mxu1 %v12279_v25  ;;  %10296 = vmatprep.subr.bf16.mxu0 %v12279_v25  ;;  %v12393_v19 = vand.u32 4294901760, %v562_v63  ;;  %16470 = vst [vmem:[#allocation42_spill] sm:$0xff] %v12426_v40  ;;  %v1077_v55 = vand.u32 4294901760, %v12432_v49 }
  0xe4   : > { %v1070_v46 = vand.u32 4294901760, %v12416_v2 }
  0xe5   : > { %16461 = vst [vmem:[#allocation40_spill] sm:$0xff] %v12393_v19 }
  0xe6   : > { %10202 = vmatpush3.bf16.msra.mxu1 %v12279_v25  ;;  %10298 = vmatpush3.bf16.msra.mxu0 %v12279_v25  ;;  %v12391_v25 = vand.u32 4294901760, %v561_v11 }
  0xe7   : > { %10204 = vmatprep.subr.bf16.mxu1 %v10203_v15  ;;  %10300 = vmatprep.subr.bf16.mxu0 %v12297_v44 }
  0xe9   : > { %8764 = vmatmul.mubr.f32.vlgmr.msra.gmra.mrb[0].mxu1 %v705_v14  ;;  %9004 = vmatmul.mubr.f32.vlgmr.msra.gmra.mrb[0].mxu0 %v16464_v16  ;;  %v12421_v14 = vsub.f32 %v12358_v4, %v16468_v26  ;;  %v12424_v16 = vsub.f32 %v560_v9, %v12384_v24  ;;  %v12441_v9 = vsub.f32 %v562_v63, %v12393_v19  ;;  %v12448_v63 = vand.u32 4294901760, %v564_v60 }
  0xea   : > { %10206 = vmatpush3.bf16.msra.mxu1 %v10203_v15  ;;  %8766 = vmatprep.mubr.f32.mxu1 %v715_v20  ;;  %v10307_v15 = vpack.c.bf16 %v1049_v5, %v1042_v36  ;;  %v12438_v20 = vsub.f32 %v561_v11, %v12391_v25  ;;  %v10211_v26 = vpack.c.bf16 %v1051_v12, %v1044_v0  ;;  %v745_v36 = vand.u32 4294901760, %v12381_v56 }
  0xeb   : > { %16469 = vst [vmem:[#allocation41_spill] sm:$0xff] %v12424_v16  ;;  %9006 = vmatprep.mubr.f32.mxu0 %v16472_v21  ;;  %10302 = vmatpush3.bf16.msra.mxu0 %v12297_v44  ;;  %16474 = vst [vmem:[#allocation44_spill] sm:$0xff] %v12441_v9  ;;  %v16475_v44 = vand.u32 4294901760, %v12249_v61  ;;  %v755_v11 = vand.u32 4294901760, %v754_v7  ;;  %v1071_v5 = vsub.f32 %v12416_v2, %v1070_v46  ;;  %v16477_v12 = vand.u32 4294901760, %v12262_v1  ;;  %v567_v1 = vld [vmem:[%s12099_s2 + $0x88] sm:$0xff] }
  0xec   : > { %16473 = vst [vmem:[#allocation43_spill] sm:$0xff] %v12438_v20  ;;  %10208 = vmatprep.subr.bf16.mxu1 %v10207_v51  ;;  %10304 = vmatprep.subr.bf16.mxu0 %v10303_v3  ;;  %16476 = vst [vmem:[#allocation45_spill] sm:$0xff] %v12448_v63  ;;  %v12460_v56 = vsub.f32 %v563_v27, %v12426_v40  ;;  %v1078_v7 = vsub.f32 %v12432_v49, %v1077_v55  ;;  %v775_v21 = vand.u32 4294901760, %v12421_v14 }
  0xed   : > { %8767 = vmatmul.mubr.f32.gmra.mrb[2].mxu1 %v725_v50  ;;  %9007 = vmatmul.mubr.f32.gmra.mrb[2].mxu0 %v16475_v44  ;;  %v12456_v50 = vsub.f32 %v12373_v52, %v16478_v59  ;;  %v566_v59 = vld [vmem:[%s12099_s2 + $0x80] sm:$0xff]  ;;  %v10215_v27 = vpack.c.bf16 %v1065_v38, %v1058_v22  ;;  %v16480_v0 = vand.u32 4294901760, %v12333_v35  ;;  %v16481_v61 = vand.u32 4294901760, %v12346_v31  ;;  %v568_v44 = vld [vmem:[%s12099_s2 + $0x90] sm:$0xff] }
  0xee   : > { %8769 = vmatprep.mubr.f32.mxu1 %v735_v54  ;;  %9009 = vmatprep.mubr.f32.mxu0 %v16477_v12  ;;  %16479 = vst [vmem:[#allocation46_spill] sm:$0xff] %v12460_v56  ;;  %v765_v54 = vand.u32 4294901760, %v12410_v23  ;;  %v1079_v40 = vand.u32 4294901760, %v1078_v7  ;;  %v16482_v23 = vand.u32 4294901760, %v12307_v8  ;;  %v12477_v14 = vsub.f32 %v564_v60, %v12448_v63 }
  0xef   : > { %10210 = vmatpush3.bf16.msra.mxu1 %v10207_v51  ;;  %10306 = vmatpush3.bf16.msra.mxu0 %v10303_v3  ;;  %v10311_v51 = vpack.c.bf16 %v16481_v61, %v16480_v0  ;;  %v1072_v3 = vand.u32 4294901760, %v1071_v5  ;;  %v12479_v12 = vand.u32 4294901760, %v565_v62  ;;  %v16483_v19 = vand.u32 4294901760, %v12175_v29 }
  0xf0   : > { %10212 = vmatprep.subr.bf16.mxu1 %v10211_v26  ;;  %10308 = vmatprep.subr.bf16.mxu0 %v10307_v15  ;;  %v16484_v38 = vand.u32 4294901760, %v12177_v30  ;;  %v16486_v60 = vand.u32 4294901760, %v12424_v16  ;;  %v12498_v7 = vand.u32 4294901760, %v566_v59 }
  0xf1   : > { %8770 = vmatmul.mubr.f32.gmra.mrb[4].mxu1 %v745_v36  ;;  %9010 = vmatmul.mubr.f32.gmra.mrb[4].mxu0 %v16482_v23  ;;  %v12485_v22 = vsub.f32 %v12175_v29, %v16483_v19  ;;  %v16485_v36 = vand.u32 4294901760, %v12336_v6  ;;  %v12500_v29 = vand.u32 4294901760, %v567_v1  ;;  %v785_v19 = vand.u32 4294901760, %v12456_v50 }
  0xf2   : > { %v12490_v61 = vsub.f32 %v12177_v30, %v16484_v38  ;;  %8772 = vmatprep.mubr.f32.mxu1 %v755_v11  ;;  %v794_v5 = vsub.f32 %v12424_v16, %v16486_v60  ;;  %v16487_v30 = vand.u32 4294901760, %v12438_v20  ;;  %v10219_v0 = vpack.c.bf16 %v1079_v40, %v1072_v3 }
  0xf3   : > { %9012 = vmatprep.mubr.f32.mxu0 %v16485_v36  ;;  %10214 = vmatpush3.bf16.msra.mxu1 %v10211_v26  ;;  %v1084_v23 = vand.u32 4294901760, %v12485_v22  ;;  %v16488_v36 = vand.u32 4294901760, %v12441_v9  ;;  %v10315_v6 = vpack.c.bf16 %v1077_v55, %v1070_v46  ;;  %v12513_v50 = vand.u32 4294901760, %v568_v44 }
  0xf4   : > { %10310 = vmatpush3.bf16.msra.mxu0 %v10307_v15  ;;  %v804_v11 = vsub.f32 %v12438_v20, %v16487_v30  ;;  %v1091_v38 = vand.u32 4294901760, %v12490_v61  ;;  %10216 = vmatprep.subr.bf16.mxu1 %v10215_v27  ;;  %v569_v15 = vld [vmem:[%s12099_s2 + $0x98] sm:$0xff]  ;;  %v16489_v26 = vand.u32 4294901760, %v12339_v28  ;;  %v12520_v8 = vsub.f32 %v565_v62, %v12479_v12 }
  0xf5   : > { %v12511_v60 = vsub.f32 %v12441_v9, %v16488_v36  ;;  %10312 = vmatprep.subr.bf16.mxu0 %v10311_v51  ;;  %8773 = vmatmul.mubr.f32.gmra.mrb[6].mxu1 %v765_v54  ;;  %v1085_v36 = vsub.f32 %v12485_v22, %v1084_v23  ;;  %v16490_v55 = vand.u32 4294901760, %v12358_v4  ;;  %v795_v40 = vand.u32 4294901760, %v794_v5 }
  0xf6   : > { %9013 = vmatmul.mubr.f32.gmra.mrb[6].mxu0 %v16489_v26  ;;  %v1092_v63 = vsub.f32 %v12490_v61, %v1091_v38  ;;  %8775 = vmatprep.mubr.f32.mxu1 %v775_v21  ;;  %v16491_v46 = vand.u32 4294901760, %v12460_v56  ;;  %v12532_v3 = vsub.f32 %v566_v59, %v12498_v7  ;;  %v12535_v62 = vsub.f32 %v567_v1, %v12500_v29  ;;  %v570_v21 = vld [vmem:[%s12099_s2 + $0xa0] sm:$0xff]  ;;  %v571_v1 = vld [vmem:[%s12099_s2 + $0xa8] sm:$0xff] }
  0xf7   : > { %9015 = vmatprep.mubr.f32.mxu0 %v16490_v55  ;;  %10218 = vmatpush3.bf16.msra.mxu1 %v10215_v27  ;;  %v12537_v26 = vand.u32 4294901760, %v569_v15  ;;  %v1086_v30 = vand.u32 4294901760, %v1085_v36  ;;  %v16492_v5 = vand.u32 4294901760, %v12188_v37  ;;  %v12546_v59 = vsub.f32 %v568_v44, %v12513_v50 }
  0xf8   : > { %v12529_v54 = vsub.f32 %v12460_v56, %v16491_v46  ;;  %10314 = vmatpush3.bf16.msra.mxu0 %v10311_v51  ;;  %v1093_v55 = vand.u32 4294901760, %v1092_v63  ;;  %v805_v46 = vand.u32 4294901760, %v804_v11  ;;  %10220 = vmatprep.subr.bf16.mxu1 %v10219_v0  ;;  %v10319_v27 = vpack.c.bf16 %v1091_v38, %v1084_v23 }
  0xf9   : > { %v12543_v4 = vsub.f32 %v12188_v37, %v16492_v5  ;;  %10316 = vmatprep.subr.bf16.mxu0 %v10315_v6  ;;  %v16493_v51 = vand.u32 4294901760, %v12200_v41  ;;  %8776 = vmatmul.mubr.f32.gmra.mrb[8].mxu1 %v785_v19  ;;  %v16494_v63 = vand.u32 4294901760, %v12373_v52  ;;  %v16495_v37 = vand.u32 4294901760, %v12477_v14 }
  0xfa   : > { %v10223_v5 = vpack.c.bf16 %v1093_v55, %v1086_v30  ;;  %8778 = vmatprep.mubr.f32.mxu1 %v795_v40  ;;  %v16496_v23 = vand.u32 4294901760, %v12424_v16  ;;  %v12565_v38 = vand.u32 4294901760, %v570_v21  ;;  %v12571_v30 = vsub.f32 %v569_v15, %v12537_v26 }
  0xfb   : > { %v12552_v28 = vsub.f32 %v12200_v41, %v16493_v51  ;;  %9016 = vmatmul.mubr.f32.gmra.mrb[8].mxu0 %v16494_v63  ;;  %v834_v11 = vsub.f32 %v12477_v14, %v16495_v37  ;;  %v1098_v44 = vand.u32 4294901760, %v12543_v4  ;;  %v815_v41 = vand.u32 4294901760, %v12511_v60  ;;  %v572_v51 = vld [vmem:[%s12099_s2 + $0xb0] sm:$0xff]  ;;  %10222 = vmatpush3.bf16.msra.mxu1 %v10219_v0 }
  0xfc   : > { %9018 = vmatprep.mubr.f32.mxu0 %v16496_v23  ;;  %16497 = vst [vmem:[#allocation47_spill] sm:$0xff] %v12565_v38  ;;  %10318 = vmatpush3.bf16.msra.mxu0 %v10315_v6  ;;  %v12573_v40 = vand.u32 4294901760, %v571_v1  ;;  %v825_v60 = vand.u32 4294901760, %v12529_v54  ;;  %v16499_v0 = vand.u32 4294901760, %v12438_v20  ;;  %v16500_v15 = vand.u32 4294901760, %v12520_v8  ;;  %v573_v54 = vld [vmem:[%s12099_s2 + $0xb8] sm:$0xff] }
  0xfd   : > { %v1105_v63 = vand.u32 4294901760, %v12552_v28  ;;  %v1099_v55 = vsub.f32 %v12543_v4, %v1098_v44  ;;  %10224 = vmatprep.subr.bf16.mxu1 %v10223_v5  ;;  %10320 = vmatprep.subr.bf16.mxu0 %v10319_v27  ;;  %v835_v6 = vand.u32 4294901760, %v834_v11  ;;  %v12584_v16 = vand.u32 4294901760, %v572_v51 }
  0xfe   : > { %16498 = vst [vmem:[#allocation48_spill] sm:$0xff] %v12573_v40  ;;  %8779 = vmatmul.mubr.f32.gmra.mrb[10].mxu1 %v805_v46  ;;  %v844_v37 = vsub.f32 %v12520_v8, %v16500_v15  ;;  %v16502_v23 = vand.u32 4294901760, %v12441_v9  ;;  %v16505_v20 = vand.u32 4294901760, %v12535_v62  ;;  %v16507_v9 = vand.u32 4294901760, %v12546_v59 }
  0xff   : > { %v1106_v19 = vsub.f32 %v12552_v28, %v1105_v63  ;;  %v10323_v36 = vpack.c.bf16 %v1105_v63, %v1098_v44  ;;  %9019 = vmatmul.mubr.f32.gmra.mrb[10].mxu0 %v16499_v0  ;;  %16501 = vst [vmem:[#allocation49_spill] sm:$0xff] %v12584_v16  ;;  %v1100_v52 = vand.u32 4294901760, %v1099_v55  ;;  %8781 = vmatprep.mubr.f32.mxu1 %v815_v41  ;;  %v16503_v44 = vand.u32 4294901760, %v12532_v3 }
 0x100   : > { %9021 = vmatprep.mubr.f32.mxu0 %v16502_v23  ;;  %v12593_v63 = vsub.f32 %v570_v21, %v12565_v38  ;;  %v16504_v0 = vand.u32 4294901760, %v12210_v47  ;;  %v864_v55 = vsub.f32 %v12535_v62, %v16505_v20  ;;  %v12603_v23 = vsub.f32 %v571_v1, %v12573_v40  ;;  %10226 = vmatpush3.bf16.msra.mxu1 %v10223_v5 }
 0x101   : > { %v854_v46 = vsub.f32 %v12532_v3, %v16503_v44  ;;  %v1107_v11 = vand.u32 4294901760, %v1106_v19  ;;  %10322 = vmatpush3.bf16.msra.mxu0 %v10319_v27  ;;  %v574_v44 = vld [vmem:[%s12099_s2 + $0xc0] sm:$0xff]  ;;  %v16506_v21 = vand.u32 4294901760, %v12212_v48  ;;  %v16508_v1 = vand.u32 4294901760, %v12460_v56 }
 0x102   : > { %v1111_v15 = vsub.f32 %v12210_v47, %v16504_v0  ;;  %v874_v47 = vsub.f32 %v12546_v59, %v16507_v9  ;;  %v12612_v0 = vand.u32 4294901760, %v573_v54  ;;  %10324 = vmatprep.subr.bf16.mxu0 %v10323_v36  ;;  %8782 = vmatmul.mubr.f32.gmra.mrb[12].mxu1 %v825_v60  ;;  %v845_v27 = vand.u32 4294901760, %v844_v37  ;;  %v576_v37 = vld [vmem:[%s12099_s2 + $0xd0] sm:$0xff] }
 0x103   : > { %v1118_v19 = vsub.f32 %v12212_v48, %v16506_v21  ;;  %v10227_v20 = vpack.c.bf16 %v1107_v11, %v1100_v52  ;;  %9022 = vmatmul.mubr.f32.gmra.mrb[12].mxu0 %v16508_v1  ;;  %v12617_v5 = vsub.f32 %v572_v51, %v12584_v16  ;;  %8784 = vmatprep.mubr.f32.mxu1 %v835_v6  ;;  %v16509_v21 = vand.u32 4294901760, %v12477_v14  ;;  %v575_v11 = vld [vmem:[%s12099_s2 + $0xc8] sm:$0xff] }
 0x104   : > { %v1112_v41 = vand.u32 4294901760, %v1111_v15  ;;  %v855_v9 = vand.u32 4294901760, %v854_v46  ;;  %v12622_v52 = vand.u32 4294901760, %v574_v44  ;;  %v865_v60 = vand.u32 4294901760, %v864_v55 }
 0x105   : > { %v1119_v48 = vand.u32 4294901760, %v1118_v19  ;;  %9024 = vmatprep.mubr.f32.mxu0 %v16509_v21  ;;  %10228 = vmatprep.subr.bf16.mxu1 %v10227_v20  ;;  %v875_v16 = vand.u32 4294901760, %v874_v47  ;;  %v16510_v6 = vand.u32 4294901760, %v12571_v30  ;;  %v12631_v21 = vsub.f32 %v573_v54, %v12612_v0 }
 0x106   : > { %v1113_v38 = vsub.f32 %v1111_v15, %v1112_v41  ;;  %10326 = vmatpush3.bf16.msra.mxu0 %v10323_v36  ;;  %10230 = vmatpush3.bf16.msra.mxu1 %v10227_v20  ;;  %v16512_v55 = vand.u32 4294901760, %v12520_v8  ;;  %v16026_v36 = vand.u32 4294901760, %v12617_v5  ;;  %v12636_v56 = vand.u32 4294901760, %v575_v11 }
 0x107   : > { %v1120_v51 = vsub.f32 %v1118_v19, %v1119_v48  ;;  %v10327_v1 = vpack.c.bf16 %v1119_v48, %v1112_v41  ;;  %v884_v46 = vsub.f32 %v12571_v30, %v16510_v6  ;;  %16511 = vst [vmem:[#allocation50_spill] sm:$0xff] %v12631_v21  ;;  %8785 = vmatmul.mubr.f32.gmra.mrb[14].mxu1 %v845_v27  ;;  %v16513_v54 = vand.u32 4294901760, %v12532_v3  ;;  %v577_v6 = vld [vmem:[%s12099_s2 + $0xd8] sm:$0xff] }
 0x108   : > { %v1114_v40 = vand.u32 4294901760, %v1113_v38  ;;  %9025 = vmatmul.mubr.f32.gmra.mrb[14].mxu0 %v16512_v55  ;;  %v12640_v47 = vpack.c.bf16 %v12244_v58, %v12239_v57  ;;  %8787 = vmatprep.mubr.f32.mxu1 %v855_v9  ;;  %v16514_v20 = vand.u32 4294901760, %v12593_v63  ;;  %v12648_v27 = vsub.f32 %v574_v44, %v12622_v52  ;;  %v578_v9 = vld [vmem:[%s12099_s2 + $0xe0] sm:$0xff] }
 0x109   : > { %v1121_v41 = vand.u32 4294901760, %v1120_v51  ;;  %9027 = vmatprep.mubr.f32.mxu0 %v16513_v54  ;;  %v12650_v48 = vand.u32 4294901760, %v576_v37  ;;  %v12655_v51 = vpack.c.bf16 %v12290_v34, %v12285_v32  ;;  %v16516_v57 = vand.u32 4294901760, %v12603_v23  ;;  %10328 = vmatprep.subr.bf16.mxu0 %v10327_v1 }
 0x10a   : > { %v894_v38 = vsub.f32 %v12593_v63, %v16514_v20  ;;  %16515 = vst [vmem:[#allocation51_spill] sm:$0xff] %v12648_v27  ;;  %v12663_v54 = vpack.c.bf16 %v12346_v31, %v12333_v35  ;;  %v12667_v44 = vpack.c.bf16 %v12432_v49, %v12416_v2  ;;  %v923_v20 = vand.u32 4294901760, %v12631_v21  ;;  %10330 = vmatpush3.bf16.msra.mxu0 %v10327_v1  ;;  %v580_v1 = vld [vmem:[%s12099_s2 + $0xf0] sm:$0xff] }
 0x10b   : > { %v904_v58 = vsub.f32 %v12603_v23, %v16516_v57  ;;  %v10231_v55 = vpack.c.bf16 %v1121_v41, %v1114_v40  ;;  %v12672_v32 = vpack.c.bf16 %v12490_v61, %v12485_v22  ;;  %v12676_v34 = vpack.c.bf16 %v12552_v28, %v12543_v4  ;;  %8788 = vmatmul.mubr.f32.gmra.mrb[16].mxu1 %v865_v60  ;;  %v579_v60 = vld [vmem:[%s12099_s2 + $0xe8] sm:$0xff] }
 0x10c   : > { %v12678_v40 = vpack.c.bf16 %v1118_v19, %v1111_v15  ;;  %v16517_v35 = vand.u32 4294901760, %v12535_v62  ;;  %v885_v49 = vand.u32 4294901760, %v884_v46  ;;  %v914_v2 = vsub.f32 %v12617_v5, %v16026_v36  ;;  %8790 = vmatprep.mubr.f32.mxu1 %v875_v16  ;;  %10332 = vmatprep.subr.bf16.mxu0 %v12123_v10 }
 0x10d   : > { %v12686_v31 = vsub.f32 %v575_v11, %v12636_v56  ;;  %v12688_v22 = vand.u32 4294901760, %v577_v6  ;;  %v16519_v28 = vand.u32 4294901760, %v12546_v59  ;;  %v895_v4 = vand.u32 4294901760, %v894_v38  ;;  %10232 = vmatprep.subr.bf16.mxu1 %v10231_v55 }
 0x10e   : > { %9028 = vmatmul.mubr.f32.gmra.mrb[16].mxu0 %v16517_v35  ;;  %v933_v61 = vand.u32 4294901760, %v12648_v27  ;;  %v12694_v15 = vsub.f32 %v576_v37, %v12650_v48  ;;  %v12696_v19 = vand.u32 4294901760, %v578_v9  ;;  %v12702_v11 = vpack.c.bf16 %v12202_v42, %v12190_v39  ;;  %10234 = vmatpush3.bf16.msra.mxu1 %v10231_v55 }
 0x10f   : > { %16518 = vst [vmem:[#allocation52_spill] sm:$0xff] %v12686_v31  ;;  %9030 = vmatprep.mubr.f32.mxu0 %v16519_v28  ;;  %v905_v16 = vand.u32 4294901760, %v904_v58  ;;  %v924_v46 = vsub.f32 %v12631_v21, %v923_v20  ;;  %8791 = vmatmul.mubr.f32.gmra.mrb[18].mxu1 %v885_v49  ;;  %v16521_v37 = vand.u32 4294901760, %v12571_v30  ;;  %v915_v41 = vand.u32 4294901760, %v914_v2  ;;  %v581_v2 = vld [vmem:[%s12099_s2 + $0xf8] sm:$0xff]  ;;  %s15770_s2 = scalar_lea.vmem [#allocation11], %s12087_s17 }
 0x110   : > { %16520 = vst [vmem:[#allocation53_spill] sm:$0xff] %v12694_v15  ;;  %v943_v38 = vand.u32 4294901760, %v12686_v31  ;;  %v12710_v57 = vsub.f32 %v577_v6, %v12688_v22  ;;  %v12712_v35 = vand.u32 4294901760, %v579_v60  ;;  %8793 = vmatprep.mubr.f32.mxu1 %v895_v4  ;;  %v16522_v39 = vand.u32 4294901760, %v12593_v63  ;;  %10236 = vmatprep.subr.bf16.mxu1 %v12702_v11  ;;  %s7866_s17 = sshll.u32 %s11859_s25, 12  ;;  %s7708_s27 = sshll.u32 %s15770_s2, 4  ;;  %s15896_s27 = int_to_ptr.vmem [resolvable:$true] %s7708_s27 }
 0x111   : > { %v934_v42 = vsub.f32 %v12648_v27, %v933_v61  ;;  %v953_v58 = vand.u32 4294901760, %v12694_v15  ;;  %v12719_v55 = vsub.f32 %v578_v9, %v12696_v19  ;;  %v12721_v49 = vand.u32 4294901760, %v580_v1  ;;  %s15894_s13 = scalar_lea.hbm %s17038_s7, %s7866_s17  ;;  %s7695_s25 = scalar_lea.sflag [#allocation4], %s12084_s11 }
 0x112   : > { %9031 = vmatmul.mubr.f32.gmra.mrb[18].mxu0 %v16521_v37  ;;  %v925_v6 = vand.u32 4294901760, %v924_v46  ;;  %v16523_v28 = vand.u32 4294901760, %v12603_v23  ;;  %v944_v4 = vsub.f32 %v12686_v31, %v943_v38  ;;  %v963_v37 = vand.u32 4294901760, %v12710_v57  ;;  %s11682_s26 = scalar_lea.vmem %s15896_s27, 4096  ;;  %p11689_p8 = scmp.lt.s32.totalorder %s15896_s27, %s11687_s30 }
 0x113   : > { %9033 = vmatprep.mubr.f32.mxu0 %v16522_v39  ;;  %8794 = vmatmul.mubr.f32.gmra.mrb[20].mxu1 %v905_v16  ;;  %v12730_v39 = vsub.f32 %v579_v60, %v12712_v35  ;;  %v12732_v36 = vand.u32 4294901760, %v581_v2  ;;  %v16524_v9 = vand.u32 4294901760, %v12617_v5  ;;  %v935_v27 = vand.u32 4294901760, %v934_v42  ;;  %p11683_p2 = scmp.ne.s32.totalorder %s15896_s27, %s11682_s26  ;;  %p11690_p6 = scmp.lt.s32.totalorder %s11688_s8, %s11682_s26 }
 0x114   : > { %8796 = vmatprep.mubr.f32.mxu1 %v915_v41  ;;  %v954_v46 = vsub.f32 %v12694_v15, %v953_v58  ;;  %v973_v16 = vand.u32 4294901760, %v12719_v55  ;;  %v945_v31 = vand.u32 4294901760, %v944_v4  ;;  %v964_v60 = vsub.f32 %v12710_v57, %v963_v37 }
 0x115   : > { %v983_v21 = vand.u32 4294901760, %v12730_v39  ;;  %v12744_v41 = vsub.f32 %v581_v2, %v12732_v36  ;;  %p11684_p4 = pnand %p11683_p2, %p11992_p5  ;;  %p11691_p10 = por %p11690_p6, %p11689_p8 }
 0x116   : > { %9034 = vmatmul.mubr.f32.gmra.mrb[20].mxu0 %v16523_v28  ;;  %v12739_v28 = vsub.f32 %v580_v1, %v12721_v49  ;;  %v955_v42 = vand.u32 4294901760, %v954_v46  ;;  %v965_v1 = vand.u32 4294901760, %v964_v60  ;;  %v16542_v60 = vld [vmem:[#allocation23_spill] sm:$0xff] }
 0x117   : > { %9036 = vmatprep.mubr.f32.mxu0 %v16524_v9  ;;  %8797 = vmatmul.mubr.f32.gmra.mrb[22].mxu1 %v925_v6  ;;  %v974_v9 = vsub.f32 %v12719_v55, %v973_v16  ;;  %v1003_v6 = vand.u32 4294901760, %v12744_v41  ;;  %p11685_p0 = pneg %p11684_p4 }
 0x118   : > { %8799 = vmatprep.mubr.f32.mxu1 %v935_v27  ;;  %v993_v15 = vand.u32 4294901760, %v12739_v28 }
 0x119   : > { %v975_v4 = vand.u32 4294901760, %v974_v9  ;;  %v16544_v9 = vld [vmem:[#allocation26_spill] sm:$0xff]  ;;  %p11692_p3 = pnand %p11691_p10, %p11685_p0 }
 0x11a   : > { %9037 = vmatmul.mubr.f32.gmra.mrb[22].mxu0 %v923_v20  ;;  %v984_v20 = vsub.f32 %v12730_v39, %v983_v21  ;;  %v994_v2 = vsub.f32 %v12739_v28, %v993_v15 }
 0x11b   : > { %9039 = vmatprep.mubr.f32.mxu0 %v933_v61  ;;  %8800 = vmatmul.mubr.f32.gmra.mrb[24].mxu1 %v945_v31  ;;  %v1004_v61 = vsub.f32 %v12744_v41, %v1003_v6 }
 0x11c   : > { %8802 = vmatprep.mubr.f32.mxu1 %v955_v42  ;;  %v985_v27 = vand.u32 4294901760, %v984_v20  ;;  %v995_v46 = vand.u32 4294901760, %v994_v2  ;;  %v16543_v42 = vld [vmem:[#allocation25_spill] sm:$0xff]  ;;  %v16554_v2 = vld [vmem:[#allocation46_spill] sm:$0xff] }
 0x11d   : > { %v1005_v31 = vand.u32 4294901760, %v1004_v61  ;;  %v16546_v20 = vld [vmem:[#allocation33_spill] sm:$0xff] }
 0x11e   : > { %9040 = vmatmul.mubr.f32.gmra.mrb[24].mxu0 %v943_v38  ;;  %v16535_v38 = vld [vmem:[#allocation42_spill] sm:$0xff] }
 0x11f   : > { %9042 = vmatprep.mubr.f32.mxu0 %v953_v58  ;;  %8803 = vmatmul.mubr.f32.gmra.mrb[26].mxu1 %v965_v1  ;;  %v16536_v58 = vld [vmem:[#allocation45_spill] sm:$0xff]  ;;  %v16545_v1 = vld [vmem:[#allocation28_spill] sm:$0xff] }
 0x120   : > { %8805 = vmatprep.mubr.f32.mxu1 %v975_v4  ;;  %v16553_v4 = vld [vmem:[#allocation44_spill] sm:$0xff] }
 0x122   : > { %9043 = vmatmul.mubr.f32.gmra.mrb[26].mxu0 %v963_v37  ;;  %v16539_v37 = vld [vmem:[#allocation48_spill] sm:$0xff] }
 0x123   : > { %9045 = vmatprep.mubr.f32.mxu0 %v973_v16  ;;  %8806 = vmatmul.mubr.f32.gmra.mrb[28].mxu1 %v985_v27  ;;  %v16541_v16 = vld [vmem:[#allocation20_spill] sm:$0xff] }
 0x124   : > { %8808 = vmatprep.mubr.f32.mxu1 %v995_v46 }
 0x126   : > { %9046 = vmatmul.mubr.f32.gmra.mrb[28].mxu0 %v983_v21  ;;  %v16526_v21 = vld [vmem:[#allocation31_spill] sm:$0xff] }
 0x127   : > { %9048 = vmatprep.mubr.f32.mxu0 %v993_v15  ;;  %8809 = vmatmul.mubr.f32.gmra.mrb[30].mxu1 %v1005_v31  ;;  %v16529_v15 = vld [vmem:[#allocation34_spill] sm:$0xff]  ;;  %v521_v31 = vld [vmem:[%s12091_s19 + $0x18] sm:$0xff] }
 0x128   : > { %8843 = vmatprep.mubr.f32.mxu1 %v12142_v17 }
 0x12a   : > { %9049 = vmatmul.mubr.f32.gmra.mrb[30].mxu0 %v1003_v6  ;;  %v16552_v6 = vld [vmem:[#allocation43_spill] sm:$0xff] }
 0x12b   : > { %9083 = vmatprep.mubr.f32.mxu0 %v12142_v17  ;;  %8844 = vmatmul.mubr.f32.vlgmr.msra.gmra.mrb[0].mxu1 %v12181_v33 }
 0x12c   : > { %10238 = vmatpush3.bf16.msra.mxu1 %v12702_v11  ;;  %8846 = vmatprep.mubr.f32.mxu1 %v12204_v43  ;;  %v16533_v11 = vld [vmem:[#allocation40_spill] sm:$0xff] }
 0x12d   : > { %10240 = vmatprep.subr.bf16.mxu1 %v12640_v47 }
 0x12e   : > { %9084 = vmatmul.mubr.f32.vlgmr.msra.gmra.mrb[0].mxu0 %v12181_v33 }
 0x12f   : > { %9086 = vmatprep.mubr.f32.mxu0 %v12204_v43  ;;  %10334 = vmatpush3.bf16.msra.mxu0 %v12123_v10  ;;  %v16525_v10 = vld [vmem:[#allocation29_spill] sm:$0xff] }
 0x130   : > { %10336 = vmatprep.subr.bf16.mxu0 %v12131_v13  ;;  %8847 = vmatmul.mubr.f32.gmra.mrb[2].mxu1 %v12207_v45 }
 0x131   : > { %8849 = vmatprep.mubr.f32.mxu1 %v12227_v53  ;;  %10242 = vmatpush3.bf16.msra.mxu1 %v12640_v47  ;;  %v16527_v47 = vld [vmem:[#allocation21_spill] sm:$0xff] }
 0x132   : > { %9087 = vmatmul.mubr.f32.gmra.mrb[2].mxu0 %v12207_v45  ;;  %10244 = vmatprep.subr.bf16.mxu1 %v12655_v51 }
 0x133   : > { %9089 = vmatprep.mubr.f32.mxu0 %v12227_v53  ;;  %10338 = vmatpush3.bf16.msra.mxu0 %v12131_v13  ;;  %v16528_v13 = vld [vmem:[#allocation32_spill] sm:$0xff] }
 0x134   : > { %10340 = vmatprep.subr.bf16.mxu0 %v12150_v18  ;;  %8850 = vmatmul.mubr.f32.gmra.mrb[4].mxu1 %v16525_v10 }
 0x135   : > { %8852 = vmatprep.mubr.f32.mxu1 %v16526_v21  ;;  %10246 = vmatpush3.bf16.msra.mxu1 %v12655_v51  ;;  %v16530_v51 = vld [vmem:[#allocation22_spill] sm:$0xff] }
 0x136   : > { %9090 = vmatmul.mubr.f32.gmra.mrb[4].mxu0 %v16525_v10  ;;  %10248 = vmatprep.subr.bf16.mxu1 %v12663_v54 }
 0x137   : > { %9092 = vmatprep.mubr.f32.mxu0 %v16526_v21  ;;  %10342 = vmatpush3.bf16.msra.mxu0 %v12150_v18  ;;  %v16531_v18 = vld [vmem:[#allocation37_spill] sm:$0xff] }
 0x138   : > { %10344 = vmatprep.subr.bf16.mxu0 %v16527_v47  ;;  %8853 = vmatmul.mubr.f32.gmra.mrb[6].mxu1 %v16528_v13 }
 0x139   : > { %8855 = vmatprep.mubr.f32.mxu1 %v16529_v15  ;;  %10250 = vmatpush3.bf16.msra.mxu1 %v12663_v54  ;;  %v16532_v54 = vld [vmem:[#allocation24_spill] sm:$0xff] }
 0x13a   : > { %9093 = vmatmul.mubr.f32.gmra.mrb[6].mxu0 %v16528_v13  ;;  %10252 = vmatprep.subr.bf16.mxu1 %v12667_v44 }
 0x13b   : > { %9095 = vmatprep.mubr.f32.mxu0 %v16529_v15  ;;  %10346 = vmatpush3.bf16.msra.mxu0 %v16527_v47 }
 0x13c   : > { %10348 = vmatprep.subr.bf16.mxu0 %v16530_v51  ;;  %8856 = vmatmul.mubr.f32.gmra.mrb[8].mxu1 %v16531_v18 }
 0x13d   : > { %8858 = vmatprep.mubr.f32.mxu1 %v12384_v24  ;;  %10254 = vmatpush3.bf16.msra.mxu1 %v12667_v44  ;;  %v16534_v44 = vld [vmem:[#allocation27_spill] sm:$0xff] }
 0x13e   : > { %9096 = vmatmul.mubr.f32.gmra.mrb[8].mxu0 %v16531_v18  ;;  %10256 = vmatprep.subr.bf16.mxu1 %v12672_v32 }
 0x13f   : > { %9098 = vmatprep.mubr.f32.mxu0 %v12384_v24  ;;  %10350 = vmatpush3.bf16.msra.mxu0 %v16530_v51 }
 0x140   : > { %10352 = vmatprep.subr.bf16.mxu0 %v16532_v54  ;;  %8859 = vmatmul.mubr.f32.gmra.mrb[10].mxu1 %v12391_v25 }
 0x141   : > { %8861 = vmatprep.mubr.f32.mxu1 %v16533_v11  ;;  %10258 = vmatpush3.bf16.msra.mxu1 %v12672_v32  ;;  %v16537_v32 = vld [vmem:[#allocation30_spill] sm:$0xff] }
 0x142   : > { %9099 = vmatmul.mubr.f32.gmra.mrb[10].mxu0 %v12391_v25  ;;  %10260 = vmatprep.subr.bf16.mxu1 %v12676_v34 }
 0x143   : > { %9101 = vmatprep.mubr.f32.mxu0 %v16533_v11  ;;  %10354 = vmatpush3.bf16.msra.mxu0 %v16532_v54 }
 0x144   : > { %10356 = vmatprep.subr.bf16.mxu0 %v16534_v44  ;;  %8862 = vmatmul.mubr.f32.gmra.mrb[12].mxu1 %v16535_v38 }
 0x145   : > { %8864 = vmatprep.mubr.f32.mxu1 %v16536_v58  ;;  %10262 = vmatpush3.bf16.msra.mxu1 %v12676_v34  ;;  %v16538_v34 = vld [vmem:[#allocation47_spill] sm:$0xff] }
 0x146   : > { %9102 = vmatmul.mubr.f32.gmra.mrb[12].mxu0 %v16535_v38  ;;  %10264 = vmatprep.subr.bf16.mxu1 %v12678_v40 }
 0x147   : > { %9104 = vmatprep.mubr.f32.mxu0 %v16536_v58  ;;  %10358 = vmatpush3.bf16.msra.mxu0 %v16534_v44 }
 0x148   : > { %10360 = vmatprep.subr.bf16.mxu0 %v16537_v32  ;;  %8865 = vmatmul.mubr.f32.gmra.mrb[14].mxu1 %v12479_v12 }
 0x149   : > { %8867 = vmatprep.mubr.f32.mxu1 %v12498_v7  ;;  %10266 = vmatpush3.bf16.msra.mxu1 %v12678_v40  ;;  %v16540_v40 = vld [vmem:[#allocation49_spill] sm:$0xff] }
 0x14a   : > { %9105 = vmatmul.mubr.f32.gmra.mrb[14].mxu0 %v12479_v12 }
 0x14b   : > { %9107 = vmatprep.mubr.f32.mxu0 %v12498_v7  ;;  %10362 = vmatpush3.bf16.msra.mxu0 %v16537_v32 }
 0x14c   : > { %8868 = vmatmul.mubr.f32.gmra.mrb[16].mxu1 %v12500_v29 }
 0x14d   : > { %8870 = vmatprep.mubr.f32.mxu1 %v12513_v50 }
 0x14e   : > { %9108 = vmatmul.mubr.f32.gmra.mrb[16].mxu0 %v12500_v29 }
 0x14f   : > { %9110 = vmatprep.mubr.f32.mxu0 %v12513_v50 }
 0x150   : > { %8871 = vmatmul.mubr.f32.gmra.mrb[18].mxu1 %v12537_v26 }
 0x151   : > { %8873 = vmatprep.mubr.f32.mxu1 %v16538_v34 }
 0x152   : > { %9111 = vmatmul.mubr.f32.gmra.mrb[18].mxu0 %v12537_v26 }
 0x153   : > { %9113 = vmatprep.mubr.f32.mxu0 %v16538_v34 }
 0x154   : > { %8874 = vmatmul.mubr.f32.gmra.mrb[20].mxu1 %v16539_v37 }
 0x155   : > { %8876 = vmatprep.mubr.f32.mxu1 %v16540_v40 }
 0x156   : > { %9114 = vmatmul.mubr.f32.gmra.mrb[20].mxu0 %v16539_v37 }
 0x157   : > { %9116 = vmatprep.mubr.f32.mxu0 %v16540_v40 }
 0x158   : > { %8877 = vmatmul.mubr.f32.gmra.mrb[22].mxu1 %v12612_v0 }
 0x159   : > { %8879 = vmatprep.mubr.f32.mxu1 %v12622_v52 }
 0x15a   : > { %9117 = vmatmul.mubr.f32.gmra.mrb[22].mxu0 %v12612_v0 }
 0x15b   : > { %9119 = vmatprep.mubr.f32.mxu0 %v12622_v52 }
 0x15c   : > { %8880 = vmatmul.mubr.f32.gmra.mrb[24].mxu1 %v12636_v56 }
 0x15d   : > { %8882 = vmatprep.mubr.f32.mxu1 %v12650_v48 }
 0x15e   : > { %9120 = vmatmul.mubr.f32.gmra.mrb[24].mxu0 %v12636_v56 }
 0x15f   : > { %9122 = vmatprep.mubr.f32.mxu0 %v12650_v48 }
 0x160   : > { %8883 = vmatmul.mubr.f32.gmra.mrb[26].mxu1 %v12688_v22 }
 0x161   : > { %8885 = vmatprep.mubr.f32.mxu1 %v12696_v19 }
 0x162   : > { %9123 = vmatmul.mubr.f32.gmra.mrb[26].mxu0 %v12688_v22 }
 0x163   : > { %9125 = vmatprep.mubr.f32.mxu0 %v12696_v19 }
 0x164   : > { %8886 = vmatmul.mubr.f32.gmra.mrb[28].mxu1 %v12712_v35 }
 0x165   : > { %8888 = vmatprep.mubr.f32.mxu1 %v12721_v49 }
 0x166   : > { %9126 = vmatmul.mubr.f32.gmra.mrb[28].mxu0 %v12712_v35 }
 0x167   : > { %9128 = vmatprep.mubr.f32.mxu0 %v12721_v49 }
 0x168   : > { %8889 = vmatmul.mubr.f32.gmra.mrb[30].mxu1 %v12732_v36 }
 0x169   : > { %8923 = vmatprep.mubr.f32.mxu1 %v16541_v16 }
 0x16a   : > { %9129 = vmatmul.mubr.f32.gmra.mrb[30].mxu0 %v12732_v36 }
 0x16b   : > { %9163 = vmatprep.mubr.f32.mxu0 %v12142_v17  ;;  %v16547_v17 = vld [vmem:[#allocation35_spill] sm:$0xff] }
 0x16c   : > { %8924 = vmatmul.mubr.f32.vlgmr.msra.gmra.mrb[0].mxu1 %v16542_v60 }
 0x16d   : > { %8926 = vmatprep.mubr.f32.mxu1 %v16543_v42 }
 0x16e   : > { %9164 = vmatmul.mubr.f32.vlgmr.msra.gmra.mrb[0].mxu0 %v12181_v33  ;;  %v16548_v33 = vld [vmem:[#allocation36_spill] sm:$0xff] }
 0x16f   : > { %9166 = vmatprep.mubr.f32.mxu0 %v12204_v43  ;;  %v16549_v43 = vld [vmem:[#allocation38_spill] sm:$0xff] }
 0x170   : > { %8927 = vmatmul.mubr.f32.gmra.mrb[2].mxu1 %v16544_v9 }
 0x171   : > { %8929 = vmatprep.mubr.f32.mxu1 %v16545_v1  ;;  %v524_v1 = vld [vmem:[%s12091_s19 + $0x30] sm:$0xff] }
 0x172   : > { %9167 = vmatmul.mubr.f32.gmra.mrb[2].mxu0 %v12207_v45  ;;  %v16550_v45 = vld [vmem:[#allocation39_spill] sm:$0xff] }
 0x173   : > { %9169 = vmatprep.mubr.f32.mxu0 %v12227_v53  ;;  %v16551_v53 = vld [vmem:[#allocation41_spill] sm:$0xff] }
 0x174   : > { %8930 = vmatmul.mubr.f32.gmra.mrb[4].mxu1 %v16546_v20 }
 0x175   : > { %8932 = vmatprep.mubr.f32.mxu1 %v16547_v17 }
 0x176   : > { %9170 = vmatmul.mubr.f32.gmra.mrb[4].mxu0 %v16525_v10 }
 0x177   : > { %9172 = vmatprep.mubr.f32.mxu0 %v16526_v21 }
 0x178   : > { %8933 = vmatmul.mubr.f32.gmra.mrb[6].mxu1 %v16548_v33 }
 0x179   : > { %8935 = vmatprep.mubr.f32.mxu1 %v16549_v43 }
 0x17a   : > { %9173 = vmatmul.mubr.f32.gmra.mrb[6].mxu0 %v16528_v13 }
 0x17b   : > { %9175 = vmatprep.mubr.f32.mxu0 %v16529_v15 }
 0x17c   : > { %8936 = vmatmul.mubr.f32.gmra.mrb[8].mxu1 %v16550_v45 }
 0x17d   : > { %8938 = vmatprep.mubr.f32.mxu1 %v16551_v53 }
 0x17e   : > { %9176 = vmatmul.mubr.f32.gmra.mrb[8].mxu0 %v16531_v18  ;;  %v522_v18 = vld [vmem:[%s12091_s19 + $0x20] sm:$0xff] }
 0x17f   : > { %9178 = vmatprep.mubr.f32.mxu0 %v12384_v24  ;;  %v16557_v24 = vld [vmem:[#allocation52_spill] sm:$0xff] }
 0x180   : > { %8939 = vmatmul.mubr.f32.gmra.mrb[10].mxu1 %v16552_v6  ;;  %v525_v6 = vld [vmem:[%s12091_s19 + $0x38] sm:$0xff] }
 0x181   : > { %8941 = vmatprep.mubr.f32.mxu1 %v16553_v4 }
 0x182   : > { %9179 = vmatmul.mubr.f32.gmra.mrb[10].mxu0 %v12391_v25  ;;  %v16555_v25 = vld [vmem:[#allocation50_spill] sm:$0xff] }
 0x183   : > { %9181 = vmatprep.mubr.f32.mxu0 %v16533_v11 }
 0x184   : > { %8942 = vmatmul.mubr.f32.gmra.mrb[12].mxu1 %v16554_v2 }
 0x185   : > { %8944 = vmatprep.mubr.f32.mxu1 %v12477_v14  ;;  %v12913_v14 = vld [vmem:[%s15946_s3] ss:$0 sm:$0xff] }
 0x186   : > { %9182 = vmatmul.mubr.f32.gmra.mrb[12].mxu0 %v16535_v38 }
 0x187   : > { %9184 = vmatprep.mubr.f32.mxu0 %v16536_v58 }
 0x188   : > { %8945 = vmatmul.mubr.f32.gmra.mrb[14].mxu1 %v12520_v8  ;;  %v16556_v8 = vld [vmem:[#allocation51_spill] sm:$0xff] }
 0x189   : > { %8947 = vmatprep.mubr.f32.mxu1 %v12532_v3 }
 0x18a   : > { %9185 = vmatmul.mubr.f32.gmra.mrb[14].mxu0 %v12479_v12  ;;  %v16558_v12 = vld [vmem:[#allocation53_spill] sm:$0xff] }
 0x18b   : > { %9187 = vmatprep.mubr.f32.mxu0 %v12498_v7 }
 0x18c   : > { %8948 = vmatmul.mubr.f32.gmra.mrb[16].mxu1 %v12535_v62 }
 0x18d   : > { %8950 = vmatprep.mubr.f32.mxu1 %v12546_v59 }
 0x18e   : > { %9188 = vmatmul.mubr.f32.gmra.mrb[16].mxu0 %v12500_v29 }
 0x18f   : > { %9190 = vmatprep.mubr.f32.mxu0 %v12513_v50 }
 0x190   : > { %8951 = vmatmul.mubr.f32.gmra.mrb[18].mxu1 %v12571_v30 }
 0x191   : > { %8953 = vmatprep.mubr.f32.mxu1 %v12593_v63  ;;  %v518_v63 = vld [vmem:[%s12091_s19] sm:$0xff] }
 0x192   : > { %9191 = vmatmul.mubr.f32.gmra.mrb[18].mxu0 %v12537_v26 }
 0x193   : > { %9193 = vmatprep.mubr.f32.mxu0 %v16538_v34  ;;  %v523_v34 = vld [vmem:[%s12091_s19 + $0x28] sm:$0xff] }
 0x194   : > { %8954 = vmatmul.mubr.f32.gmra.mrb[20].mxu1 %v12603_v23 }
 0x195   : > { %8956 = vmatprep.mubr.f32.mxu1 %v12617_v5 }
 0x196   : > { %9194 = vmatmul.mubr.f32.gmra.mrb[20].mxu0 %v16539_v37 }
 0x197   : > { %9196 = vmatprep.mubr.f32.mxu0 %v16540_v40 }
 0x198   : > { %8957 = vmatmul.mubr.f32.gmra.mrb[22].mxu1 %v16555_v25 }
 0x199   : > { %8959 = vmatprep.mubr.f32.mxu1 %v16556_v8 }
 0x19a   : > { %9197 = vmatmul.mubr.f32.gmra.mrb[22].mxu0 %v12612_v0 }
 0x19b   : > { %9199 = vmatprep.mubr.f32.mxu0 %v12622_v52  ;;  %v519_v52 = vld [vmem:[%s12091_s19 + $0x8] sm:$0xff] }
 0x19c   : > { %8960 = vmatmul.mubr.f32.gmra.mrb[24].mxu1 %v16557_v24 }
 0x19d   : > { %8962 = vmatprep.mubr.f32.mxu1 %v16558_v12 }
 0x19e   : > { %9200 = vmatmul.mubr.f32.gmra.mrb[24].mxu0 %v12636_v56  ;;  %v582_v56 = vlaneseq }
 0x19f   : > { %9202 = vmatprep.mubr.f32.mxu0 %v12650_v48 }
 0x1a0   : > { %8963 = vmatmul.mubr.f32.gmra.mrb[26].mxu1 %v12710_v57  ;;  %v583_v7 = vand.u32 127, %v582_v56  ;;  %v526_v56 = vld [vmem:[%s12091_s19 + $0x40] sm:$0xff] }
 0x1a1   : > { %8965 = vmatprep.mubr.f32.mxu1 %v12719_v55 }
 0x1a2   : > { %9203 = vmatmul.mubr.f32.gmra.mrb[26].mxu0 %v12688_v22  ;;  %vm584_vm0 = vcmp.lt.s32.totalorder %v583_v7, 32 }
 0x1a3   : > { %9205 = vmatprep.mubr.f32.mxu0 %v12696_v19  ;;  %v11769_v19 = vmov 0.0  }
 0x1a4   : > { %8966 = vmatmul.mubr.f32.gmra.mrb[28].mxu1 %v12730_v39  ;;  %v12920_v57 = vsel %vm584_vm0, 1.0, %v11769_v19  ;;  %v520_v39 = vld [vmem:[%s12091_s19 + $0x10] sm:$0xff] }
 0x1a5   : > { %8968 = vmatprep.mubr.f32.mxu1 %v12739_v28  ;;  %16559 = vst [vmem:[#allocation29_spill] sm:$0xff] %v12920_v57 }
 0x1a6   : > { %9206 = vmatmul.mubr.f32.gmra.mrb[28].mxu0 %v12712_v35 }
 0x1a7   : > { %9208 = vmatprep.mubr.f32.mxu0 %v12721_v49 }
 0x1a8   : > { %8969 = vmatmul.mubr.f32.gmra.mrb[30].mxu1 %v12744_v41 }
 0x1aa   : > { %9209 = vmatmul.mubr.f32.gmra.mrb[30].mxu0 %v12732_v36 }
 0x23f   : > { %v8925_v29 = vpop.f32.mrb[0].mxu1 }
 0x240   : > { %v10747_v3 = vadd.f32 %v8925_v29, %v12913_v14  ;;  %v1448_v62 = vpop.f32.mrb[1].mxu1 }
 0x241   : > { %v9165_v50 = vpop.f32.mrb[0].mxu0  ;;  %v10749_v59 = vadd.f32 %v12913_v14, %v1448_v62 }
 0x242   : > { %v2394_v26 = vpop.f32.mrb[1].mxu0  ;;  %v10748_v30 = vadd.f32 %v10747_v3, %v9165_v50 }
 0x243   : > { %v10750_v23 = vadd.f32 %v10749_v59, %v2394_v26  ;;  %v8928_v0 = vpop.f32.mrb[2].mxu1  ;;  %v527_v59 = vld [vmem:[%s12091_s19 + $0x48] sm:$0xff] }
 0x244   : > { %v10751_v36 = vadd.f32 %v8928_v0, %v12913_v14  ;;  %v1462_v48 = vpop.f32.mrb[3].mxu1  ;;  %v12926_v28 = vadd.f32 %v10748_v30, %v519_v52 }
 0x245   : > { %v9168_v5 = vpop.f32.mrb[2].mxu0  ;;  %v10753_v35 = vadd.f32 %v12913_v14, %v1462_v48  ;;  %v12923_v55 = vadd.f32 %v10750_v23, %v518_v63 }
 0x246   : > { %v2406_v22 = vpop.f32.mrb[3].mxu0  ;;  %v10752_v49 = vadd.f32 %v10751_v36, %v9168_v5  ;;  %v2617_v32 = vmul.f32 %v12920_v57, %v12926_v28  ;;  %v528_v36 = vld [vmem:[%s12091_s19 + $0x50] sm:$0xff] }
 0x247   : > { %v10754_v41 = vadd.f32 %v10753_v35, %v2406_v22  ;;  %v8931_v27 = vpop.f32.mrb[4].mxu1  ;;  %v2616_v46 = vmul.f32 %v12920_v57, %v12923_v55 }
 0x248   : > { %v10755_v10 = vadd.f32 %v8931_v27, %v12913_v14  ;;  %v1476_v21 = vpop.f32.mrb[5].mxu1  ;;  %v12936_v54 = vadd.f32 %v10752_v49, %v521_v31 }
 0x249   : > { %v9171_v61 = vpop.f32.mrb[4].mxu0  ;;  %v10757_v13 = vadd.f32 %v12913_v14, %v1476_v21  ;;  %2648 = vadd.xlane.f32.xlu0 %v2616_v46  ;;  %v12933_v15 = vadd.f32 %v10754_v41, %v520_v39  ;;  %v529_v41 = vld [vmem:[%s12091_s19 + $0x58] sm:$0xff] }
 0x24a   : > { %v2418_v47 = vpop.f32.mrb[5].mxu0  ;;  %v10756_v51 = vadd.f32 %v10755_v10, %v9171_v61  ;;  %v2619_v45 = vmul.f32 %v12920_v57, %v12936_v54 }
 0x24b   : > { %v10758_v11 = vadd.f32 %v10757_v13, %v2418_v47  ;;  %v8934_v44 = vpop.f32.mrb[6].mxu1  ;;  %v2618_v58 = vmul.f32 %v12920_v57, %v12933_v15  ;;  %v530_v47 = vld [vmem:[%s12091_s19 + $0x60] sm:$0xff] }
 0x24c   : > { %v10759_v37 = vadd.f32 %v8934_v44, %v12913_v14  ;;  %v1490_v40 = vpop.f32.mrb[7].mxu1  ;;  %v12948_v20 = vadd.f32 %v10756_v51, %v523_v34 }
 0x24d   : > { %v9174_v38 = vpop.f32.mrb[6].mxu0  ;;  %v12944_v60 = vadd.f32 %v10758_v11, %v522_v18  ;;  %v10761_v42 = vadd.f32 %v12913_v14, %v1490_v40  ;;  %2652 = vadd.xlane.f32.xlu1 %v2618_v58  ;;  %2650 = vadd.xlane.f32.xlu0 %v2617_v32  ;;  %v531_v58 = vld [vmem:[%s12091_s19 + $0x68] sm:$0xff] }
 0x24e   : > { %v2430_v16 = vpop.f32.mrb[7].mxu0  ;;  %v10760_v9 = vadd.f32 %v10759_v37, %v9174_v38  ;;  %v2621_v62 = vmul.f32 %v12920_v57, %v12948_v20 }
 0x24f   : > { %v10762_v17 = vadd.f32 %v10761_v42, %v2430_v16  ;;  %v8937_v33 = vpop.f32.mrb[8].mxu1  ;;  %v2620_v53 = vmul.f32 %v12920_v57, %v12944_v60 }
 0x250   : > { %v10763_v4 = vadd.f32 %v8937_v33, %v12913_v14  ;;  %v1504_v2 = vpop.f32.mrb[9].mxu1  ;;  %v12960_v7 = vadd.f32 %v10760_v9, %v525_v6  ;;  %v532_v9 = vld [vmem:[%s12091_s19 + $0x70] sm:$0xff]  ;;  %v533_v6 = vld [vmem:[%s12091_s19 + $0x78] sm:$0xff] }
 0x251   : > { %v9177_v43 = vpop.f32.mrb[8].mxu0  ;;  %v12956_v8 = vadd.f32 %v10762_v17, %v524_v1  ;;  %v10765_v24 = vadd.f32 %v12913_v14, %v1504_v2  ;;  %2654 = vadd.xlane.f32.xlu1 %v2619_v45  ;;  %2656 = vadd.xlane.f32.xlu0 %v2620_v53 }
 0x252   : > { %v2442_v25 = vpop.f32.mrb[9].mxu0  ;;  %v10764_v12 = vadd.f32 %v10763_v4, %v9177_v43  ;;  %v2623_v49 = vmul.f32 %v12920_v57, %v12960_v7 }
 0x253   : > { %v10766_v29 = vadd.f32 %v10765_v24, %v2442_v25  ;;  %v8940_v50 = vpop.f32.mrb[10].mxu1  ;;  %v2622_v26 = vmul.f32 %v12920_v57, %v12956_v8 }
 0x254   : > { %v10767_v30 = vadd.f32 %v8940_v50, %v12913_v14  ;;  %v1518_v63 = vpop.f32.mrb[11].mxu1  ;;  %v12972_v48 = vadd.f32 %v10764_v12, %v527_v59 }
 0x255   : > { %v9180_v3 = vpop.f32.mrb[10].mxu0  ;;  %v12968_v0 = vadd.f32 %v10766_v29, %v526_v56  ;;  %v10769_v5 = vadd.f32 %v12913_v14, %v1518_v63  ;;  %2658 = vadd.xlane.f32.xlu1 %v2621_v62  ;;  %2660 = vadd.xlane.f32.xlu0 %v2622_v26  ;;  %v534_v29 = vld [vmem:[%s12091_s19 + $0x80] sm:$0xff]  ;;  %v535_v63 = vld [vmem:[%s12091_s19 + $0x88] sm:$0xff] }
 0x256   : > { %v2454_v23 = vpop.f32.mrb[11].mxu0  ;;  %v10768_v52 = vadd.f32 %v10767_v30, %v9180_v3  ;;  %v2625_v44 = vmul.f32 %v12920_v57, %v12972_v48 }
 0x257   : > { %v10770_v22 = vadd.f32 %v10769_v5, %v2454_v23  ;;  %v8943_v19 = vpop.f32.mrb[12].mxu1  ;;  %v2624_v39 = vmul.f32 %v12920_v57, %v12968_v0 }
 0x258   : > { %v10771_v27 = vadd.f32 %v8943_v19, %v12913_v14  ;;  %v1532_v61 = vpop.f32.mrb[13].mxu1  ;;  %v12984_v13 = vadd.f32 %v10768_v52, %v529_v41 }
 0x259   : > { %v9183_v35 = vpop.f32.mrb[12].mxu0  ;;  %v12980_v31 = vadd.f32 %v10770_v22, %v528_v36  ;;  %v10773_v10 = vadd.f32 %v12913_v14, %v1532_v61  ;;  %2662 = vadd.xlane.f32.xlu1 %v2623_v49  ;;  %2664 = vadd.xlane.f32.xlu0 %v2624_v39 }
 0x25a   : > { %v2466_v46 = vpop.f32.mrb[13].mxu0  ;;  %v10772_v21 = vadd.f32 %v10771_v27, %v9183_v35  ;;  %v2627_v45 = vmul.f32 %v12920_v57, %v12984_v13  ;;  %v536_v35 = vld [vmem:[%s12091_s19 + $0x90] sm:$0xff] }
 0x25b   : > { %v10774_v51 = vadd.f32 %v10773_v10, %v2466_v46  ;;  %v8946_v18 = vpop.f32.mrb[14].mxu1  ;;  %v2626_v38 = vmul.f32 %v12920_v57, %v12980_v31  ;;  %v537_v10 = vld [vmem:[%s12091_s19 + $0x98] sm:$0xff] }
 0x25c   : > { %v10775_v32 = vadd.f32 %v8946_v18, %v12913_v14  ;;  %v1546_v34 = vpop.f32.mrb[15].mxu1  ;;  %v12996_v1 = vadd.f32 %v10772_v21, %v531_v58 }
 0x25d   : > { %v9186_v11 = vpop.f32.mrb[14].mxu0  ;;  %v12992_v40 = vadd.f32 %v10774_v51, %v530_v47  ;;  %v10777_v16 = vadd.f32 %v12913_v14, %v1546_v34  ;;  %2666 = vadd.xlane.f32.xlu1 %v2625_v44  ;;  %2668 = vadd.xlane.f32.xlu0 %v2626_v38  ;;  %v538_v38 = vld [vmem:[%s12091_s19 + $0xa0] sm:$0xff] }
 0x25e   : > { %v2478_v37 = vpop.f32.mrb[15].mxu0  ;;  %v10776_v42 = vadd.f32 %v10775_v32, %v9186_v11  ;;  %v2629_v59 = vmul.f32 %v12920_v57, %v12996_v1 }
 0x25f   : > { %v10778_v17 = vadd.f32 %v10777_v16, %v2478_v37  ;;  %v8949_v33 = vpop.f32.mrb[16].mxu1  ;;  %v2628_v53 = vmul.f32 %v12920_v57, %v12992_v40 }
 0x260   : > { %v10779_v4 = vadd.f32 %v8949_v33, %v12913_v14  ;;  %v1560_v2 = vpop.f32.mrb[17].mxu1  ;;  %v13008_v50 = vadd.f32 %v10776_v42, %v533_v6 }
 0x261   : > { %v9189_v43 = vpop.f32.mrb[16].mxu0  ;;  %v13004_v24 = vadd.f32 %v10778_v17, %v532_v9  ;;  %v10781_v12 = vadd.f32 %v12913_v14, %v1560_v2  ;;  %2670 = vadd.xlane.f32.xlu1 %v2627_v45  ;;  %2672 = vadd.xlane.f32.xlu0 %v2628_v53  ;;  %v539_v9 = vld [vmem:[%s12091_s19 + $0xa8] sm:$0xff] }
 0x262   : > { %v2490_v25 = vpop.f32.mrb[17].mxu0  ;;  %v10780_v56 = vadd.f32 %v10779_v4, %v9189_v43  ;;  %v2631_v61 = vmul.f32 %v12920_v57, %v13008_v50  ;;  %v540_v4 = vld [vmem:[%s12091_s19 + $0xb0] sm:$0xff] }
 0x263   : > { %v10782_v3 = vadd.f32 %v10781_v12, %v2490_v25  ;;  %v8952_v62 = vpop.f32.mrb[18].mxu1  ;;  %v2630_v30 = vmul.f32 %v12920_v57, %v13004_v24 }
 0x264   : > { %v10783_v23 = vadd.f32 %v8952_v62, %v12913_v14  ;;  %v1574_v5 = vpop.f32.mrb[19].mxu1  ;;  %v13020_v49 = vadd.f32 %v10780_v56, %v535_v63  ;;  %v541_v62 = vld [vmem:[%s12091_s19 + $0xb8] sm:$0xff] }
 0x265   : > { %v9192_v26 = vpop.f32.mrb[18].mxu0  ;;  %v13016_v36 = vadd.f32 %v10782_v3, %v534_v29  ;;  %v10785_v22 = vadd.f32 %v12913_v14, %v1574_v5  ;;  %2674 = vadd.xlane.f32.xlu1 %v2629_v59  ;;  %2676 = vadd.xlane.f32.xlu0 %v2630_v30 }
 0x266   : > { %v2502_v52 = vpop.f32.mrb[19].mxu0  ;;  %v10784_v19 = vadd.f32 %v10783_v23, %v9192_v26  ;;  %v2633_v16 = vmul.f32 %v12920_v57, %v13020_v49 }
 0x267   : > { %v10786_v39 = vadd.f32 %v10785_v22, %v2502_v52  ;;  %v8955_v41 = vpop.f32.mrb[20].mxu1  ;;  %v2632_v46 = vmul.f32 %v12920_v57, %v13016_v36  ;;  %v542_v52 = vld [vmem:[%s12091_s19 + $0xc0] sm:$0xff] }
 0x268   : > { %v10787_v21 = vadd.f32 %v8955_v41, %v12913_v14  ;;  %v1588_v47 = vpop.f32.mrb[21].mxu1  ;;  %v13032_v58 = vadd.f32 %v10784_v19, %v537_v10 }
 0x269   : > { %v9195_v27 = vpop.f32.mrb[20].mxu0  ;;  %v13028_v18 = vadd.f32 %v10786_v39, %v536_v35  ;;  %v10789_v11 = vadd.f32 %v12913_v14, %v1588_v47  ;;  %2678 = vadd.xlane.f32.xlu1 %v2631_v61  ;;  %2680 = vadd.xlane.f32.xlu0 %v2632_v46  ;;  %v543_v61 = vld [vmem:[%s12091_s19 + $0xc8] sm:$0xff] }
 0x26a   : > { %v2514_v51 = vpop.f32.mrb[21].mxu0  ;;  %v10788_v44 = vadd.f32 %v10787_v21, %v9195_v27  ;;  %v2635_v29 = vmul.f32 %v12920_v57, %v13032_v58 }
 0x26b   : > { %v10790_v32 = vadd.f32 %v10789_v11, %v2514_v51  ;;  %v8958_v34 = vpop.f32.mrb[22].mxu1  ;;  %v2634_v42 = vmul.f32 %v12920_v57, %v13028_v18 }
 0x26c   : > { %v10791_v17 = vadd.f32 %v8958_v34, %v12913_v14  ;;  %v1602_v33 = vpop.f32.mrb[23].mxu1  ;;  %v13044_v2 = vadd.f32 %v10788_v44, %v539_v9  ;;  %v544_v44 = vld [vmem:[%s12091_s19 + $0xd0] sm:$0xff]  ;;  %v545_v9 = vld [vmem:[%s12091_s19 + $0xd8] sm:$0xff] }
 0x26d   : > { %v9198_v37 = vpop.f32.mrb[22].mxu0  ;;  %v13040_v45 = vadd.f32 %v10790_v32, %v538_v38  ;;  %v10793_v53 = vadd.f32 %v12913_v14, %v1602_v33  ;;  %2682 = vadd.xlane.f32.xlu1 %v2633_v16  ;;  %2684 = vadd.xlane.f32.xlu0 %v2634_v42 }
 0x26e   : > { %v2526_v43 = vpop.f32.mrb[23].mxu0  ;;  %v10792_v6 = vadd.f32 %v10791_v17, %v9198_v37  ;;  %v2637_v41 = vmul.f32 %v12920_v57, %v13044_v2 }
 0x26f   : > { %v10794_v25 = vadd.f32 %v10793_v53, %v2526_v43  ;;  %v8961_v12 = vpop.f32.mrb[24].mxu1  ;;  %v2636_v3 = vmul.f32 %v12920_v57, %v13040_v45 }
 0x270   : > { %v10795_v26 = vadd.f32 %v8961_v12, %v12913_v14  ;;  %v1616_v59 = vpop.f32.mrb[25].mxu1  ;;  %v13056_v22 = vadd.f32 %v10792_v6, %v541_v62 }
 0x271   : > { %v9201_v56 = vpop.f32.mrb[24].mxu0  ;;  %v13052_v63 = vadd.f32 %v10794_v25, %v540_v4  ;;  %v10797_v23 = vadd.f32 %v12913_v14, %v1616_v59  ;;  %2686 = vadd.xlane.f32.xlu1 %v2635_v29  ;;  %2688 = vadd.xlane.f32.xlu0 %v2636_v3  ;;  %v546_v25 = vld [vmem:[%s12091_s19 + $0xe0] sm:$0xff]  ;;  %v547_v59 = vld [vmem:[%s12091_s19 + $0xe8] sm:$0xff] }
 0x272   : > { %v2538_v30 = vpop.f32.mrb[25].mxu0  ;;  %v10796_v5 = vadd.f32 %v10795_v26, %v9201_v56  ;;  %v2639_v16 = vmul.f32 %v12920_v57, %v13056_v22 }
 0x273   : > { %v10798_v19 = vadd.f32 %v10797_v23, %v2538_v30  ;;  %v8964_v35 = vpop.f32.mrb[26].mxu1  ;;  %v2638_v27 = vmul.f32 %v12920_v57, %v13052_v63 }
 0x274   : > { %v10799_v46 = vadd.f32 %v8964_v35, %v12913_v14  ;;  %v1630_v10 = vpop.f32.mrb[27].mxu1  ;;  %v13068_v38 = vadd.f32 %v10796_v5, %v543_v61 }
 0x275   : > { %v9204_v39 = vpop.f32.mrb[26].mxu0  ;;  %v13064_v47 = vadd.f32 %v10798_v19, %v542_v52  ;;  %v10801_v51 = vadd.f32 %v12913_v14, %v1630_v10  ;;  %2690 = vadd.xlane.f32.xlu1 %v2637_v41  ;;  %2692 = vadd.xlane.f32.xlu0 %v2638_v27  ;;  %v549_v10 = vld [vmem:[%s12091_s19 + $0xf8] sm:$0xff] }
 0x276   : > { %v2550_v21 = vpop.f32.mrb[27].mxu0  ;;  %v10800_v11 = vadd.f32 %v10799_v46, %v9204_v39  ;;  %v2641_v62 = vmul.f32 %v12920_v57, %v13068_v38  ;;  %v548_v39 = vld [vmem:[%s12091_s19 + $0xf0] sm:$0xff] }
 0x277   : > { %v10802_v32 = vadd.f32 %v10801_v51, %v2550_v21  ;;  %v8967_v34 = vpop.f32.mrb[28].mxu1  ;;  %v2640_v42 = vmul.f32 %v12920_v57, %v13064_v47 }
 0x278   : > { %v10803_v17 = vadd.f32 %v8967_v34, %v12913_v14  ;;  %v1644_v33 = vpop.f32.mrb[29].mxu1  ;;  %v13080_v12 = vadd.f32 %v10800_v11, %v545_v9  ;;  %v13111_v34 = vld [vmem:[#allocation8 + $0x8] sm:$0xff]  ;;  %v13117_v9 = vld [vmem:[#allocation8 + $0x18] sm:$0xff] }
 0x279   : > { %v9207_v37 = vpop.f32.mrb[28].mxu0  ;;  %v13076_v53 = vadd.f32 %v10802_v32, %v544_v44  ;;  %v10805_v6 = vadd.f32 %v12913_v14, %v1644_v33  ;;  %2694 = vadd.xlane.f32.xlu1 %v2639_v16  ;;  %2696 = vadd.xlane.f32.xlu0 %v2640_v42  ;;  %v13109_v32 = vld [vmem:[#allocation8] sm:$0xff]  ;;  %v16039_v42 = vand.u32 4294901760, %v13111_v34 }
 0x27a   : > { %v2562_v43 = vpop.f32.mrb[29].mxu0  ;;  %v10804_v4 = vadd.f32 %v10803_v17, %v9207_v37  ;;  %v2643_v61 = vmul.f32 %v12920_v57, %v13080_v12  ;;  %v13113_v37 = vld [vmem:[#allocation8 + $0x10] sm:$0xff]  ;;  %v16042_v16 = vand.u32 4294901760, %v13109_v32  ;;  %v13120_v33 = vld [vmem:[#allocation8 + $0x20] sm:$0xff] }
 0x27b   : > { %v10806_v56 = vadd.f32 %v10805_v6, %v2562_v43  ;;  %v8970_v29 = vpop.f32.mrb[30].mxu1  ;;  %v2642_v26 = vmul.f32 %v12920_v57, %v13076_v53  ;;  %v16038_v17 = vand.u32 4294901760, %v13113_v37  ;;  %v13122_v43 = vld [vmem:[#allocation8 + $0x28] sm:$0xff]  ;;  %v16035_v6 = vand.u32 4294901760, %v13117_v9 }
 0x27c   : > { %v10807_v30 = vadd.f32 %v8970_v29, %v12913_v14  ;;  %v1658_v23 = vpop.f32.mrb[31].mxu1  ;;  %v13092_v41 = vadd.f32 %v10804_v4, %v547_v59  ;;  %v13129_v4 = vpack.c.bf16 %v16039_v42, %v16042_v16  ;;  %v13315_v42 = vld [vmem:[#allocation8 + $0x68] sm:$0xff] }
 0x27d   : > { %v9210_v3 = vpop.f32.mrb[30].mxu0  ;;  %v13088_v52 = vadd.f32 %v10806_v56, %v546_v25  ;;  %v10809_v19 = vadd.f32 %v12913_v14, %v1658_v23  ;;  %2698 = vadd.xlane.f32.xlu1 %v2641_v62  ;;  %2700 = vadd.xlane.f32.xlu0 %v2642_v26  ;;  %v16034_v25 = vand.u32 4294901760, %v13120_v33  ;;  %v16033_v56 = vand.u32 4294901760, %v13122_v43  ;;  %v13141_v62 = vld [vmem:[#allocation8 + $0x38] sm:$0xff] }
 0x27e   : > { %v2574_v5 = vpop.f32.mrb[31].mxu0  ;;  %v10808_v35 = vadd.f32 %v10807_v30, %v9210_v3  ;;  %v2645_v14 = vmul.f32 %v12920_v57, %v13092_v41  ;;  %16560 = vst [vmem:[#allocation31_spill] sm:$0xff] %v13129_v4  ;;  %v13137_v29 = vpack.c.bf16 %v16035_v6, %v16038_v17  ;;  %v13139_v3 = vld [vmem:[#allocation8 + $0x30] sm:$0xff]  ;;  %10364 = vmatprep.subr.bf16.mxu1 %v13129_v4  ;;  %v16031_v30 = vand.u32 4294901760, %v13141_v62 }
 0x27f   : > { %v10810_v27 = vadd.f32 %v10809_v19, %v2574_v5  ;;  %v2644_v46 = vmul.f32 %v12920_v57, %v13088_v52  ;;  %10366 = vmatpush3.bf16.msra.mxu1 %v13129_v4  ;;  %v13150_v26 = vpack.c.bf16 %v16033_v56, %v16034_v25  ;;  %v16032_v59 = vand.u32 4294901760, %v13139_v3 }
 0x280   : > { %v13101_v51 = vadd.f32 %v10808_v35, %v549_v10  ;;  %16561 = vst [vmem:[#allocation21_spill] sm:$0xff] %v13137_v29  ;;  %10368 = vmatprep.subr.bf16.mxu1 %v13137_v29 }
 0x281   : > { %v13099_v21 = vadd.f32 %v10810_v27, %v548_v39  ;;  %2702 = vadd.xlane.f32.xlu1 %v2643_v61  ;;  %2704 = vadd.xlane.f32.xlu0 %v2644_v46  ;;  %16562 = vst [vmem:[#allocation32_spill] sm:$0xff] %v13150_v26  ;;  %v13160_v23 = vpack.c.bf16 %v16031_v30, %v16032_v59 }
 0x282   : > { %v2647_v44 = vmul.f32 %v12920_v57, %v13101_v51 }
 0x283   : > { %v2646_v11 = vmul.f32 %v12920_v57, %v13099_v21  ;;  %10370 = vmatpush3.bf16.msra.mxu1 %v13137_v29  ;;  %16563 = vst [vmem:[#allocation34_spill] sm:$0xff] %v13160_v23 }
 0x284   : > { %10372 = vmatprep.subr.bf16.mxu1 %v13150_v26 }
 0x285   : > { %2706 = vadd.xlane.f32.xlu1 %v2645_v14  ;;  %2708 = vadd.xlane.f32.xlu0 %v2646_v11 }
 0x287   : > { %10374 = vmatpush3.bf16.msra.mxu1 %v13150_v26 }
 0x288   : > { %10376 = vmatprep.subr.bf16.mxu1 %v13160_v23 }
 0x289   : > { %2710 = vadd.xlane.f32.xlu1 %v2647_v44 }
 0x28b   : > { %10378 = vmatpush3.bf16.msra.mxu1 %v13160_v23 }
 0x2d6   : > { %v2649_v5 = vpop.xlane.xlu0 %2648 }
 0x2d7   : > { %v2712_v19 = vmul.f32 0.03125, %v2649_v5 }
 0x2d9   : > { %v2744_v35 = vsub.f32 %v12923_v55, %v2712_v19 }
 0x2da   : > { %v2653_v39 = vpop.xlane.xlu1 %2652  ;;  %v2651_v27 = vpop.xlane.xlu0 %2650 }
 0x2db   : > { %v2714_v61 = vmul.f32 0.03125, %v2653_v39  ;;  %v2713_v46 = vmul.f32 0.03125, %v2651_v27  ;;  %v13167_v10 = vmul.f32 %v12920_v57, %v2744_v35 }
 0x2dd   : > { %v2746_v14 = vsub.f32 %v12933_v15, %v2714_v61  ;;  %v2745_v11 = vsub.f32 %v12926_v28, %v2713_v46  ;;  %v2808_v44 = vmul.f32 %v13167_v10, %v13167_v10 }
 0x2de   : > { %v2655_v30 = vpop.xlane.xlu1 %2654  ;;  %v2657_v59 = vpop.xlane.xlu0 %2656 }
 0x2df   : > { %v2715_v56 = vmul.f32 0.03125, %v2655_v30  ;;  %v2716_v5 = vmul.f32 0.03125, %v2657_v59  ;;  %2840 = vadd.xlane.f32.xlu0 %v2808_v44  ;;  %v13174_v55 = vmul.f32 %v12920_v57, %v2746_v14  ;;  %v13177_v19 = vmul.f32 %v12920_v57, %v2745_v11 }
 0x2e1   : > { %v2747_v35 = vsub.f32 %v12936_v54, %v2715_v56  ;;  %v2748_v15 = vsub.f32 %v12944_v60, %v2716_v5  ;;  %v2810_v28 = vmul.f32 %v13174_v55, %v13174_v55  ;;  %v2809_v39 = vmul.f32 %v13177_v19, %v13177_v19 }
 0x2e2   : > { %v2659_v27 = vpop.xlane.xlu1 %2658  ;;  %v2661_v30 = vpop.xlane.xlu0 %2660 }
 0x2e3   : > { %v2717_v59 = vmul.f32 0.03125, %v2659_v27  ;;  %v2718_v61 = vmul.f32 0.03125, %v2661_v30  ;;  %2844 = vadd.xlane.f32.xlu0 %v2810_v28  ;;  %2842 = vadd.xlane.f32.xlu1 %v2809_v39  ;;  %v13186_v46 = vmul.f32 %v12920_v57, %v2747_v35  ;;  %v13189_v14 = vmul.f32 %v12920_v57, %v2748_v15 }
 0x2e5   : > { %v2749_v54 = vsub.f32 %v12948_v20, %v2717_v59  ;;  %v2750_v60 = vsub.f32 %v12956_v8, %v2718_v61  ;;  %v2811_v56 = vmul.f32 %v13186_v46, %v13186_v46  ;;  %v2812_v11 = vmul.f32 %v13189_v14, %v13189_v14 }
 0x2e6   : > { %v2663_v44 = vpop.xlane.xlu1 %2662  ;;  %v2665_v5 = vpop.xlane.xlu0 %2664 }
 0x2e7   : > { %v2719_v28 = vmul.f32 0.03125, %v2663_v44  ;;  %v2720_v39 = vmul.f32 0.03125, %v2665_v5  ;;  %2846 = vadd.xlane.f32.xlu1 %v2811_v56  ;;  %2848 = vadd.xlane.f32.xlu0 %v2812_v11  ;;  %v13198_v35 = vmul.f32 %v12920_v57, %v2749_v54  ;;  %v13201_v15 = vmul.f32 %v12920_v57, %v2750_v60 }
 0x2e9   : > { %v2751_v20 = vsub.f32 %v12960_v7, %v2719_v28  ;;  %v2752_v8 = vsub.f32 %v12968_v0, %v2720_v39  ;;  %v2813_v27 = vmul.f32 %v13198_v35, %v13198_v35  ;;  %v2814_v30 = vmul.f32 %v13201_v15, %v13201_v15 }
 0x2ea   : > { %v2667_v59 = vpop.xlane.xlu1 %2666  ;;  %v2669_v61 = vpop.xlane.xlu0 %2668 }
 0x2eb   : > { %v2721_v56 = vmul.f32 0.03125, %v2667_v59  ;;  %v2722_v11 = vmul.f32 0.03125, %v2669_v61  ;;  %2850 = vadd.xlane.f32.xlu1 %v2813_v27  ;;  %2852 = vadd.xlane.f32.xlu0 %v2814_v30  ;;  %v13210_v54 = vmul.f32 %v12920_v57, %v2751_v20  ;;  %v13213_v60 = vmul.f32 %v12920_v57, %v2752_v8 }
 0x2ed   : > { %v2753_v7 = vsub.f32 %v12972_v48, %v2721_v56  ;;  %v2754_v0 = vsub.f32 %v12980_v31, %v2722_v11  ;;  %v2815_v44 = vmul.f32 %v13210_v54, %v13210_v54  ;;  %v2816_v5 = vmul.f32 %v13213_v60, %v13213_v60 }
 0x2ee   : > { %v2671_v28 = vpop.xlane.xlu1 %2670  ;;  %v2673_v39 = vpop.xlane.xlu0 %2672 }
 0x2ef   : > { %v2723_v27 = vmul.f32 0.03125, %v2671_v28  ;;  %v2724_v30 = vmul.f32 0.03125, %v2673_v39  ;;  %2854 = vadd.xlane.f32.xlu1 %v2815_v44  ;;  %2856 = vadd.xlane.f32.xlu0 %v2816_v5  ;;  %v13222_v20 = vmul.f32 %v12920_v57, %v2753_v7  ;;  %v13225_v8 = vmul.f32 %v12920_v57, %v2754_v0 }
 0x2f1   : > { %v2755_v48 = vsub.f32 %v12984_v13, %v2723_v27  ;;  %v2756_v31 = vsub.f32 %v12992_v40, %v2724_v30  ;;  %v2817_v59 = vmul.f32 %v13222_v20, %v13222_v20  ;;  %v2818_v61 = vmul.f32 %v13225_v8, %v13225_v8 }
 0x2f2   : > { %v2675_v56 = vpop.xlane.xlu1 %2674  ;;  %v2677_v11 = vpop.xlane.xlu0 %2676 }
 0x2f3   : > { %v2725_v44 = vmul.f32 0.03125, %v2675_v56  ;;  %v2726_v5 = vmul.f32 0.03125, %v2677_v11  ;;  %2858 = vadd.xlane.f32.xlu1 %v2817_v59  ;;  %2860 = vadd.xlane.f32.xlu0 %v2818_v61  ;;  %v13234_v7 = vmul.f32 %v12920_v57, %v2755_v48  ;;  %v13237_v0 = vmul.f32 %v12920_v57, %v2756_v31 }
 0x2f5   : > { %v2757_v13 = vsub.f32 %v12996_v1, %v2725_v44  ;;  %v2758_v40 = vsub.f32 %v13004_v24, %v2726_v5  ;;  %v2819_v28 = vmul.f32 %v13234_v7, %v13234_v7  ;;  %v2820_v39 = vmul.f32 %v13237_v0, %v13237_v0 }
 0x2f6   : > { %v2679_v27 = vpop.xlane.xlu1 %2678  ;;  %v2681_v30 = vpop.xlane.xlu0 %2680 }
 0x2f7   : > { %v2727_v59 = vmul.f32 0.03125, %v2679_v27  ;;  %v2728_v61 = vmul.f32 0.03125, %v2681_v30  ;;  %2862 = vadd.xlane.f32.xlu1 %v2819_v28  ;;  %2864 = vadd.xlane.f32.xlu0 %v2820_v39  ;;  %v13246_v48 = vmul.f32 %v12920_v57, %v2757_v13  ;;  %v13249_v31 = vmul.f32 %v12920_v57, %v2758_v40 }
 0x2f9   : > { %v2759_v1 = vsub.f32 %v13008_v50, %v2727_v59  ;;  %v2760_v24 = vsub.f32 %v13016_v36, %v2728_v61  ;;  %v2821_v56 = vmul.f32 %v13246_v48, %v13246_v48  ;;  %v2822_v11 = vmul.f32 %v13249_v31, %v13249_v31  ;;  %v13263_v50 = vld [vmem:[#allocation8 + $0x40] sm:$0xff]  ;;  %v13265_v36 = vld [vmem:[#allocation8 + $0x48] sm:$0xff] }
 0x2fa   : > { %v2683_v44 = vpop.xlane.xlu1 %2682  ;;  %v2685_v5 = vpop.xlane.xlu0 %2684  ;;  %v16037_v27 = vand.u32 4294901760, %v13263_v50  ;;  %v16036_v30 = vand.u32 4294901760, %v13265_v36  ;;  %v16593_v29 = vand.u32 4294901760, %v13265_v36 }
 0x2fb   : > { %v2729_v28 = vmul.f32 0.03125, %v2683_v44  ;;  %v2730_v39 = vmul.f32 0.03125, %v2685_v5  ;;  %2866 = vadd.xlane.f32.xlu1 %v2821_v56  ;;  %2868 = vadd.xlane.f32.xlu0 %v2822_v11  ;;  %v13258_v13 = vmul.f32 %v12920_v57, %v2759_v1  ;;  %v13261_v40 = vmul.f32 %v12920_v57, %v2760_v24 }
 0x2fc   : > { %v13279_v44 = vpack.c.bf16 %v16036_v30, %v16037_v27 }
 0x2fd   : > { %v2761_v59 = vsub.f32 %v13020_v49, %v2729_v28  ;;  %v2762_v61 = vsub.f32 %v13028_v18, %v2730_v39  ;;  %v2823_v56 = vmul.f32 %v13258_v13, %v13258_v13  ;;  %v2824_v1 = vmul.f32 %v13261_v40, %v13261_v40  ;;  %v13288_v28 = vld [vmem:[#allocation8 + $0x50] sm:$0xff]  ;;  %v13290_v39 = vld [vmem:[#allocation8 + $0x58] sm:$0xff] }
 0x2fe   : > { %v2687_v24 = vpop.xlane.xlu1 %2686  ;;  %v2689_v11 = vpop.xlane.xlu0 %2688  ;;  %16564 = vst [vmem:[#allocation22_spill] sm:$0xff] %v13279_v44  ;;  %10380 = vmatprep.subr.bf16.mxu1 %v13279_v44 }
 0x2ff   : > { %v2731_v5 = vmul.f32 0.03125, %v2687_v24  ;;  %v2732_v25 = vmul.f32 0.03125, %v2689_v11  ;;  %2870 = vadd.xlane.f32.xlu1 %v2823_v56  ;;  %2872 = vadd.xlane.f32.xlu0 %v2824_v1  ;;  %v13282_v49 = vmul.f32 %v12920_v57, %v2761_v59  ;;  %v13285_v18 = vmul.f32 %v12920_v57, %v2762_v61 }
 0x300   : > { %10382 = vmatpush3.bf16.msra.mxu1 %v13279_v44  ;;  %v16041_v24 = vand.u32 4294901760, %v13288_v28  ;;  %v16040_v11 = vand.u32 4294901760, %v13290_v39 }
 0x301   : > { %v2763_v6 = vsub.f32 %v13032_v58, %v2731_v5  ;;  %v2764_v30 = vsub.f32 %v13040_v45, %v2732_v25  ;;  %v2825_v56 = vmul.f32 %v13282_v49, %v13282_v49  ;;  %v2826_v59 = vmul.f32 %v13285_v18, %v13285_v18  ;;  %v13313_v5 = vld [vmem:[#allocation8 + $0x60] sm:$0xff] }
 0x302   : > { %v2691_v61 = vpop.xlane.xlu1 %2690  ;;  %v2693_v1 = vpop.xlane.xlu0 %2692  ;;  %v13311_v25 = vpack.c.bf16 %v16040_v11, %v16041_v24  ;;  %v16048_v11 = vand.u32 4294901760, %v13313_v5  ;;  %v16047_v24 = vand.u32 4294901760, %v13315_v42 }
 0x303   : > { %v2733_v27 = vmul.f32 0.03125, %v2691_v61  ;;  %v2734_v17 = vmul.f32 0.03125, %v2693_v1  ;;  %2874 = vadd.xlane.f32.xlu1 %v2825_v56  ;;  %2876 = vadd.xlane.f32.xlu0 %v2826_v59  ;;  %v13302_v58 = vmul.f32 %v12920_v57, %v2763_v6  ;;  %v13305_v45 = vmul.f32 %v12920_v57, %v2764_v30 }
 0x304   : > { %16565 = vst [vmem:[#allocation37_spill] sm:$0xff] %v13311_v25  ;;  %10384 = vmatprep.subr.bf16.mxu1 %v13311_v25 }
 0x305   : > { %v2765_v61 = vsub.f32 %v13044_v2, %v2733_v27  ;;  %v2766_v56 = vsub.f32 %v13052_v63, %v2734_v17  ;;  %v2827_v6 = vmul.f32 %v13302_v58, %v13302_v58  ;;  %v2828_v30 = vmul.f32 %v13305_v45, %v13305_v45  ;;  %10386 = vmatpush3.bf16.msra.mxu1 %v13311_v25  ;;  %v13339_v27 = vld [vmem:[#allocation8 + $0x70] sm:$0xff] }
 0x306   : > { %v2695_v59 = vpop.xlane.xlu1 %2694  ;;  %v2697_v1 = vpop.xlane.xlu0 %2696  ;;  %v13337_v17 = vpack.c.bf16 %v16047_v24, %v16048_v11  ;;  %v16056_v24 = vand.u32 4294901760, %v13339_v27 }
 0x307   : > { %v2735_v16 = vmul.f32 0.03125, %v2695_v59  ;;  %v2736_v44 = vmul.f32 0.03125, %v2697_v1  ;;  %2878 = vadd.xlane.f32.xlu1 %v2827_v6  ;;  %2880 = vadd.xlane.f32.xlu0 %v2828_v30  ;;  %v13327_v2 = vmul.f32 %v12920_v57, %v2765_v61  ;;  %v13330_v63 = vmul.f32 %v12920_v57, %v2766_v56  ;;  %v13341_v59 = vld [vmem:[#allocation8 + $0x78] sm:$0xff] }
 0x308   : > { %16566 = vst [vmem:[#allocation24_spill] sm:$0xff] %v13337_v17  ;;  %10388 = vmatprep.subr.bf16.mxu1 %v13337_v17  ;;  %v16055_v11 = vand.u32 4294901760, %v13341_v59 }
 0x309   : > { %v2767_v6 = vsub.f32 %v13056_v22, %v2735_v16  ;;  %v2768_v61 = vsub.f32 %v13064_v47, %v2736_v44  ;;  %v2829_v56 = vmul.f32 %v13327_v2, %v13327_v2  ;;  %v2830_v30 = vmul.f32 %v13330_v63, %v13330_v63  ;;  %10390 = vmatpush3.bf16.msra.mxu1 %v13337_v17 }
 0x30a   : > { %v2699_v1 = vpop.xlane.xlu1 %2698  ;;  %v2701_v25 = vpop.xlane.xlu0 %2700  ;;  %v13363_v16 = vpack.c.bf16 %v16055_v11, %v16056_v24 }
 0x30b   : > { %v2737_v23 = vmul.f32 0.03125, %v2699_v1  ;;  %v2738_v26 = vmul.f32 0.03125, %v2701_v25  ;;  %2882 = vadd.xlane.f32.xlu1 %v2829_v56  ;;  %2884 = vadd.xlane.f32.xlu0 %v2830_v30  ;;  %v13353_v22 = vmul.f32 %v12920_v57, %v2767_v6  ;;  %v13356_v47 = vmul.f32 %v12920_v57, %v2768_v61 }
 0x30c   : > { %16567 = vst [vmem:[#allocation40_spill] sm:$0xff] %v13363_v16  ;;  %10392 = vmatprep.subr.bf16.mxu1 %v13363_v16 }
 0x30d   : > { %v2769_v44 = vsub.f32 %v13068_v38, %v2737_v23  ;;  %v2770_v25 = vsub.f32 %v13076_v53, %v2738_v26  ;;  %v2831_v56 = vmul.f32 %v13353_v22, %v13353_v22  ;;  %v2832_v6 = vmul.f32 %v13356_v47, %v13356_v47  ;;  %10394 = vmatpush3.bf16.msra.mxu1 %v13363_v16 }
 0x30e   : > { %v2703_v61 = vpop.xlane.xlu1 %2702  ;;  %v2705_v30 = vpop.xlane.xlu0 %2704 }
 0x30f   : > { %v2739_v1 = vmul.f32 0.03125, %v2703_v61  ;;  %v2740_v17 = vmul.f32 0.03125, %v2705_v30  ;;  %2886 = vadd.xlane.f32.xlu1 %v2831_v56  ;;  %2888 = vadd.xlane.f32.xlu0 %v2832_v6  ;;  %v13373_v11 = vmul.f32 %v12920_v57, %v2769_v44  ;;  %v13376_v38 = vmul.f32 %v12920_v57, %v2770_v25 }
 0x311   : > { %16568 = vst [vmem:[#allocation27_spill] sm:$0xff] %v13376_v38  ;;  %v2771_v53 = vsub.f32 %v13080_v12, %v2739_v1  ;;  %v2772_v26 = vsub.f32 %v13088_v52, %v2740_v17  ;;  %v2833_v23 = vmul.f32 %v13373_v11, %v13373_v11  ;;  %v2834_v61 = vmul.f32 %v13376_v38, %v13376_v38 }
 0x312   : > { %v2707_v56 = vpop.xlane.xlu1 %2706  ;;  %v2709_v6 = vpop.xlane.xlu0 %2708 }
 0x313   : > { %v2741_v30 = vmul.f32 0.03125, %v2707_v56  ;;  %v2742_v44 = vmul.f32 0.03125, %v2709_v6  ;;  %2890 = vadd.xlane.f32.xlu1 %v2833_v23  ;;  %2892 = vadd.xlane.f32.xlu0 %v2834_v61  ;;  %v13386_v25 = vmul.f32 %v12920_v57, %v2771_v53  ;;  %v13389_v24 = vmul.f32 %v12920_v57, %v2772_v26 }
 0x315   : > { %16569 = vst [vmem:[#allocation42_spill] sm:$0xff] %v13386_v25  ;;  %16570 = vst [vmem:[#allocation45_spill] sm:$0xff] %v13389_v24  ;;  %v2773_v12 = vsub.f32 %v13092_v41, %v2741_v30  ;;  %v2774_v52 = vsub.f32 %v13099_v21, %v2742_v44  ;;  %v2835_v17 = vmul.f32 %v13386_v25, %v13386_v25  ;;  %v16574_v44 = vand.u32 4294901760, %v13109_v32 }
 0x316   : > { %v2836_v1 = vmul.f32 %v13389_v24, %v13389_v24  ;;  %v2711_v56 = vpop.xlane.xlu1 %2710 }
 0x317   : > { %v2743_v6 = vmul.f32 0.03125, %v2711_v56  ;;  %2894 = vadd.xlane.f32.xlu1 %v2835_v17  ;;  %v13398_v53 = vmul.f32 %v12920_v57, %v2773_v12  ;;  %v13401_v26 = vmul.f32 %v12920_v57, %v2774_v52  ;;  %v13416_v12 = vsub.f32 %v13109_v32, %v16574_v44 }
 0x318   : > { %2896 = vadd.xlane.f32.xlu0 %v2836_v1 }
 0x319   : > { %16571 = vst [vmem:[#allocation30_spill] sm:$0xff] %v13398_v53  ;;  %16572 = vst [vmem:[#allocation47_spill] sm:$0xff] %v13401_v26  ;;  %v2775_v41 = vsub.f32 %v13101_v51, %v2743_v6  ;;  %v2837_v21 = vmul.f32 %v13398_v53, %v13398_v53  ;;  %v2838_v23 = vmul.f32 %v13401_v26, %v13401_v26  ;;  %v16576_v51 = vand.u32 4294901760, %v13111_v34 }
 0x31a   : > { %16575 = vst [vmem:[#allocation49_spill] sm:$0xff] %v13416_v12  ;;  %v16058_v17 = vand.u32 4294901760, %v13416_v12 }
 0x31b   : > { %2898 = vadd.xlane.f32.xlu1 %v2837_v21  ;;  %v13409_v61 = vmul.f32 %v12920_v57, %v2775_v41  ;;  %v13421_v52 = vsub.f32 %v13111_v34, %v16576_v51  ;;  %v16578_v34 = vand.u32 4294901760, %v13113_v37 }
 0x31c   : > { %2900 = vadd.xlane.f32.xlu0 %v2838_v23  ;;  %v3538_v56 = vsub.f32 %v13416_v12, %v16058_v17 }
 0x31d   : > { %16573 = vst [vmem:[#allocation48_spill] sm:$0xff] %v13409_v61  ;;  %v2839_v30 = vmul.f32 %v13409_v61, %v13409_v61  ;;  %16577 = vst [vmem:[#allocation20_spill] sm:$0xff] %v13421_v52  ;;  %v16057_v1 = vand.u32 4294901760, %v13421_v52  ;;  %v13437_v23 = vsub.f32 %v13113_v37, %v16578_v34 }
 0x31e   : > { %v3539_v41 = vand.u32 4294901760, %v3538_v56  ;;  %v16582_v56 = vand.u32 4294901760, %v13120_v33 }
 0x31f   : > { %2902 = vadd.xlane.f32.xlu1 %v2839_v30  ;;  %v3545_v6 = vsub.f32 %v13421_v52, %v16057_v1  ;;  %16579 = vst [vmem:[#allocation23_spill] sm:$0xff] %v13437_v23  ;;  %v16580_v30 = vand.u32 4294901760, %v13117_v9  ;;  %v16062_v51 = vand.u32 4294901760, %v13437_v23 }
 0x321   : > { %v3546_v32 = vand.u32 4294901760, %v3545_v6  ;;  %v13442_v44 = vsub.f32 %v13117_v9, %v16580_v30  ;;  %v13449_v6 = vsub.f32 %v13120_v33, %v16582_v56  ;;  %v3552_v37 = vsub.f32 %v13437_v23, %v16062_v51 }
 0x322   : > { %v16586_v56 = vand.u32 4294901760, %v13139_v3  ;;  %v16591_v51 = vand.u32 4294901760, %v13263_v50 }
 0x323   : > { %v13431_v21 = vpack.c.bf16 %v3546_v32, %v3539_v41  ;;  %16581 = vst [vmem:[#allocation25_spill] sm:$0xff] %v13442_v44  ;;  %v16061_v1 = vand.u32 4294901760, %v13442_v44  ;;  %16583 = vst [vmem:[#allocation26_spill] sm:$0xff] %v13449_v6  ;;  %v16584_v41 = vand.u32 4294901760, %v13122_v43  ;;  %v16063_v34 = vand.u32 4294901760, %v13449_v6 }
 0x324   : > { %v3553_v17 = vand.u32 4294901760, %v3552_v37  ;;  %v13467_v57 = vsub.f32 %v13139_v3, %v16586_v56 }
 0x325   : > { %10396 = vmatprep.subr.bf16.mxu1 %v13431_v21  ;;  %v13454_v32 = vsub.f32 %v13122_v43, %v16584_v41  ;;  %v3559_v9 = vsub.f32 %v13442_v44, %v16061_v1  ;;  %v13472_v43 = vsub.f32 %v13449_v6, %v16063_v34  ;;  %v13481_v1 = vpack.c.bf16 %v13442_v44, %v13437_v23 }
 0x326   : > { %16587 = vst [vmem:[#allocation33_spill] sm:$0xff] %v13467_v57  ;;  %v13491_v34 = vsub.f32 %v13263_v50, %v16591_v51  ;;  %v13499_v44 = vsub.f32 %v13265_v36, %v16593_v29  ;;  %v16599_v29 = vand.u32 4294901760, %v13313_v5  ;;  %v16603_v51 = vand.u32 4294901760, %v13467_v57 }
 0x327   : > { %16585 = vst [vmem:[#allocation28_spill] sm:$0xff] %v13454_v32  ;;  %v16066_v30 = vand.u32 4294901760, %v13454_v32  ;;  %v3560_v33 = vand.u32 4294901760, %v3559_v9  ;;  %16588 = vst [vmem:[#allocation35_spill] sm:$0xff] %v13481_v1  ;;  %v16589_v9 = vand.u32 4294901760, %v13141_v62 }
 0x328   : > { %16592 = vst [vmem:[#allocation38_spill] sm:$0xff] %v13491_v34  ;;  %16594 = vst [vmem:[#allocation39_spill] sm:$0xff] %v13499_v44  ;;  %v13517_v36 = vsub.f32 %v13313_v5, %v16599_v29  ;;  %v16604_v5 = vand.u32 4294901760, %v13339_v27 }
 0x329   : > { %v13477_v41 = vsub.f32 %v13454_v32, %v16066_v30  ;;  %v13486_v3 = vsub.f32 %v13141_v62, %v16589_v9  ;;  %v13493_v16 = vpack.c.bf16 %v3560_v33, %v3553_v17  ;;  %v16597_v33 = vand.u32 4294901760, %v13290_v39 }
 0x32a   : > { %16600 = vst [vmem:[#allocation44_spill] sm:$0xff] %v13517_v36  ;;  %v13534_v29 = vsub.f32 %v13339_v27, %v16604_v5 }
 0x32b   : > { %16590 = vst [vmem:[#allocation36_spill] sm:$0xff] %v13486_v3  ;;  %v13512_v30 = vsub.f32 %v13290_v39, %v16597_v33  ;;  %v13528_v39 = vsub.f32 %v13467_v57, %v16603_v51  ;;  %v13544_v51 = vpack.c.bf16 %v13454_v32, %v13449_v6  ;;  %v16609_v1 = vand.u32 4294901760, %v13486_v3 }
 0x32c   : > { %16605 = vst [vmem:[#allocation50_spill] sm:$0xff] %v13534_v29  ;;  %v16611_v32 = vand.u32 4294901760, %v13499_v44 }
 0x32d   : > { %16598 = vst [vmem:[#allocation43_spill] sm:$0xff] %v13512_v30  ;;  %16608 = vst [vmem:[#allocation52_spill] sm:$0xff] %v13544_v51  ;;  %v3587_v27 = vsub.f32 %v13486_v3, %v16609_v1 }
 0x32e   : > { %v3601_v6 = vsub.f32 %v13499_v44, %v16611_v32  ;;  %v16614_v32 = vand.u32 4294901760, %v13517_v36 }
 0x330   : > { %v3622_v1 = vsub.f32 %v13517_v36, %v16614_v32 }
 0x332   : > { %v3623_v25 = vand.u32 4294901760, %v3622_v1 }
 0x36c   : > { %v2841_v37 = vpop.xlane.xlu0 %2840 }
 0x36d   : > { %v2904_v56 = vmul.f32 0.03125, %v2841_v37  ;;  %v16595_v37 = vand.u32 4294901760, %v13288_v28 }
 0x36f   : > { %v2936_v23 = vadd.f32 1e-05, %v2904_v56  ;;  %v13506_v9 = vsub.f32 %v13288_v28, %v16595_v37  ;;  %v16601_v56 = vand.u32 4294901760, %v13315_v42 }
 0x370   : > { %v2843_v50 = vpop.xlane.xlu1 %2842  ;;  %v2845_v17 = vpop.xlane.xlu0 %2844 }
 0x371   : > { %16596 = vst [vmem:[#allocation41_spill] sm:$0xff] %v13506_v9  ;;  %v13522_v62 = vsub.f32 %v13315_v42, %v16601_v56  ;;  %11410 = vrsqrt.f32 %v2936_v23  ;;  %v2905_v28 = vmul.f32 0.03125, %v2843_v50  ;;  %v2906_v37 = vmul.f32 0.03125, %v2845_v17 }
 0x372   : > { %v16606_v42 = vand.u32 4294901760, %v13341_v59 }
 0x373   : > { %16602 = vst [vmem:[#allocation46_spill] sm:$0xff] %v13522_v62  ;;  %v2937_v50 = vadd.f32 1e-05, %v2905_v28  ;;  %v2938_v17 = vadd.f32 1e-05, %v2906_v37 }
 0x374   : > { %v13539_v23 = vsub.f32 %v13341_v59, %v16606_v42  ;;  %v2847_v4 = vpop.xlane.xlu1 %2846  ;;  %v2849_v33 = vpop.xlane.xlu0 %2848  ;;  %v16610_v42 = vand.u32 4294901760, %v13491_v34  ;;  %v3581_v59 = vand.u32 4294901760, %v13528_v39 }
 0x375   : > { %11412 = vrsqrt.f32 %v2937_v50  ;;  %v2907_v28 = vmul.f32 0.03125, %v2847_v4  ;;  %v2908_v37 = vmul.f32 0.03125, %v2849_v33  ;;  %v16612_v4 = vand.u32 4294901760, %v13506_v9 }
 0x376   : > { %16607 = vst [vmem:[#allocation51_spill] sm:$0xff] %v13539_v23  ;;  %v3594_v56 = vsub.f32 %v13491_v34, %v16610_v42  ;;  %11414 = vrsqrt.f32 %v2938_v17  ;;  %v3588_v42 = vand.u32 4294901760, %v3587_v27  ;;  %v16613_v17 = vand.u32 4294901760, %v13512_v30  ;;  %v13576_v27 = vld [vmem:[%s15947_s4] ss:$0 sm:$0xff] }
 0x377   : > { %v2939_v51 = vadd.f32 1e-05, %v2907_v28  ;;  %v2940_v61 = vadd.f32 1e-05, %v2908_v37  ;;  %v3608_v33 = vsub.f32 %v13506_v9, %v16612_v4  ;;  %v16615_v28 = vand.u32 4294901760, %v13522_v62 }
 0x378   : > { %v2851_v50 = vpop.xlane.xlu1 %2850  ;;  %v2853_v26 = vpop.xlane.xlu0 %2852  ;;  %v3615_v53 = vsub.f32 %v13512_v30, %v16613_v17  ;;  %v3595_v24 = vand.u32 4294901760, %v3594_v56  ;;  %v3602_v4 = vand.u32 4294901760, %v3601_v6  ;;  %v16616_v17 = vand.u32 4294901760, %v13534_v29 }
 0x379   : > { %v3629_v37 = vsub.f32 %v13522_v62, %v16615_v28  ;;  %11416 = vrsqrt.f32 %v2939_v51  ;;  %v2909_v39 = vmul.f32 0.03125, %v2851_v50  ;;  %v2910_v5 = vmul.f32 0.03125, %v2853_v26 }
 0x37a   : > { %11418 = vrsqrt.f32 %v2940_v61  ;;  %v3636_v30 = vsub.f32 %v13534_v29, %v16616_v17  ;;  %v16617_v32 = vand.u32 4294901760, %v13539_v23  ;;  %v3609_v26 = vand.u32 4294901760, %v3608_v33  ;;  %v13592_v17 = vld [vmem:[%s15948_s5] ss:$0 sm:$0xff] }
 0x37b   : > { %v11411_v28 = vpop.eup %11410  ;;  %v2941_v51 = vadd.f32 1e-05, %v2909_v39  ;;  %v2942_v50 = vadd.f32 1e-05, %v2910_v5  ;;  %v13586_v56 = vpack.c.bf16 %v13486_v3, %v13467_v57  ;;  %v3616_v9 = vand.u32 4294901760, %v3615_v53 }
 0x37c   : > { %v3643_v36 = vsub.f32 %v13539_v23, %v16617_v32  ;;  %v3000_v62 = vmul.f32 %v11411_v28, %v13167_v10  ;;  %v2855_v61 = vpop.xlane.xlu1 %2854  ;;  %v2857_v6 = vpop.xlane.xlu0 %2856  ;;  %v3630_v38 = vand.u32 4294901760, %v3629_v37  ;;  %v16618_v33 = vand.u32 4294901760, %v13472_v43 }
 0x37d   : > { %11420 = vrsqrt.f32 %v2941_v51  ;;  %v2911_v39 = vmul.f32 0.03125, %v2855_v61  ;;  %v2912_v5 = vmul.f32 0.03125, %v2857_v6  ;;  %v16619_v32 = vand.u32 4294901760, %v13477_v41 }
 0x37e   : > { %v3039_v10 = vmul.f32 %v13576_v27, %v3000_v62  ;;  %11422 = vrsqrt.f32 %v2942_v50  ;;  %v3637_v53 = vand.u32 4294901760, %v3636_v30  ;;  %v3644_v1 = vand.u32 4294901760, %v3643_v36 }
 0x37f   : > { %v13598_v3 = vpack.c.bf16 %v16619_v32, %v16618_v33  ;;  %v11413_v37 = vpop.eup %11412  ;;  %v2943_v28 = vadd.f32 1e-05, %v2911_v39  ;;  %v2944_v57 = vadd.f32 1e-05, %v2912_v5  ;;  %v13601_v23 = vpack.c.bf16 %v3588_v42, %v3581_v59 }
 0x380   : > { %v13603_v29 = vpack.c.bf16 %v3602_v4, %v3595_v24  ;;  %v11415_v51 = vpop.eup %11414  ;;  %v3001_v61 = vmul.f32 %v11413_v37, %v13177_v19  ;;  %v2859_v43 = vpop.xlane.xlu1 %2858  ;;  %v13607_v41 = vadd.f32 %v13592_v17, %v3039_v10  ;;  %v13609_v33 = vpack.c.bf16 %v3616_v9, %v3609_v26 }
 0x381   : > { %v2861_v6 = vpop.xlane.xlu0 %2860  ;;  %v13611_v62 = vpack.c.bf16 %v3630_v38, %v3623_v25  ;;  %v3002_v30 = vmul.f32 %v11415_v51, %v13174_v55  ;;  %11424 = vrsqrt.f32 %v2943_v28  ;;  %v2913_v36 = vmul.f32 0.03125, %v2859_v43 }
 0x382   : > { %16620 = vst [vmem:[#allocation53_spill] sm:$0xff] %v13607_v41  ;;  %v2914_v59 = vmul.f32 0.03125, %v2861_v6  ;;  %v3040_v24 = vmul.f32 %v13576_v27, %v3001_v61  ;;  %11426 = vrsqrt.f32 %v2944_v57  ;;  %v13616_v42 = vand.u32 4294901760, %v13607_v41 }
 0x383   : > { %v13618_v19 = vpack.c.bf16 %v3644_v1, %v3637_v53  ;;  %v11417_v4 = vpop.eup %11416  ;;  %v3041_v50 = vmul.f32 %v13576_v27, %v3002_v30  ;;  %v2945_v9 = vadd.f32 1e-05, %v2913_v36  ;;  %v13623_v38 = vpack.c.bf16 %v13499_v44, %v13491_v34 }
 0x384   : > { %v2946_v26 = vadd.f32 1e-05, %v2914_v59  ;;  %v11419_v55 = vpop.eup %11418  ;;  %v13626_v25 = vadd.f32 %v13592_v17, %v3040_v24  ;;  %v3003_v57 = vmul.f32 %v11417_v4, %v13186_v46  ;;  %v2863_v39 = vpop.xlane.xlu1 %2862  ;;  %v13631_v32 = vsub.f32 %v13607_v41, %v13616_v42 }
 0x385   : > { %v2865_v5 = vpop.xlane.xlu0 %2864  ;;  %v13635_v10 = vpack.c.bf16 %v13421_v52, %v13416_v12  ;;  %v3004_v53 = vmul.f32 %v11419_v55, %v13189_v14  ;;  %11428 = vrsqrt.f32 %v2945_v9  ;;  %v2915_v1 = vmul.f32 0.03125, %v2863_v39 }
 0x386   : > { %16621 = vst [vmem:[#allocation54_spill] sm:$0xff] %v13626_v25  ;;  %v2916_v37 = vmul.f32 0.03125, %v2865_v5  ;;  %v13639_v28 = vand.u32 4294901760, %v13626_v25  ;;  %v3042_v46 = vmul.f32 %v13576_v27, %v3003_v57  ;;  %11430 = vrsqrt.f32 %v2946_v26 }
 0x387   : > { %v16097_v51 = vand.u32 4294901760, %v13631_v32  ;;  %v11421_v61 = vpop.eup %11420  ;;  %v3043_v43 = vmul.f32 %v13576_v27, %v3004_v53  ;;  %v2947_v6 = vadd.f32 1e-05, %v2915_v1  ;;  %v13645_v36 = vadd.f32 %v13592_v17, %v3041_v50 }
 0x388   : > { %v2948_v30 = vadd.f32 1e-05, %v2916_v37  ;;  %v11423_v14 = vpop.eup %11422  ;;  %v3005_v59 = vmul.f32 %v11421_v61, %v13198_v35  ;;  %v2867_v24 = vpop.xlane.xlu1 %2866  ;;  %v13653_v26 = vsub.f32 %v13626_v25, %v13639_v28  ;;  %v13656_v55 = vadd.f32 %v13592_v17, %v3042_v46 }
 0x389   : > { %16622 = vst [vmem:[#allocation55_spill] sm:$0xff] %v13645_v36  ;;  %v2869_v4 = vpop.xlane.xlu0 %2868  ;;  %v3217_v9 = vsub.f32 %v13631_v32, %v16097_v51  ;;  %v3006_v57 = vmul.f32 %v11423_v14, %v13201_v15  ;;  %11432 = vrsqrt.f32 %v2947_v6  ;;  %v2917_v50 = vmul.f32 0.03125, %v2867_v24 }
 0x38a   : > { %16623 = vst [vmem:[#allocation56_spill] sm:$0xff] %v13656_v55  ;;  %v2918_v39 = vmul.f32 0.03125, %v2869_v4  ;;  %v3044_v35 = vmul.f32 %v13576_v27, %v3005_v59  ;;  %11434 = vrsqrt.f32 %v2948_v30  ;;  %v16099_v53 = vand.u32 4294901760, %v13653_v26 }
 0x38b   : > { %v3218_v5 = vand.u32 4294901760, %v3217_v9  ;;  %v11425_v1 = vpop.eup %11424  ;;  %v13662_v37 = vmul.f32 %v13576_v27, %v3006_v57  ;;  %v2949_v61 = vadd.f32 1e-05, %v2917_v50  ;;  %v13665_v46 = vand.u32 4294901760, %v13645_v36 }
 0x38c   : > { %v2950_v51 = vadd.f32 1e-05, %v2918_v39  ;;  %v11427_v41 = vpop.eup %11426  ;;  %v3007_v15 = vmul.f32 %v11425_v1, %v13210_v54  ;;  %v2871_v6 = vpop.xlane.xlu1 %2870  ;;  %v3227_v30 = vsub.f32 %v13653_v26, %v16099_v53  ;;  %v13672_v59 = vand.u32 4294901760, %v13656_v55 }
 0x38d   : > { %9243 = vmatprep.mubr.f32.mxu1 %v3218_v5  ;;  %v2873_v14 = vpop.xlane.xlu0 %2872  ;;  %v13675_v24 = vadd.f32 %v13592_v17, %v3043_v43  ;;  %v3008_v4 = vmul.f32 %v11427_v41, %v13213_v60  ;;  %11436 = vrsqrt.f32 %v2949_v61  ;;  %v2919_v9 = vmul.f32 0.03125, %v2871_v6 }
 0x38e   : > { %v2920_v57 = vmul.f32 0.03125, %v2873_v14  ;;  %v3046_v54 = vmul.f32 %v13576_v27, %v3007_v15  ;;  %11438 = vrsqrt.f32 %v2950_v51  ;;  %v3228_v50 = vand.u32 4294901760, %v3227_v30 }
 0x38f   : > { %16624 = vst [vmem:[#allocation57_spill] sm:$0xff] %v13675_v24  ;;  %v13681_v39 = vsub.f32 %v13645_v36, %v13665_v46  ;;  %v11429_v5 = vpop.eup %11428  ;;  %v13684_v1 = vmul.f32 %v13576_v27, %v3008_v4  ;;  %v2951_v53 = vadd.f32 1e-05, %v2919_v9  ;;  %v13688_v60 = vsub.f32 %v13656_v55, %v13672_v59 }
 0x390   : > { %v2952_v43 = vadd.f32 1e-05, %v2920_v57  ;;  %v11431_v41 = vpop.eup %11430  ;;  %v3009_v61 = vmul.f32 %v11429_v5, %v13222_v20  ;;  %v2875_v15 = vpop.xlane.xlu1 %2874  ;;  %9244 = vmatmul.mubr.f32.vlgmr.msra.gmra.mrb[32].mxu1 %v3228_v50  ;;  %v13693_v14 = vand.u32 4294901760, %v13675_v24  ;;  %v13696_v30 = vadd.f32 %v13592_v17, %v3044_v35 }
 0x391   : > { %v2877_v51 = vpop.xlane.xlu0 %2876  ;;  %v16100_v6 = vand.u32 4294901760, %v13681_v39  ;;  %v3010_v4 = vmul.f32 %v11431_v41, %v13225_v8  ;;  %11440 = vrsqrt.f32 %v2951_v53  ;;  %v2921_v9 = vmul.f32 0.03125, %v2875_v15  ;;  %10398 = vmatpush3.bf16.msra.mxu1 %v13431_v21 }
 0x392   : > { %16625 = vst [vmem:[#allocation58_spill] sm:$0xff] %v13696_v30  ;;  %v2922_v57 = vmul.f32 0.03125, %v2877_v51  ;;  %v13701_v20 = vmul.f32 %v13576_v27, %v3009_v61  ;;  %11442 = vrsqrt.f32 %v2952_v43  ;;  %v16104_v5 = vand.u32 4294901760, %v13688_v60  ;;  %10400 = vmatprep.subr.bf16.mxu1 %v13493_v16 }
 0x393   : > { %v3237_v50 = vsub.f32 %v13681_v39, %v16100_v6  ;;  %v11433_v35 = vpop.eup %11432  ;;  %v13709_v8 = vmul.f32 %v13576_v27, %v3010_v4  ;;  %v2953_v53 = vadd.f32 1e-05, %v2921_v9  ;;  %v13713_v21 = vsub.f32 %v13675_v24, %v13693_v14 }
 0x394   : > { %v2954_v41 = vadd.f32 1e-05, %v2922_v57  ;;  %v11435_v61 = vpop.eup %11434  ;;  %v3011_v43 = vmul.f32 %v11433_v35, %v13234_v7  ;;  %v2879_v51 = vpop.xlane.xlu1 %2878  ;;  %v3247_v6 = vsub.f32 %v13688_v60, %v16104_v5  ;;  %v13720_v55 = vand.u32 4294901760, %v13696_v30 }
 0x395   : > { %v3238_v15 = vand.u32 4294901760, %v3237_v50  ;;  %v2881_v36 = vpop.xlane.xlu0 %2880  ;;  %v3012_v4 = vmul.f32 %v11435_v61, %v13237_v0  ;;  %11444 = vrsqrt.f32 %v2953_v53  ;;  %v2923_v9 = vmul.f32 0.03125, %v2879_v51  ;;  %10402 = vmatpush3.bf16.msra.mxu1 %v13493_v16 }
 0x396   : > { %v2924_v57 = vmul.f32 0.03125, %v2881_v36  ;;  %v13725_v24 = vmul.f32 %v13576_v27, %v3011_v43  ;;  %11446 = vrsqrt.f32 %v2954_v41  ;;  %v3248_v7 = vand.u32 4294901760, %v3247_v6  ;;  %10404 = vmatprep.subr.bf16.mxu1 %v13598_v3 }
 0x397   : > { %9246 = vmatprep.mubr.f32.mxu1 %v3238_v15  ;;  %v16105_v50 = vand.u32 4294901760, %v13713_v21  ;;  %v11437_v35 = vpop.eup %11436  ;;  %v13730_v5 = vmul.f32 %v13576_v27, %v3012_v4  ;;  %v2955_v0 = vadd.f32 1e-05, %v2923_v9  ;;  %v13734_v36 = vsub.f32 %v13696_v30, %v13720_v55 }
 0x398   : > { %v2956_v53 = vadd.f32 1e-05, %v2924_v57  ;;  %v11439_v16 = vpop.eup %11438  ;;  %v3013_v61 = vmul.f32 %v11437_v35, %v13246_v48  ;;  %9247 = vmatmul.mubr.f32.gmra.mrb[34].mxu1 %v3248_v7  ;;  %v2883_v41 = vpop.xlane.xlu1 %2882  ;;  %v13742_v15 = vadd.f32 %v13592_v17, %v13662_v37  ;;  %v13745_v51 = vadd.f32 %v13592_v17, %v3046_v54 }
 0x399   : > { %v3257_v6 = vsub.f32 %v13713_v21, %v16105_v50  ;;  %v2885_v43 = vpop.xlane.xlu0 %2884  ;;  %v3014_v4 = vmul.f32 %v11439_v16, %v13249_v31  ;;  %11448 = vrsqrt.f32 %v2955_v0  ;;  %v2925_v9 = vmul.f32 0.03125, %v2883_v41  ;;  %10406 = vmatpush3.bf16.msra.mxu1 %v13598_v3 }
 0x39a   : > { %16626 = vst [vmem:[#allocation59_spill] sm:$0xff] %v13742_v15  ;;  %16627 = vst [vmem:[#allocation60_spill] sm:$0xff] %v13745_v51  ;;  %v16106_v48 = vand.u32 4294901760, %v13734_v36  ;;  %v13751_v57 = vmul.f32 %v13576_v27, %v3013_v61  ;;  %11450 = vrsqrt.f32 %v2956_v53  ;;  %v2926_v35 = vmul.f32 0.03125, %v2885_v43  ;;  %10408 = vmatprep.subr.bf16.mxu1 %v13601_v23 }
 0x39b   : > { %v3258_v7 = vand.u32 4294901760, %v3257_v6  ;;  %v11441_v37 = vpop.eup %11440  ;;  %v13755_v54 = vmul.f32 %v13576_v27, %v3014_v4  ;;  %v2957_v50 = vadd.f32 1e-05, %v2925_v9  ;;  %v13761_v0 = vand.u32 4294901760, %v13742_v15 }
 0x39c   : > { %v3267_v31 = vsub.f32 %v13734_v36, %v16106_v48  ;;  %v11443_v3 = vpop.eup %11442  ;;  %v3015_v16 = vmul.f32 %v11441_v37, %v13258_v13  ;;  %v2958_v53 = vadd.f32 1e-05, %v2926_v35  ;;  %v2887_v61 = vpop.xlane.xlu1 %2886  ;;  %v13765_v6 = vand.u32 4294901760, %v13745_v51 }
 0x39d   : > { %9249 = vmatprep.mubr.f32.mxu1 %v3258_v7  ;;  %v2889_v41 = vpop.xlane.xlu0 %2888  ;;  %v13769_v43 = vadd.f32 %v13592_v17, %v13684_v1  ;;  %v3016_v4 = vmul.f32 %v11443_v3, %v13261_v40  ;;  %11452 = vrsqrt.f32 %v2957_v50  ;;  %v13774_v48 = vsub.f32 %v13742_v15, %v13761_v0  ;;  %10410 = vmatpush3.bf16.msra.mxu1 %v13601_v23 }
 0x39e   : > { %v3268_v9 = vand.u32 4294901760, %v3267_v31  ;;  %v13778_v13 = vmul.f32 %v13576_v27, %v3015_v16  ;;  %11454 = vrsqrt.f32 %v2958_v53  ;;  %v2927_v7 = vmul.f32 0.03125, %v2887_v61  ;;  %10412 = vmatprep.subr.bf16.mxu1 %v13603_v29 }
 0x39f   : > { %16628 = vst [vmem:[#allocation61_spill] sm:$0xff] %v13769_v43  ;;  %v13782_v35 = vsub.f32 %v13745_v51, %v13765_v6  ;;  %v11445_v40 = vpop.eup %11444  ;;  %v13786_v1 = vmul.f32 %v13576_v27, %v3016_v4  ;;  %v16110_v50 = vand.u32 4294901760, %v13774_v48  ;;  %v2928_v37 = vmul.f32 0.03125, %v2889_v41 }
 0x3a0   : > { %9250 = vmatmul.mubr.f32.gmra.mrb[36].mxu1 %v3268_v9  ;;  %v13790_v23 = vand.u32 4294901760, %v13769_v43  ;;  %v11447_v31 = vpop.eup %11446  ;;  %v3017_v3 = vmul.f32 %v11445_v40, %v13282_v49  ;;  %v2959_v16 = vadd.f32 1e-05, %v2927_v7  ;;  %v2891_v61 = vpop.xlane.xlu1 %2890  ;;  %v13796_v15 = vadd.f32 %v13592_v17, %v13701_v20 }
 0x3a1   : > { %v16112_v53 = vand.u32 4294901760, %v13782_v35  ;;  %v2893_v4 = vpop.xlane.xlu0 %2892  ;;  %v3018_v9 = vmul.f32 %v11447_v31, %v13285_v18  ;;  %v3277_v41 = vsub.f32 %v13774_v48, %v16110_v50  ;;  %v2960_v51 = vadd.f32 1e-05, %v2928_v37  ;;  %10414 = vmatpush3.bf16.msra.mxu1 %v13603_v29 }
 0x3a2   : > { %16629 = vst [vmem:[#allocation62_spill] sm:$0xff] %v13790_v23  ;;  %16630 = vst [vmem:[#allocation63_spill] sm:$0xff] %v13796_v15  ;;  %v13804_v30 = vsub.f32 %v13769_v43, %v13790_v23  ;;  %v13808_v49 = vmul.f32 %v13576_v27, %v3017_v3  ;;  %11456 = vrsqrt.f32 %v2959_v16  ;;  %v2929_v18 = vmul.f32 0.03125, %v2891_v61  ;;  %10416 = vmatprep.subr.bf16.mxu1 %v13609_v33 }
 0x3a3   : > { %v3287_v20 = vsub.f32 %v13782_v35, %v16112_v53  ;;  %v11449_v7 = vpop.eup %11448  ;;  %v13815_v40 = vmul.f32 %v13576_v27, %v3018_v9  ;;  %v3278_v37 = vand.u32 4294901760, %v3277_v41  ;;  %11458 = vrsqrt.f32 %v2960_v51 }
 0x3a4   : > { %v16113_v31 = vand.u32 4294901760, %v13804_v30  ;;  %v11451_v29 = vpop.eup %11450  ;;  %v3019_v3 = vmul.f32 %v11449_v7, %v13302_v58  ;;  %v2961_v16 = vadd.f32 1e-05, %v2929_v18  ;;  %v13820_v43 = vand.u32 4294901760, %v13796_v15  ;;  %v2895_v53 = vpop.xlane.xlu1 %2894 }
 0x3a5   : > { %v3288_v50 = vand.u32 4294901760, %v3287_v20  ;;  %v3020_v61 = vmul.f32 %v11451_v29, %v13305_v45  ;;  %9252 = vmatprep.mubr.f32.mxu1 %v3278_v37  ;;  %v2930_v41 = vmul.f32 0.03125, %v2893_v4  ;;  %v13828_v51 = vadd.f32 %v13592_v17, %v13709_v8  ;;  %10418 = vmatpush3.bf16.msra.mxu1 %v13609_v33  ;;  %v2897_v18 = vpop.xlane.xlu0 %2896 }
 0x3a6   : > { %16631 = vst [vmem:[#allocation64_spill] sm:$0xff] %v13820_v43  ;;  %v3297_v9 = vsub.f32 %v13804_v30, %v16113_v31  ;;  %v13832_v58 = vmul.f32 %v13576_v27, %v3019_v3  ;;  %11460 = vrsqrt.f32 %v2961_v16  ;;  %v13836_v45 = vsub.f32 %v13796_v15, %v13820_v43  ;;  %10420 = vmatprep.subr.bf16.mxu1 %v13611_v62 }
 0x3a7   : > { %16632 = vst [vmem:[#allocation65_spill] sm:$0xff] %v13828_v51  ;;  %9253 = vmatmul.mubr.f32.gmra.mrb[38].mxu1 %v3288_v50  ;;  %v2931_v20 = vmul.f32 0.03125, %v2895_v53  ;;  %v11453_v4 = vpop.eup %11452  ;;  %v13840_v7 = vmul.f32 %v13576_v27, %v3020_v61  ;;  %v2962_v37 = vadd.f32 1e-05, %v2930_v41  ;;  %v13843_v33 = vand.u32 4294901760, %v13828_v51 }
 0x3a8   : > { %16633 = vst [vmem:[#allocation66_spill] sm:$0xff] %v13836_v45  ;;  %v3298_v8 = vand.u32 4294901760, %v3297_v9  ;;  %v11455_v29 = vpop.eup %11454  ;;  %v3021_v50 = vmul.f32 %v11453_v4, %v13327_v2  ;;  %v16114_v3 = vand.u32 4294901760, %v13836_v45  ;;  %v13849_v53 = vadd.f32 %v13592_v17, %v13725_v24  ;;  %v2899_v41 = vpop.xlane.xlu1 %2898 }
 0x3a9   : > { %16634 = vst [vmem:[#allocation67_spill] sm:$0xff] %v13843_v33  ;;  %v2963_v16 = vadd.f32 1e-05, %v2931_v20  ;;  %v3022_v31 = vmul.f32 %v11455_v29, %v13330_v63  ;;  %11462 = vrsqrt.f32 %v2962_v37  ;;  %v13854_v61 = vsub.f32 %v13828_v51, %v13843_v33  ;;  %10422 = vmatpush3.bf16.msra.mxu1 %v13611_v62 }
 0x3aa   : > { %16635 = vst [vmem:[#allocation68_spill] sm:$0xff] %v13849_v53  ;;  %9255 = vmatprep.mubr.f32.mxu1 %v3298_v8  ;;  %v2932_v9 = vmul.f32 0.03125, %v2897_v18  ;;  %v13858_v2 = vmul.f32 %v13576_v27, %v3021_v50  ;;  %v3307_v24 = vsub.f32 %v13836_v45, %v16114_v3  ;;  %v13864_v63 = vand.u32 4294901760, %v13849_v53  ;;  %10424 = vmatprep.subr.bf16.mxu1 %v13618_v19 }
 0x3ab   : > { %16636 = vst [vmem:[#allocation69_spill] sm:$0xff] %v13854_v61  ;;  %11464 = vrsqrt.f32 %v2963_v16  ;;  %v13868_v20 = vmul.f32 %v13576_v27, %v3022_v31  ;;  %v13873_v62 = vadd.f32 %v13592_v17, %v13730_v5  ;;  %v2933_v50 = vmul.f32 0.03125, %v2899_v41  ;;  %v2901_v31 = vpop.xlane.xlu0 %2900 }
 0x3ac   : > { %16637 = vst [vmem:[#allocation70_spill] sm:$0xff] %v13864_v63  ;;  %v2964_v4 = vadd.f32 1e-05, %v2932_v9  ;;  %v11457_v8 = vpop.eup %11456  ;;  %v3308_v37 = vand.u32 4294901760, %v3307_v24  ;;  %v13877_v29 = vsub.f32 %v13849_v53, %v13864_v63  ;;  %v13881_v16 = vadd.f32 %v13592_v17, %v13751_v57 }
 0x3ad   : > { %16638 = vst [vmem:[#allocation71_spill] sm:$0xff] %v13873_v62  ;;  %v11459_v3 = vpop.eup %11458  ;;  %v3023_v18 = vmul.f32 %v11457_v8, %v13353_v22  ;;  %v16641_v9 = vand.u32 4294901760, %v13854_v61  ;;  %v13888_v24 = vand.u32 4294901760, %v13873_v62  ;;  %10426 = vmatpush3.bf16.msra.mxu1 %v13618_v19  ;;  %v2965_v51 = vadd.f32 1e-05, %v2933_v50 }
 0x3ae   : > { %16639 = vst [vmem:[#allocation72_spill] sm:$0xff] %v13877_v29  ;;  %16640 = vst [vmem:[#allocation73_spill] sm:$0xff] %v13881_v16  ;;  %11466 = vrsqrt.f32 %v2964_v4  ;;  %v3024_v41 = vmul.f32 %v11459_v3, %v13356_v47  ;;  %9256 = vmatmul.mubr.f32.gmra.mrb[40].mxu1 %v3308_v37  ;;  %v16120_v57 = vand.u32 4294901760, %v13877_v29  ;;  %v13894_v53 = vand.u32 4294901760, %v13881_v16  ;;  %10428 = vmatprep.subr.bf16.mxu1 %v13635_v10 }
 0x3af   : > { %v3317_v5 = vsub.f32 %v13854_v61, %v16641_v9  ;;  %16642 = vst [vmem:[#allocation74_spill] sm:$0xff] %v13888_v24  ;;  %v13898_v22 = vmul.f32 %v13576_v27, %v3023_v18  ;;  %v13902_v8 = vsub.f32 %v13873_v62, %v13888_v24  ;;  %v2934_v19 = vmul.f32 0.03125, %v2901_v31  ;;  %v2903_v9 = vpop.xlane.xlu1 %2902 }
 0x3b0   : > { %16643 = vst [vmem:[#allocation75_spill] sm:$0xff] %v13894_v53  ;;  %v11461_v47 = vpop.eup %11460  ;;  %v13905_v3 = vmul.f32 %v13576_v27, %v3024_v41  ;;  %v3327_v37 = vsub.f32 %v13877_v29, %v16120_v57  ;;  %11468 = vrsqrt.f32 %v2965_v51  ;;  %v13912_v18 = vsub.f32 %v13881_v16, %v13894_v53 }
 0x3b1   : > { %v3318_v4 = vand.u32 4294901760, %v3317_v5  ;;  %16644 = vst [vmem:[#allocation76_spill] sm:$0xff] %v13902_v8  ;;  %v3025_v50 = vmul.f32 %v11461_v47, %v13373_v11  ;;  %v16124_v5 = vand.u32 4294901760, %v13902_v8  ;;  %v2966_v31 = vadd.f32 1e-05, %v2934_v19  ;;  %v16649_v19 = vld [vmem:[#allocation27_spill] sm:$0xff] }
 0x3b2   : > { %16645 = vst [vmem:[#allocation77_spill] sm:$0xff] %v13912_v18  ;;  %v13918_v62 = vadd.f32 %v13592_v17, %v13755_v54  ;;  %v3328_v41 = vand.u32 4294901760, %v3327_v37  ;;  %v16125_v15 = vand.u32 4294901760, %v13912_v18  ;;  %v2935_v25 = vmul.f32 0.03125, %v2903_v9 }
 0x3b3   : > { %9258 = vmatprep.mubr.f32.mxu1 %v3318_v4  ;;  %v13923_v51 = vadd.f32 %v13592_v17, %v13778_v13  ;;  %v11463_v57 = vpop.eup %11462  ;;  %v13926_v16 = vmul.f32 %v13576_v27, %v3025_v50  ;;  %v3337_v11 = vsub.f32 %v13902_v8, %v16124_v5  ;;  %11470 = vrsqrt.f32 %v2966_v31  ;;  %v16651_v50 = vld [vmem:[#allocation42_spill] sm:$0xff] }
 0x3b4   : > { %16646 = vst [vmem:[#allocation78_spill] sm:$0xff] %v13918_v62  ;;  %v13932_v54 = vand.u32 4294901760, %v13918_v62  ;;  %v3026_v47 = vmul.f32 %v11463_v57, %v16649_v19  ;;  %9259 = vmatmul.mubr.f32.gmra.mrb[42].mxu1 %v3328_v41  ;;  %v3347_v13 = vsub.f32 %v13912_v18, %v16125_v15  ;;  %v2967_v9 = vadd.f32 1e-05, %v2935_v25 }
 0x3b5   : > { %16647 = vst [vmem:[#allocation79_spill] sm:$0xff] %v13923_v51  ;;  %v11465_v4 = vpop.eup %11464  ;;  %v13939_v37 = vand.u32 4294901760, %v13923_v51  ;;  %v3338_v34 = vand.u32 4294901760, %v3337_v11  ;;  %v13948_v5 = vadd.f32 %v13592_v17, %v13786_v1  ;;  %v13966_v1 = vadd.f32 %v13592_v17, %v13808_v49 }
 0x3b6   : > { %16648 = vst [vmem:[#allocation80_spill] sm:$0xff] %v13932_v54  ;;  %v3027_v44 = vmul.f32 %v11465_v4, %v16651_v50  ;;  %v13944_v31 = vsub.f32 %v13918_v62, %v13932_v54  ;;  %v13951_v57 = vmul.f32 %v13576_v27, %v3026_v47  ;;  %v3348_v41 = vand.u32 4294901760, %v3347_v13  ;;  %v16657_v47 = vld [vmem:[#allocation45_spill] sm:$0xff]  ;;  %v16665_v62 = vld [vmem:[#allocation30_spill] sm:$0xff] }
 0x3b7   : > { %16650 = vst [vmem:[#allocation27_spill] sm:$0xff] %v13939_v37  ;;  %16653 = vst [vmem:[#allocation81_spill] sm:$0xff] %v13948_v5  ;;  %11472 = vrsqrt.f32 %v2967_v9  ;;  %v13955_v25 = vsub.f32 %v13923_v51, %v13939_v37  ;;  %9261 = vmatprep.mubr.f32.mxu1 %v3338_v34  ;;  %v13962_v50 = vand.u32 4294901760, %v13948_v5  ;;  %v13972_v15 = vadd.f32 %v13592_v17, %v13815_v40 }
 0x3b8   : > { %16652 = vst [vmem:[#allocation42_spill] sm:$0xff] %v13944_v31  ;;  %v11467_v19 = vpop.eup %11466  ;;  %v13958_v11 = vmul.f32 %v13576_v27, %v3027_v44  ;;  %v16126_v4 = vand.u32 4294901760, %v13944_v31  ;;  %16656 = vst [vmem:[#allocation84_spill] sm:$0xff] %v13966_v1  ;;  %9262 = vmatmul.mubr.f32.gmra.mrb[44].mxu1 %v3348_v41  ;;  %v13976_v44 = vadd.f32 %v13592_v17, %v13832_v58  ;;  %v13986_v41 = vand.u32 4294901760, %v13966_v1 }
 0x3b9   : > { %16654 = vst [vmem:[#allocation82_spill] sm:$0xff] %v13955_v25  ;;  %16655 = vst [vmem:[#allocation83_spill] sm:$0xff] %v13962_v50  ;;  %v3028_v13 = vmul.f32 %v11467_v19, %v16657_v47  ;;  %v16134_v9 = vand.u32 4294901760, %v13955_v25  ;;  %v13983_v49 = vsub.f32 %v13948_v5, %v13962_v50  ;;  %v13990_v19 = vadd.f32 %v13592_v17, %v13840_v7 }
 0x3ba   : > { %16658 = vst [vmem:[#allocation45_spill] sm:$0xff] %v13972_v15  ;;  %16659 = vst [vmem:[#allocation85_spill] sm:$0xff] %v13976_v44  ;;  %v3357_v34 = vsub.f32 %v13944_v31, %v16126_v4  ;;  %v11469_v40 = vpop.eup %11468  ;;  %v13997_v4 = vand.u32 4294901760, %v13972_v15  ;;  %v14000_v5 = vand.u32 4294901760, %v13976_v44  ;;  %v14006_v7 = vsub.f32 %v13966_v1, %v13986_v41  ;;  %v16669_v1 = vld [vmem:[#allocation47_spill] sm:$0xff] }
 0x3bb   : > { %16660 = vst [vmem:[#allocation86_spill] sm:$0xff] %v13983_v49  ;;  %16661 = vst [vmem:[#allocation87_spill] sm:$0xff] %v13986_v41  ;;  %v3067_v47 = vmul.f32 %v13576_v27, %v3028_v13  ;;  %v3367_v58 = vsub.f32 %v13955_v25, %v16134_v9  ;;  %v3029_v51 = vmul.f32 %v11469_v40, %v16665_v62  ;;  %v16144_v12 = vand.u32 4294901760, %v13983_v49 }
 0x3bc   : > { %16662 = vst [vmem:[#allocation88_spill] sm:$0xff] %v13990_v19  ;;  %16663 = vst [vmem:[#allocation89_spill] sm:$0xff] %v13997_v4  ;;  %v3358_v52 = vand.u32 4294901760, %v3357_v34  ;;  %v14010_v31 = vsub.f32 %v13972_v15, %v13997_v4  ;;  %v14014_v9 = vsub.f32 %v13976_v44, %v14000_v5  ;;  %v14017_v25 = vand.u32 4294901760, %v13990_v19 }
 0x3bd   : > { %16664 = vst [vmem:[#allocation90_spill] sm:$0xff] %v14000_v5  ;;  %16666 = vst [vmem:[#allocation30_spill] sm:$0xff] %v14006_v7  ;;  %v3368_v13 = vand.u32 4294901760, %v3367_v58  ;;  %v11471_v62 = vpop.eup %11470  ;;  %v3068_v34 = vmul.f32 %v13576_v27, %v3029_v51  ;;  %v3377_v40 = vsub.f32 %v13983_v49, %v16144_v12  ;;  %v16147_v58 = vand.u32 4294901760, %v14006_v7 }
 0x3be   : > { %16667 = vst [vmem:[#allocation91_spill] sm:$0xff] %v14017_v25  ;;  %9264 = vmatprep.mubr.f32.mxu1 %v3358_v52  ;;  %v14026_v15 = vadd.f32 %v13592_v17, %v13858_v2  ;;  %v3030_v44 = vmul.f32 %v11471_v62, %v16669_v1  ;;  %v16157_v18 = vand.u32 4294901760, %v14010_v31  ;;  %v16158_v8 = vand.u32 4294901760, %v14014_v9 }
 0x3bf   : > { %9265 = vmatmul.mubr.f32.gmra.mrb[46].mxu1 %v3368_v13  ;;  %v14033_v52 = vsub.f32 %v13990_v19, %v14017_v25  ;;  %v3378_v51 = vand.u32 4294901760, %v3377_v40  ;;  %v3387_v12 = vsub.f32 %v14006_v7, %v16147_v58  ;;  %v14043_v2 = vadd.f32 %v13592_v17, %v13868_v20  ;;  %v16673_v19 = vld [vmem:[#allocation48_spill] sm:$0xff] }
 0x3c0   : > { %16668 = vst [vmem:[#allocation92_spill] sm:$0xff] %v14026_v15  ;;  %v14039_v49 = vand.u32 4294901760, %v14026_v15  ;;  %v3069_v13 = vmul.f32 %v13576_v27, %v3030_v44  ;;  %v3397_v62 = vsub.f32 %v14010_v31, %v16157_v18  ;;  %v3407_v40 = vsub.f32 %v14014_v9, %v16158_v8 }
 0x3c1   : > { %16670 = vst [vmem:[#allocation47_spill] sm:$0xff] %v14033_v52  ;;  %16672 = vst [vmem:[#allocation94_spill] sm:$0xff] %v14043_v2  ;;  %v11473_v1 = vpop.eup %11472  ;;  %v16160_v58 = vand.u32 4294901760, %v14033_v52  ;;  %9267 = vmatprep.mubr.f32.mxu1 %v3378_v51  ;;  %v3388_v29 = vand.u32 4294901760, %v3387_v12  ;;  %v14059_v44 = vand.u32 4294901760, %v14043_v2  ;;  %v14066_v8 = vadd.f32 %v13592_v17, %v13898_v22 }
 0x3c2   : > { %16671 = vst [vmem:[#allocation93_spill] sm:$0xff] %v14039_v49  ;;  %v3031_v7 = vmul.f32 %v11473_v1, %v16673_v19  ;;  %v14056_v20 = vsub.f32 %v14026_v15, %v14039_v49  ;;  %v3398_v61 = vand.u32 4294901760, %v3397_v62  ;;  %v3408_v45 = vand.u32 4294901760, %v3407_v40 }
 0x3c3   : > { %16675 = vst [vmem:[#allocation95_spill] sm:$0xff] %v14059_v44  ;;  %v3417_v18 = vsub.f32 %v14033_v52, %v16160_v58  ;;  %16676 = vst [vmem:[#allocation96_spill] sm:$0xff] %v14066_v8  ;;  %9268 = vmatmul.mubr.f32.gmra.mrb[48].mxu1 %v3388_v29  ;;  %v14072_v51 = vsub.f32 %v14043_v2, %v14059_v44  ;;  %v14076_v1 = vadd.f32 %v13592_v17, %v13905_v3 }
 0x3c4   : > { %16674 = vst [vmem:[#allocation48_spill] sm:$0xff] %v14056_v20  ;;  %v3070_v19 = vmul.f32 %v13576_v27, %v3031_v7  ;;  %v16159_v12 = vand.u32 4294901760, %v14056_v20  ;;  %9270 = vmatprep.mubr.f32.mxu1 %v3398_v61  ;;  %v14079_v40 = vand.u32 4294901760, %v14066_v8  ;;  %v14083_v22 = vadd.f32 %v13592_v17, %v13926_v16 }
 0x3c5   : > { %16677 = vst [vmem:[#allocation97_spill] sm:$0xff] %v14072_v51  ;;  %16678 = vst [vmem:[#allocation98_spill] sm:$0xff] %v14076_v1  ;;  %v3418_v62 = vand.u32 4294901760, %v3417_v18  ;;  %v14087_v27 = vadd.f32 %v13592_v17, %v13951_v57  ;;  %v16164_v3 = vand.u32 4294901760, %v14072_v51  ;;  %v14094_v61 = vand.u32 4294901760, %v14076_v1 }
 0x3c6   : > { %16679 = vst [vmem:[#allocation99_spill] sm:$0xff] %v14079_v40  ;;  %16680 = vst [vmem:[#allocation100_spill] sm:$0xff] %v14083_v22  ;;  %v3427_v29 = vsub.f32 %v14056_v20, %v16159_v12  ;;  %v14098_v18 = vadd.f32 %v13592_v17, %v13958_v11  ;;  %v14102_v16 = vsub.f32 %v14066_v8, %v14079_v40  ;;  %v14105_v57 = vand.u32 4294901760, %v14083_v22 }
 0x3c7   : > { %16681 = vst [vmem:[#allocation101_spill] sm:$0xff] %v14087_v27  ;;  %16682 = vst [vmem:[#allocation102_spill] sm:$0xff] %v14094_v61  ;;  %v14108_v7 = vand.u32 4294901760, %v14087_v27  ;;  %v14111_v12 = vadd.f32 %v13592_v17, %v3067_v47  ;;  %9271 = vmatmul.mubr.f32.gmra.mrb[50].mxu1 %v3408_v45  ;;  %v3437_v11 = vsub.f32 %v14072_v51, %v16164_v3 }
 0x3c8   : > { %16683 = vst [vmem:[#allocation103_spill] sm:$0xff] %v14098_v18  ;;  %16684 = vst [vmem:[#allocation104_spill] sm:$0xff] %v14102_v16  ;;  %v3428_v58 = vand.u32 4294901760, %v3427_v29  ;;  %v14118_v2 = vsub.f32 %v14076_v1, %v14094_v61  ;;  %v14121_v8 = vand.u32 4294901760, %v14098_v18  ;;  %9273 = vmatprep.mubr.f32.mxu1 %v3418_v62  ;;  %v16175_v15 = vand.u32 4294901760, %v14102_v16 }
 0x3c9   : > { %16685 = vst [vmem:[#allocation105_spill] sm:$0xff] %v14105_v57  ;;  %16686 = vst [vmem:[#allocation106_spill] sm:$0xff] %v14108_v7  ;;  %v14126_v47 = vsub.f32 %v14083_v22, %v14105_v57  ;;  %v14130_v45 = vsub.f32 %v14087_v27, %v14108_v7  ;;  %v14133_v29 = vand.u32 4294901760, %v14111_v12  ;;  %v3438_v3 = vand.u32 4294901760, %v3437_v11 }
 0x3ca   : > { %16687 = vst [vmem:[#allocation107_spill] sm:$0xff] %v14111_v12  ;;  %16688 = vst [vmem:[#allocation108_spill] sm:$0xff] %v14118_v2  ;;  %v16179_v1 = vand.u32 4294901760, %v14118_v2  ;;  %v14138_v51 = vsub.f32 %v14098_v18, %v14121_v8  ;;  %v14141_v62 = vadd.f32 %v13592_v17, %v3068_v34  ;;  %v3447_v22 = vsub.f32 %v14102_v16, %v16175_v15 }
 0x3cb   : > { %16689 = vst [vmem:[#allocation109_spill] sm:$0xff] %v14121_v8  ;;  %16690 = vst [vmem:[#allocation110_spill] sm:$0xff] %v14126_v47  ;;  %v14150_v11 = vsub.f32 %v14111_v12, %v14133_v29  ;;  %9274 = vmatmul.mubr.f32.gmra.mrb[52].mxu1 %v3428_v58  ;;  %v14160_v15 = vadd.f32 %v13592_v17, %v3069_v13  ;;  %v16696_v20 = vand.u32 4294901760, %v14126_v47  ;;  %v16697_v58 = vand.u32 4294901760, %v14130_v45 }
 0x3cc   : > { %16691 = vst [vmem:[#allocation111_spill] sm:$0xff] %v14130_v45  ;;  %16692 = vst [vmem:[#allocation112_spill] sm:$0xff] %v14133_v29  ;;  %v3457_v18 = vsub.f32 %v14118_v2, %v16179_v1  ;;  %v14157_v52 = vand.u32 4294901760, %v14141_v62  ;;  %9276 = vmatprep.mubr.f32.mxu1 %v3438_v3  ;;  %v3448_v27 = vand.u32 4294901760, %v3447_v22  ;;  %v14177_v22 = vadd.f32 %v13592_v17, %v3070_v19 }
 0x3cd   : > { %16693 = vst [vmem:[#allocation113_spill] sm:$0xff] %v14141_v62  ;;  %16695 = vst [vmem:[#allocation115_spill] sm:$0xff] %v14160_v15  ;;  %v3467_v12 = vsub.f32 %v14126_v47, %v16696_v20  ;;  %v3477_v16 = vsub.f32 %v14130_v45, %v16697_v58  ;;  %v14174_v13 = vand.u32 4294901760, %v14160_v15  ;;  %v16700_v20 = vand.u32 4294901760, %v14138_v51 }
 0x3ce   : > { %16694 = vst [vmem:[#allocation114_spill] sm:$0xff] %v14157_v52  ;;  %v3458_v2 = vand.u32 4294901760, %v3457_v18  ;;  %v14171_v34 = vsub.f32 %v14141_v62, %v14157_v52  ;;  %16699 = vst [vmem:[#allocation117_spill] sm:$0xff] %v14177_v22  ;;  %v16701_v62 = vand.u32 4294901760, %v14150_v11  ;;  %v14191_v17 = vand.u32 4294901760, %v14177_v22 }
 0x3cf   : > { %16698 = vst [vmem:[#allocation116_spill] sm:$0xff] %v14174_v13  ;;  %9277 = vmatmul.mubr.f32.gmra.mrb[54].mxu1 %v3448_v27  ;;  %v3468_v3 = vand.u32 4294901760, %v3467_v12  ;;  %v3487_v47 = vsub.f32 %v14138_v51, %v16700_v20  ;;  %v14185_v18 = vsub.f32 %v14160_v15, %v14174_v13  ;;  %v3478_v1 = vand.u32 4294901760, %v3477_v16 }
 0x3d0   : > { %v16191_v58 = vand.u32 4294901760, %v14171_v34  ;;  %9279 = vmatprep.mubr.f32.mxu1 %v3458_v2  ;;  %v3497_v45 = vsub.f32 %v14150_v11, %v16701_v62  ;;  %16702 = vst [vmem:[#allocation118_spill] sm:$0xff] %v14191_v17  ;;  %v14196_v12 = vsub.f32 %v14177_v22, %v14191_v17 }
 0x3d1   : > { %v16190_v19 = vand.u32 4294901760, %v14185_v18  ;;  %v3488_v27 = vand.u32 4294901760, %v3487_v47 }
 0x3d2   : > { %v3507_v2 = vsub.f32 %v14171_v34, %v16191_v58  ;;  %v3498_v16 = vand.u32 4294901760, %v3497_v45  ;;  %v16189_v20 = vand.u32 4294901760, %v14196_v12  ;;  %v16706_v45 = vld [vmem:[#allocation43_spill] sm:$0xff]  ;;  %v16720_v58 = vld [vmem:[#allocation76_spill] sm:$0xff] }
 0x3d3   : > { %9280 = vmatmul.mubr.f32.gmra.mrb[56].mxu1 %v3468_v3  ;;  %v3517_v62 = vsub.f32 %v14185_v18, %v16190_v19  ;;  %v16719_v19 = vld [vmem:[#allocation72_spill] sm:$0xff] }
 0x3d4   : > { %9282 = vmatprep.mubr.f32.mxu1 %v3478_v1  ;;  %v3508_v15 = vand.u32 4294901760, %v3507_v2  ;;  %v3527_v22 = vsub.f32 %v14196_v12, %v16189_v20  ;;  %v16703_v1 = vld [vmem:[#allocation35_spill] sm:$0xff]  ;;  %v16708_v2 = vld [vmem:[#allocation46_spill] sm:$0xff]  ;;  %v16718_v20 = vld [vmem:[#allocation37_spill] sm:$0xff] }
 0x3d5   : > { %v3518_v47 = vand.u32 4294901760, %v3517_v62  ;;  %v16710_v62 = vld [vmem:[#allocation51_spill] sm:$0xff] }
 0x3d6   : > { %v3528_v3 = vand.u32 4294901760, %v3527_v22 }
 0x3d7   : > { %9283 = vmatmul.mubr.f32.gmra.mrb[58].mxu1 %v3488_v27  ;;  %v16707_v27 = vld [vmem:[#allocation44_spill] sm:$0xff] }
 0x3d8   : > { %9285 = vmatprep.mubr.f32.mxu1 %v3498_v16  ;;  %v10451_v16 = vpack.c.bf16 %v16708_v2, %v16707_v27 }
 0x3db   : > { %9286 = vmatmul.mubr.f32.gmra.mrb[60].mxu1 %v3508_v15  ;;  %v16704_v15 = vld [vmem:[#allocation52_spill] sm:$0xff] }
 0x3dc   : > { %9288 = vmatprep.mubr.f32.mxu1 %v3518_v47 }
 0x3df   : > { %9289 = vmatmul.mubr.f32.gmra.mrb[62].mxu1 %v3528_v3  ;;  %v16712_v3 = vld [vmem:[#allocation21_spill] sm:$0xff] }
 0x3e0   : > { %9323 = vmatprep.mubr.f32.mxu1 %v13616_v42 }
 0x3e3   : > { %9324 = vmatmul.mubr.f32.vlgmr.msra.gmra.mrb[32].mxu1 %v13639_v28 }
 0x3e4   : > { %9326 = vmatprep.mubr.f32.mxu1 %v13665_v46  ;;  %10430 = vmatpush3.bf16.msra.mxu1 %v13635_v10  ;;  %v16705_v10 = vld [vmem:[#allocation41_spill] sm:$0xff] }
 0x3e5   : > { %10432 = vmatprep.subr.bf16.mxu1 %v16703_v1  ;;  %v10447_v22 = vpack.c.bf16 %v16706_v45, %v16705_v10 }
 0x3e7   : > { %9327 = vmatmul.mubr.f32.gmra.mrb[34].mxu1 %v13672_v59 }
 0x3e8   : > { %9329 = vmatprep.mubr.f32.mxu1 %v13693_v14  ;;  %10434 = vmatpush3.bf16.msra.mxu1 %v16703_v1  ;;  %v16713_v1 = vld [vmem:[#allocation32_spill] sm:$0xff] }
 0x3e9   : > { %10436 = vmatprep.subr.bf16.mxu1 %v16704_v15 }
 0x3eb   : > { %9330 = vmatmul.mubr.f32.gmra.mrb[36].mxu1 %v13720_v55 }
 0x3ec   : > { %9332 = vmatprep.mubr.f32.mxu1 %v13761_v0  ;;  %10438 = vmatpush3.bf16.msra.mxu1 %v16704_v15  ;;  %v16714_v15 = vld [vmem:[#allocation34_spill] sm:$0xff] }
 0x3ed   : > { %10440 = vmatprep.subr.bf16.mxu1 %v13586_v56 }
 0x3ef   : > { %9333 = vmatmul.mubr.f32.gmra.mrb[38].mxu1 %v13765_v6 }
 0x3f0   : > { %9335 = vmatprep.mubr.f32.mxu1 %v13790_v23  ;;  %10442 = vmatpush3.bf16.msra.mxu1 %v13586_v56  ;;  %v16709_v56 = vld [vmem:[#allocation50_spill] sm:$0xff] }
 0x3f1   : > { %10444 = vmatprep.subr.bf16.mxu1 %v13623_v38  ;;  %v10455_v47 = vpack.c.bf16 %v16710_v62, %v16709_v56 }
 0x3f3   : > { %9336 = vmatmul.mubr.f32.gmra.mrb[40].mxu1 %v13820_v43  ;;  %v16748_v43 = vld [vmem:[#allocation28_spill] sm:$0xff] }
 0x3f4   : > { %9338 = vmatprep.mubr.f32.mxu1 %v13843_v33  ;;  %10446 = vmatpush3.bf16.msra.mxu1 %v13623_v38  ;;  %v16711_v38 = vld [vmem:[#allocation31_spill] sm:$0xff] }
 0x3f5   : > { %10448 = vmatprep.subr.bf16.mxu1 %v10447_v22 }
 0x3f7   : > { %9339 = vmatmul.mubr.f32.gmra.mrb[42].mxu1 %v13864_v63  ;;  %v16745_v63 = vand.u32 4294901760, %v13681_v39 }
 0x3f8   : > { %9341 = vmatprep.mubr.f32.mxu1 %v13888_v24  ;;  %10450 = vmatpush3.bf16.msra.mxu1 %v10447_v22  ;;  %v16715_v22 = vld [vmem:[#allocation22_spill] sm:$0xff]  ;;  %v16744_v24 = vand.u32 4294901760, %v13653_v26 }
 0x3f9   : > { %10452 = vmatprep.subr.bf16.mxu1 %v10451_v16 }
 0x3fb   : > { %9342 = vmatmul.mubr.f32.gmra.mrb[44].mxu1 %v13894_v53 }
 0x3fc   : > { %9344 = vmatprep.mubr.f32.mxu1 %v13932_v54  ;;  %10454 = vmatpush3.bf16.msra.mxu1 %v10451_v16  ;;  %v16716_v16 = vld [vmem:[#allocation66_spill] sm:$0xff]  ;;  %v16742_v54 = vld [vmem:[#allocation25_spill] sm:$0xff] }
 0x3fd   : > { %10456 = vmatprep.subr.bf16.mxu1 %v10455_v47  ;;  %v16743_v53 = vand.u32 4294901760, %v16742_v54  ;;  %v16756_v54 = vand.u32 4294901760, %v13734_v36 }
 0x3ff   : > { %9345 = vmatmul.mubr.f32.gmra.mrb[46].mxu1 %v13939_v37  ;;  %v16740_v37 = vld [vmem:[#allocation23_spill] sm:$0xff] }
 0x400   : > { %9347 = vmatprep.mubr.f32.mxu1 %v13962_v50  ;;  %10458 = vmatpush3.bf16.msra.mxu1 %v10455_v47  ;;  %v16717_v47 = vld [vmem:[#allocation69_spill] sm:$0xff]  ;;  %v16739_v50 = vand.u32 4294901760, %v13631_v32 }
 0x401   : > { %10460 = vmatprep.subr.bf16.mxu1 %v16711_v38 }
 0x403   : > { %9348 = vmatmul.mubr.f32.gmra.mrb[48].mxu1 %v13986_v41  ;;  %v16738_v41 = vld [vmem:[#allocation111_spill] sm:$0xff] }
 0x404   : > { %9350 = vmatprep.mubr.f32.mxu1 %v13997_v4  ;;  %v16733_v4 = vld [vmem:[#allocation48_spill] sm:$0xff] }
 0x407   : > { %9351 = vmatmul.mubr.f32.gmra.mrb[50].mxu1 %v14000_v5  ;;  %v16732_v5 = vld [vmem:[#allocation47_spill] sm:$0xff] }
 0x408   : > { %9353 = vmatprep.mubr.f32.mxu1 %v14017_v25  ;;  %v16731_v25 = vld [vmem:[#allocation30_spill] sm:$0xff] }
 0x40b   : > { %9354 = vmatmul.mubr.f32.gmra.mrb[52].mxu1 %v14039_v49  ;;  %v16730_v49 = vld [vmem:[#allocation86_spill] sm:$0xff] }
 0x40c   : > { %9356 = vmatprep.mubr.f32.mxu1 %v14059_v44  ;;  %v16729_v44 = vld [vmem:[#allocation82_spill] sm:$0xff] }
 0x40f   : > { %9357 = vmatmul.mubr.f32.gmra.mrb[54].mxu1 %v14079_v40 }
 0x410   : > { %9359 = vmatprep.mubr.f32.mxu1 %v14094_v61 }
 0x413   : > { %9360 = vmatmul.mubr.f32.gmra.mrb[56].mxu1 %v14105_v57  ;;  %v16727_v57 = vld [vmem:[#allocation20_spill] sm:$0xff] }
 0x414   : > { %9362 = vmatprep.mubr.f32.mxu1 %v14108_v7  ;;  %v16728_v61 = vand.u32 4294901760, %v16727_v57  ;;  %v16736_v57 = vld [vmem:[#allocation108_spill] sm:$0xff] }
 0x417   : > { %9363 = vmatmul.mubr.f32.gmra.mrb[58].mxu1 %v14121_v8  ;;  %v16725_v8 = vld [vmem:[#allocation49_spill] sm:$0xff] }
 0x418   : > { %9365 = vmatprep.mubr.f32.mxu1 %v14133_v29  ;;  %v16724_v29 = vld [vmem:[#allocation40_spill] sm:$0xff]  ;;  %v16726_v7 = vand.u32 4294901760, %v16725_v8  ;;  %v16734_v8 = vld [vmem:[#allocation97_spill] sm:$0xff] }
 0x41a   : > { %v10491_v40 = vpack.c.bf16 %v16728_v61, %v16726_v7  ;;  %v16735_v61 = vld [vmem:[#allocation104_spill] sm:$0xff]  ;;  %v16737_v7 = vld [vmem:[#allocation110_spill] sm:$0xff] }
 0x41b   : > { %9366 = vmatmul.mubr.f32.gmra.mrb[60].mxu1 %v14157_v52  ;;  %v16723_v52 = vld [vmem:[#allocation42_spill] sm:$0xff] }
 0x41c   : > { %9368 = vmatprep.mubr.f32.mxu1 %v14174_v13  ;;  %v16722_v13 = vld [vmem:[#allocation77_spill] sm:$0xff] }
 0x41f   : > { %9369 = vmatmul.mubr.f32.gmra.mrb[62].mxu1 %v14191_v17  ;;  %v16721_v17 = vld [vmem:[#allocation24_spill] sm:$0xff] }
 0x420   : > { %9403 = vmatprep.mubr.f32.mxu1 %v13631_v32  ;;  %v16750_v32 = vand.u32 4294901760, %v13688_v60 }
 0x423   : > { %9404 = vmatmul.mubr.f32.vlgmr.msra.gmra.mrb[32].mxu1 %v13653_v26  ;;  %v16752_v26 = vld [vmem:[#allocation33_spill] sm:$0xff] }
 0x424   : > { %9406 = vmatprep.mubr.f32.mxu1 %v13681_v39  ;;  %10462 = vmatpush3.bf16.msra.mxu1 %v16711_v38 }
 0x425   : > { %10464 = vmatprep.subr.bf16.mxu1 %v16712_v3 }
 0x427   : > { %9407 = vmatmul.mubr.f32.gmra.mrb[34].mxu1 %v13688_v60  ;;  %v16758_v60 = vld [vmem:[#allocation38_spill] sm:$0xff] }
 0x428   : > { %9409 = vmatprep.mubr.f32.mxu1 %v13713_v21  ;;  %10466 = vmatpush3.bf16.msra.mxu1 %v16712_v3 }
 0x429   : > { %10468 = vmatprep.subr.bf16.mxu1 %v16713_v1 }
 0x42b   : > { %9410 = vmatmul.mubr.f32.gmra.mrb[36].mxu1 %v13734_v36  ;;  %v16764_v36 = vand.u32 4294901760, %v16705_v10  ;;  %v16771_v10 = vand.u32 4294901760, %v16720_v58 }
 0x42c   : > { %9412 = vmatprep.mubr.f32.mxu1 %v13774_v48  ;;  %10470 = vmatpush3.bf16.msra.mxu1 %v16713_v1 }
 0x42d   : > { %10472 = vmatprep.subr.bf16.mxu1 %v16714_v15 }
 0x42f   : > { %9413 = vmatmul.mubr.f32.gmra.mrb[38].mxu1 %v13782_v35 }
 0x430   : > { %9415 = vmatprep.mubr.f32.mxu1 %v13804_v30  ;;  %10474 = vmatpush3.bf16.msra.mxu1 %v16714_v15 }
 0x431   : > { %10476 = vmatprep.subr.bf16.mxu1 %v16715_v22 }
 0x433   : > { %9416 = vmatmul.mubr.f32.gmra.mrb[40].mxu1 %v16716_v16 }
 0x434   : > { %9418 = vmatprep.mubr.f32.mxu1 %v16717_v47  ;;  %10478 = vmatpush3.bf16.msra.mxu1 %v16715_v22  ;;  %v16749_v22 = vand.u32 4294901760, %v16748_v43  ;;  %v16759_v43 = vand.u32 4294901760, %v16758_v60 }
 0x435   : > { %10480 = vmatprep.subr.bf16.mxu1 %v16718_v20 }
 0x437   : > { %9419 = vmatmul.mubr.f32.gmra.mrb[42].mxu1 %v16719_v19 }
 0x438   : > { %9421 = vmatprep.mubr.f32.mxu1 %v16720_v58  ;;  %10482 = vmatpush3.bf16.msra.mxu1 %v16718_v20  ;;  %v16746_v20 = vld [vmem:[#allocation26_spill] sm:$0xff]  ;;  %v16777_v58 = vand.u32 4294901760, %v16730_v49 }
 0x439   : > { %10484 = vmatprep.subr.bf16.mxu1 %v16721_v17  ;;  %v16747_v33 = vand.u32 4294901760, %v16746_v20 }
 0x43b   : > { %9422 = vmatmul.mubr.f32.gmra.mrb[44].mxu1 %v16722_v13  ;;  %v10499_v23 = vpack.c.bf16 %v16749_v22, %v16747_v33  ;;  %v16760_v33 = vld [vmem:[#allocation39_spill] sm:$0xff]  ;;  %v16767_v22 = vand.u32 4294901760, %v16717_v47 }
 0x43c   : > { %9424 = vmatprep.mubr.f32.mxu1 %v16723_v52  ;;  %10486 = vmatpush3.bf16.msra.mxu1 %v16721_v17 }
 0x43d   : > { %10488 = vmatprep.subr.bf16.mxu1 %v16724_v29 }
 0x43f   : > { %9425 = vmatmul.mubr.f32.gmra.mrb[46].mxu1 %v16729_v44 }
 0x440   : > { %9427 = vmatprep.mubr.f32.mxu1 %v16730_v49  ;;  %10490 = vmatpush3.bf16.msra.mxu1 %v16724_v29  ;;  %v16741_v29 = vand.u32 4294901760, %v16740_v37  ;;  %v16751_v37 = vand.u32 4294901760, %v13713_v21  ;;  %v16761_v21 = vand.u32 4294901760, %v16760_v33  ;;  %v16783_v49 = vand.u32 4294901760, %v16734_v8  ;;  %v14436_v33 = vld [vmem:[#allocation10 + $0x38] sm:$0xff] }
 0x441   : > { %10492 = vmatprep.subr.bf16.mxu1 %v10491_v40 }
 0x442   : > { %v10495_v17 = vpack.c.bf16 %v16743_v53, %v16741_v29  ;;  %v16753_v53 = vand.u32 4294901760, %v16752_v26  ;;  %v16762_v29 = vand.u32 4294901760, %v13782_v35  ;;  %v16768_v35 = vand.u32 4294901760, %v16707_v27 }
 0x443   : > { %9428 = vmatmul.mubr.f32.gmra.mrb[48].mxu1 %v16731_v25  ;;  %v16774_v26 = vand.u32 4294901760, %v16722_v13  ;;  %v16775_v27 = vand.u32 4294901760, %v16723_v52  ;;  %v16779_v13 = vand.u32 4294901760, %v14010_v31  ;;  %v16780_v52 = vand.u32 4294901760, %v14014_v9 }
 0x444   : > { %9430 = vmatprep.mubr.f32.mxu1 %v14010_v31  ;;  %v16786_v31 = vand.u32 4294901760, %v16737_v7 }
 0x447   : > { %9431 = vmatmul.mubr.f32.gmra.mrb[50].mxu1 %v14014_v9  ;;  %v16787_v9 = vand.u32 4294901760, %v16738_v41 }
 0x448   : > { %9433 = vmatprep.mubr.f32.mxu1 %v16732_v5 }
 0x44b   : > { %9434 = vmatmul.mubr.f32.gmra.mrb[52].mxu1 %v16733_v4 }
 0x44c   : > { %9436 = vmatprep.mubr.f32.mxu1 %v16734_v8  ;;  %v16790_v8 = vand.u32 4294901760, %v14171_v34 }
 0x44f   : > { %9437 = vmatmul.mubr.f32.gmra.mrb[54].mxu1 %v16735_v61 }
 0x450   : > { %9439 = vmatprep.mubr.f32.mxu1 %v16736_v57 }
 0x453   : > { %9440 = vmatmul.mubr.f32.gmra.mrb[56].mxu1 %v16737_v7  ;;  %v14400_v7 = vld [vmem:[#allocation10] sm:$0xff] }
 0x454   : > { %9442 = vmatprep.mubr.f32.mxu1 %v16738_v41  ;;  %v14404_v41 = vld [vmem:[#allocation10 + $0x10] sm:$0xff] }
 0x457   : > { %9443 = vmatmul.mubr.f32.gmra.mrb[58].mxu1 %v14138_v51 }
 0x458   : > { %9445 = vmatprep.mubr.f32.mxu1 %v14150_v11 }
 0x45b   : > { %9446 = vmatmul.mubr.f32.gmra.mrb[60].mxu1 %v14171_v34  ;;  %v14409_v34 = vld [vmem:[#allocation10 + $0x18] sm:$0xff] }
 0x45c   : > { %9448 = vmatprep.mubr.f32.mxu1 %v14185_v18 }
 0x45f   : > { %9449 = vmatmul.mubr.f32.gmra.mrb[62].mxu1 %v14196_v12 }
 0x460   : > { %9483 = vmatprep.mubr.f32.mxu1 %v16739_v50  ;;  %v16757_v50 = vand.u32 4294901760, %v13774_v48  ;;  %v16765_v48 = vand.u32 4294901760, %v16706_v45  ;;  %v16772_v45 = vand.u32 4294901760, %v16709_v56  ;;  %v16781_v56 = vand.u32 4294901760, %v16732_v5 }
 0x461   : > { %v16788_v5 = vand.u32 4294901760, %v14138_v51  ;;  %v5163_v51 = vand.u32 4294901760, %v14400_v7 }
 0x462   : > { %v10511_v20 = vpack.c.bf16 %v16765_v48, %v16764_v36 }
 0x463   : > { %9484 = vmatmul.mubr.f32.vlgmr.msra.gmra.mrb[32].mxu1 %v16744_v24  ;;  %v16754_v24 = vld [vmem:[#allocation36_spill] sm:$0xff] }
 0x464   : > { %9486 = vmatprep.mubr.f32.mxu1 %v16745_v63  ;;  %10494 = vmatpush3.bf16.msra.mxu1 %v10491_v40  ;;  %v16755_v39 = vand.u32 4294901760, %v16754_v24  ;;  %v10507_v40 = vpack.c.bf16 %v16761_v21, %v16759_v43  ;;  %v14412_v24 = vld [vmem:[#allocation10 + $0x20] sm:$0xff]  ;;  %v14434_v43 = vld [vmem:[#allocation10 + $0x30] sm:$0xff] }
 0x465   : > { %10496 = vmatprep.subr.bf16.mxu1 %v10495_v17 }
 0x466   : > { %v10503_v63 = vpack.c.bf16 %v16755_v39, %v16753_v53  ;;  %v14402_v53 = vld [vmem:[#allocation10 + $0x8] sm:$0xff]  ;;  %v5172_v39 = vand.u32 4294901760, %v14409_v34 }
 0x467   : > { %9487 = vmatmul.mubr.f32.gmra.mrb[34].mxu1 %v16750_v32 }
 0x468   : > { %9489 = vmatprep.mubr.f32.mxu1 %v16751_v37  ;;  %10498 = vmatpush3.bf16.msra.mxu1 %v10495_v17  ;;  %v16763_v17 = vand.u32 4294901760, %v13804_v30  ;;  %v16769_v30 = vand.u32 4294901760, %v16708_v2  ;;  %v16770_v37 = vand.u32 4294901760, %v16719_v19  ;;  %v16776_v19 = vand.u32 4294901760, %v16729_v44 }
 0x469   : > { %10500 = vmatprep.subr.bf16.mxu1 %v10499_v23  ;;  %v16778_v2 = vand.u32 4294901760, %v16731_v25  ;;  %v16782_v44 = vand.u32 4294901760, %v16733_v4  ;;  %v16785_v25 = vand.u32 4294901760, %v16736_v57  ;;  %v16789_v4 = vand.u32 4294901760, %v14150_v11 }
 0x46a   : > { %v10515_v32 = vpack.c.bf16 %v16769_v30, %v16768_v35  ;;  %v16792_v57 = vand.u32 4294901760, %v14196_v12  ;;  %v5166_v11 = vand.u32 4294901760, %v14402_v53  ;;  %v14414_v12 = vld [vmem:[#allocation10 + $0x28] sm:$0xff]  ;;  %v16796_v30 = vld [vmem:[#allocation62_spill] sm:$0xff] }
 0x46b   : > { %9490 = vmatmul.mubr.f32.gmra.mrb[36].mxu1 %v16756_v54  ;;  %v5178_v60 = vand.u32 4294901760, %v14414_v12 }
 0x46c   : > { %9492 = vmatprep.mubr.f32.mxu1 %v16757_v50  ;;  %10502 = vmatpush3.bf16.msra.mxu1 %v10499_v23  ;;  %v16766_v23 = vand.u32 4294901760, %v16716_v16  ;;  %v16773_v16 = vand.u32 4294901760, %v16710_v62  ;;  %v16784_v62 = vand.u32 4294901760, %v16735_v61  ;;  %v16791_v61 = vand.u32 4294901760, %v14185_v18 }
 0x46d   : > { %10504 = vmatprep.subr.bf16.mxu1 %v10503_v63  ;;  %v5169_v18 = vand.u32 4294901760, %v14404_v41  ;;  %v5175_v50 = vand.u32 4294901760, %v14412_v24 }
 0x46e   : > { %v10519_v47 = vpack.c.bf16 %v16773_v16, %v16772_v45  ;;  %v16800_v45 = vld [vmem:[#allocation67_spill] sm:$0xff]  ;;  %v16801_v16 = vld [vmem:[#allocation37_spill] sm:$0xff] }
 0x46f   : > { %9493 = vmatmul.mubr.f32.gmra.mrb[38].mxu1 %v16762_v29  ;;  %v14428_v54 = vpack.c.bf16 %v5172_v39, %v5169_v18  ;;  %v14447_v21 = vpack.c.bf16 %v5178_v60, %v5175_v50  ;;  %v14453_v29 = vld [vmem:[#allocation10 + $0x40] sm:$0xff] }
 0x470   : > { %9495 = vmatprep.mubr.f32.mxu1 %v16763_v17  ;;  %10506 = vmatpush3.bf16.msra.mxu1 %v10503_v63  ;;  %v14421_v63 = vpack.c.bf16 %v5166_v11, %v5163_v51  ;;  %v14455_v17 = vld [vmem:[#allocation10 + $0x48] sm:$0xff] }
 0x471   : > { %10508 = vmatprep.subr.bf16.mxu1 %v10507_v40  ;;  %16793 = vst [vmem:[#allocation35_spill] sm:$0xff] %v14447_v21  ;;  %v5190_v48 = vand.u32 4294901760, %v14455_v17 }
 0x472   : > { %10556 = vmatprep.subr.bf16.mxu0 %v14421_v63 }
 0x473   : > { %9496 = vmatmul.mubr.f32.gmra.mrb[40].mxu1 %v16766_v23  ;;  %10558 = vmatpush3.bf16.msra.mxu0 %v14421_v63  ;;  %v14473_v23 = vld [vmem:[#allocation10 + $0x58] sm:$0xff] }
 0x474   : > { %9498 = vmatprep.mubr.f32.mxu1 %v16767_v22  ;;  %10510 = vmatpush3.bf16.msra.mxu1 %v10507_v40  ;;  %v5184_v40 = vand.u32 4294901760, %v14436_v33  ;;  %v5196_v35 = vand.u32 4294901760, %v14473_v23 }
 0x475   : > { %10512 = vmatprep.subr.bf16.mxu1 %v10511_v20  ;;  %10560 = vmatprep.subr.bf16.mxu0 %v14428_v54 }
 0x477   : > { %9499 = vmatmul.mubr.f32.gmra.mrb[42].mxu1 %v16770_v37  ;;  %10562 = vmatpush3.bf16.msra.mxu0 %v14428_v54  ;;  %v16798_v37 = vld [vmem:[#allocation64_spill] sm:$0xff] }
 0x478   : > { %9501 = vmatprep.mubr.f32.mxu1 %v16771_v10  ;;  %10514 = vmatpush3.bf16.msra.mxu1 %v10511_v20  ;;  %v14471_v20 = vld [vmem:[#allocation10 + $0x50] sm:$0xff] }
 0x479   : > { %10516 = vmatprep.subr.bf16.mxu1 %v10515_v32  ;;  %10564 = vmatprep.subr.bf16.mxu0 %v14447_v21 }
 0x47b   : > { %9502 = vmatmul.mubr.f32.gmra.mrb[44].mxu1 %v16774_v26  ;;  %10566 = vmatpush3.bf16.msra.mxu0 %v14447_v21  ;;  %v16804_v26 = vld [vmem:[#allocation24_spill] sm:$0xff] }
 0x47c   : > { %9504 = vmatprep.mubr.f32.mxu1 %v16775_v27  ;;  %10518 = vmatpush3.bf16.msra.mxu1 %v10515_v32  ;;  %v16797_v32 = vld [vmem:[#allocation22_spill] sm:$0xff]  ;;  %v16805_v27 = vld [vmem:[#allocation75_spill] sm:$0xff] }
 0x47d   : > { %10520 = vmatprep.subr.bf16.mxu1 %v10519_v47 }
 0x47f   : > { %9505 = vmatmul.mubr.f32.gmra.mrb[46].mxu1 %v16776_v19  ;;  %v16806_v19 = vld [vmem:[#allocation80_spill] sm:$0xff] }
 0x480   : > { %9507 = vmatprep.mubr.f32.mxu1 %v16777_v58  ;;  %10522 = vmatpush3.bf16.msra.mxu1 %v10519_v47  ;;  %v16803_v47 = vld [vmem:[#allocation74_spill] sm:$0xff]  ;;  %v16807_v58 = vld [vmem:[#allocation40_spill] sm:$0xff] }
 0x481   : > { %10524 = vmatprep.subr.bf16.mxu1 %v16711_v38 }
 0x483   : > { %9508 = vmatmul.mubr.f32.gmra.mrb[48].mxu1 %v16778_v2  ;;  %v16808_v2 = vld [vmem:[#allocation27_spill] sm:$0xff] }
 0x484   : > { %9510 = vmatprep.mubr.f32.mxu1 %v16779_v13  ;;  %v16809_v13 = vld [vmem:[#allocation83_spill] sm:$0xff] }
 0x487   : > { %9511 = vmatmul.mubr.f32.gmra.mrb[50].mxu1 %v16780_v52  ;;  %v16810_v52 = vld [vmem:[#allocation87_spill] sm:$0xff] }
 0x488   : > { %9513 = vmatprep.mubr.f32.mxu1 %v16781_v56  ;;  %v16811_v56 = vld [vmem:[#allocation89_spill] sm:$0xff] }
 0x48b   : > { %9514 = vmatmul.mubr.f32.gmra.mrb[52].mxu1 %v16782_v44  ;;  %v16812_v44 = vld [vmem:[#allocation90_spill] sm:$0xff] }
 0x48c   : > { %9516 = vmatprep.mubr.f32.mxu1 %v16783_v49  ;;  %v16813_v49 = vld [vmem:[#allocation91_spill] sm:$0xff] }
 0x48f   : > { %9517 = vmatmul.mubr.f32.gmra.mrb[54].mxu1 %v16784_v62  ;;  %v16814_v62 = vld [vmem:[#allocation93_spill] sm:$0xff] }
 0x490   : > { %9519 = vmatprep.mubr.f32.mxu1 %v16785_v25  ;;  %v16815_v25 = vld [vmem:[#allocation95_spill] sm:$0xff] }
 0x493   : > { %9520 = vmatmul.mubr.f32.gmra.mrb[56].mxu1 %v16786_v31  ;;  %v16816_v31 = vld [vmem:[#allocation99_spill] sm:$0xff] }
 0x494   : > { %9522 = vmatprep.mubr.f32.mxu1 %v16787_v9  ;;  %v16817_v9 = vld [vmem:[#allocation102_spill] sm:$0xff] }
 0x497   : > { %9523 = vmatmul.mubr.f32.gmra.mrb[58].mxu1 %v16788_v5  ;;  %v16818_v5 = vld [vmem:[#allocation105_spill] sm:$0xff] }
 0x498   : > { %9525 = vmatprep.mubr.f32.mxu1 %v16789_v4  ;;  %v16819_v4 = vld [vmem:[#allocation106_spill] sm:$0xff] }
 0x49b   : > { %9526 = vmatmul.mubr.f32.gmra.mrb[60].mxu1 %v16790_v8  ;;  %v16820_v8 = vld [vmem:[#allocation109_spill] sm:$0xff] }
 0x49c   : > { %9528 = vmatprep.mubr.f32.mxu1 %v16791_v61  ;;  %v16821_v61 = vld [vmem:[#allocation112_spill] sm:$0xff] }
 0x49f   : > { %9529 = vmatmul.mubr.f32.gmra.mrb[62].mxu1 %v16792_v57  ;;  %v16822_v57 = vld [vmem:[#allocation114_spill] sm:$0xff] }
 0x4a0   : > { %9563 = vmatprep.mubr.f32.mxu1 %v13616_v42 }
 0x4a3   : > { %9564 = vmatmul.mubr.f32.vlgmr.msra.gmra.mrb[32].mxu1 %v13639_v28 }
 0x4a4   : > { %9566 = vmatprep.mubr.f32.mxu1 %v13665_v46  ;;  %10526 = vmatpush3.bf16.msra.mxu1 %v16711_v38  ;;  %v5181_v38 = vand.u32 4294901760, %v14434_v43 }
 0x4a5   : > { %10528 = vmatprep.subr.bf16.mxu1 %v16712_v3 }
 0x4a6   : > { %v14465_v36 = vpack.c.bf16 %v5184_v40, %v5181_v38 }
 0x4a7   : > { %9567 = vmatmul.mubr.f32.gmra.mrb[34].mxu1 %v13672_v59 }
 0x4a8   : > { %9569 = vmatprep.mubr.f32.mxu1 %v13693_v14  ;;  %10530 = vmatpush3.bf16.msra.mxu1 %v16712_v3  ;;  %16794 = vst [vmem:[#allocation52_spill] sm:$0xff] %v14465_v36  ;;  %v5187_v3 = vand.u32 4294901760, %v14453_v29 }
 0x4a9   : > { %10532 = vmatprep.subr.bf16.mxu1 %v16713_v1  ;;  %10568 = vmatprep.subr.bf16.mxu0 %v14465_v36 }
 0x4aa   : > { %v14483_v22 = vpack.c.bf16 %v5190_v48, %v5187_v3  ;;  %10570 = vmatpush3.bf16.msra.mxu0 %v14465_v36 }
 0x4ab   : > { %9570 = vmatmul.mubr.f32.gmra.mrb[36].mxu1 %v13720_v55 }
 0x4ac   : > { %9572 = vmatprep.mubr.f32.mxu1 %v13761_v0  ;;  %10534 = vmatpush3.bf16.msra.mxu1 %v16713_v1  ;;  %16795 = vst [vmem:[#allocation41_spill] sm:$0xff] %v14483_v22  ;;  %v5193_v1 = vand.u32 4294901760, %v14471_v20 }
 0x4ad   : > { %10536 = vmatprep.subr.bf16.mxu1 %v16714_v15  ;;  %10572 = vmatprep.subr.bf16.mxu0 %v14483_v22 }
 0x4ae   : > { %v14497_v10 = vpack.c.bf16 %v5196_v35, %v5193_v1  ;;  %10574 = vmatpush3.bf16.msra.mxu0 %v14483_v22 }
 0x4af   : > { %9573 = vmatmul.mubr.f32.gmra.mrb[38].mxu1 %v13765_v6 }
 0x4b0   : > { %9575 = vmatprep.mubr.f32.mxu1 %v16796_v30  ;;  %10538 = vmatpush3.bf16.msra.mxu1 %v16714_v15  ;;  %16799 = vst [vmem:[#allocation43_spill] sm:$0xff] %v14497_v10  ;;  %v16802_v15 = vld [vmem:[#allocation70_spill] sm:$0xff] }
 0x4b1   : > { %10540 = vmatprep.subr.bf16.mxu1 %v16797_v32  ;;  %10576 = vmatprep.subr.bf16.mxu0 %v14497_v10 }
 0x4b2   : > { %10578 = vmatpush3.bf16.msra.mxu0 %v14497_v10 }
 0x4b3   : > { %9576 = vmatmul.mubr.f32.gmra.mrb[40].mxu1 %v16798_v37 }
 0x4b4   : > { %9578 = vmatprep.mubr.f32.mxu1 %v16800_v45  ;;  %10542 = vmatpush3.bf16.msra.mxu1 %v16797_v32  ;;  %v16823_v32 = vld [vmem:[#allocation116_spill] sm:$0xff] }
 0x4b5   : > { %10544 = vmatprep.subr.bf16.mxu1 %v16801_v16 }
 0x4b7   : > { %9579 = vmatmul.mubr.f32.gmra.mrb[42].mxu1 %v16802_v15 }
 0x4b8   : > { %9581 = vmatprep.mubr.f32.mxu1 %v16803_v47  ;;  %10546 = vmatpush3.bf16.msra.mxu1 %v16801_v16  ;;  %v16824_v16 = vld [vmem:[#allocation118_spill] sm:$0xff] }
 0x4b9   : > { %10548 = vmatprep.subr.bf16.mxu1 %v16804_v26 }
 0x4bb   : > { %9582 = vmatmul.mubr.f32.gmra.mrb[44].mxu1 %v16805_v27 }
 0x4bc   : > { %9584 = vmatprep.mubr.f32.mxu1 %v16806_v19  ;;  %10550 = vmatpush3.bf16.msra.mxu1 %v16804_v26 }
 0x4bd   : > { %10552 = vmatprep.subr.bf16.mxu1 %v16807_v58 }
 0x4bf   : > { %9585 = vmatmul.mubr.f32.gmra.mrb[46].mxu1 %v16808_v2 }
 0x4c0   : > { %9587 = vmatprep.mubr.f32.mxu1 %v16809_v13  ;;  %10554 = vmatpush3.bf16.msra.mxu1 %v16807_v58 }
 0x4c3   : > { %9588 = vmatmul.mubr.f32.gmra.mrb[48].mxu1 %v16810_v52 }
 0x4c4   : > { %9590 = vmatprep.mubr.f32.mxu1 %v16811_v56 }
 0x4c7   : > { %9591 = vmatmul.mubr.f32.gmra.mrb[50].mxu1 %v16812_v44 }
 0x4c8   : > { %9593 = vmatprep.mubr.f32.mxu1 %v16813_v49 }
 0x4cb   : > { %9594 = vmatmul.mubr.f32.gmra.mrb[52].mxu1 %v16814_v62 }
 0x4cc   : > { %9596 = vmatprep.mubr.f32.mxu1 %v16815_v25 }
 0x4cf   : > { %9597 = vmatmul.mubr.f32.gmra.mrb[54].mxu1 %v16816_v31 }
 0x4d0   : > { %9599 = vmatprep.mubr.f32.mxu1 %v16817_v9 }
 0x4d3   : > { %9600 = vmatmul.mubr.f32.gmra.mrb[56].mxu1 %v16818_v5 }
 0x4d4   : > { %9602 = vmatprep.mubr.f32.mxu1 %v16819_v4 }
 0x4d7   : > { %9603 = vmatmul.mubr.f32.gmra.mrb[58].mxu1 %v16820_v8 }
 0x4d8   : > { %9605 = vmatprep.mubr.f32.mxu1 %v16821_v61 }
 0x4db   : > { %9606 = vmatmul.mubr.f32.gmra.mrb[60].mxu1 %v16822_v57 }
 0x4dc   : > { %9608 = vmatprep.mubr.f32.mxu1 %v16823_v32 }
 0x4df   : > { %9609 = vmatmul.mubr.f32.gmra.mrb[62].mxu1 %v16824_v16 }
 0x4e0   : > { %9643 = vmatprep.mubr.f32.mxu1 %v13616_v42  ;;  %v5151_v42 = vld [vmem:[#allocation10 + $0x60] sm:$0xff] }
 0x4e3   : > { %9644 = vmatmul.mubr.f32.vlgmr.msra.gmra.mrb[32].mxu1 %v13639_v28  ;;  %v5152_v28 = vld [vmem:[#allocation10 + $0x68] sm:$0xff] }
 0x4e4   : > { %9646 = vmatprep.mubr.f32.mxu1 %v13665_v46  ;;  %v5202_v46 = vand.u32 4294901760, %v5152_v28 }
 0x4e7   : > { %9647 = vmatmul.mubr.f32.gmra.mrb[34].mxu1 %v13672_v59 }
 0x4e8   : > { %9649 = vmatprep.mubr.f32.mxu1 %v13693_v14  ;;  %v5153_v14 = vld [vmem:[#allocation10 + $0x70] sm:$0xff] }
 0x4eb   : > { %9650 = vmatmul.mubr.f32.gmra.mrb[36].mxu1 %v13720_v55  ;;  %v5199_v55 = vand.u32 4294901760, %v5151_v42 }
 0x4ec   : > { %9652 = vmatprep.mubr.f32.mxu1 %v13761_v0  ;;  %v5154_v0 = vld [vmem:[#allocation10 + $0x78] sm:$0xff] }
 0x4ed   : > { %v14563_v59 = vpack.c.bf16 %v5202_v46, %v5199_v55 }
 0x4ef   : > { %9653 = vmatmul.mubr.f32.gmra.mrb[38].mxu1 %v13765_v6  ;;  %16825 = vst [vmem:[#allocation44_spill] sm:$0xff] %v14563_v59  ;;  %10580 = vmatprep.subr.bf16.mxu0 %v14563_v59  ;;  %v5205_v6 = vand.u32 4294901760, %v5153_v14 }
 0x4f0   : > { %9655 = vmatprep.mubr.f32.mxu1 %v16796_v30  ;;  %v5208_v30 = vand.u32 4294901760, %v5154_v0  ;;  %10582 = vmatpush3.bf16.msra.mxu0 %v14563_v59 }
 0x4f3   : > { %9656 = vmatmul.mubr.f32.gmra.mrb[40].mxu1 %v16798_v37  ;;  %v14567_v37 = vpack.c.bf16 %v5208_v30, %v5205_v6 }
 0x4f4   : > { %9658 = vmatprep.mubr.f32.mxu1 %v16800_v45  ;;  %v14574_v45 = vsub.f32 %v14400_v7, %v5163_v51 }
 0x4f5   : > { %16826 = vst [vmem:[#allocation46_spill] sm:$0xff] %v14567_v37  ;;  %10584 = vmatprep.subr.bf16.mxu0 %v14567_v37 }
 0x4f6   : > { %10586 = vmatpush3.bf16.msra.mxu0 %v14567_v37  ;;  %16827 = vst [vmem:[#allocation50_spill] sm:$0xff] %v14574_v45 }
 0x4f7   : > { %9659 = vmatmul.mubr.f32.gmra.mrb[42].mxu1 %v16802_v15  ;;  %v14579_v15 = vsub.f32 %v14402_v53, %v5166_v11  ;;  %v14592_v53 = vsub.f32 %v5151_v42, %v5199_v55  ;;  %v14594_v11 = vsub.f32 %v5152_v28, %v5202_v46 }
 0x4f8   : > { %9661 = vmatprep.mubr.f32.mxu1 %v16803_v47  ;;  %v16257_v47 = vand.u32 4294901760, %v14574_v45 }
 0x4f9   : > { %16828 = vst [vmem:[#allocation51_spill] sm:$0xff] %v14579_v15  ;;  %v16255_v26 = vand.u32 4294901760, %v14579_v15  ;;  %16829 = vst [vmem:[#allocation31_spill] sm:$0xff] %v14592_v53 }
 0x4fa   : > { %16830 = vst [vmem:[#allocation21_spill] sm:$0xff] %v14594_v11 }
 0x4fb   : > { %9662 = vmatmul.mubr.f32.gmra.mrb[44].mxu1 %v16805_v27  ;;  %v5567_v27 = vsub.f32 %v14574_v45, %v16257_v47 }
 0x4fc   : > { %9664 = vmatprep.mubr.f32.mxu1 %v16806_v19  ;;  %v5574_v19 = vsub.f32 %v14579_v15, %v16255_v26 }
 0x4fd   : > { %v5568_v58 = vand.u32 4294901760, %v5567_v27 }
 0x4fe   : > { %v5575_v7 = vand.u32 4294901760, %v5574_v19 }
 0x4ff   : > { %9665 = vmatmul.mubr.f32.gmra.mrb[46].mxu1 %v16808_v2  ;;  %v16245_v2 = vand.u32 4294901760, %v14592_v53 }
 0x500   : > { %9667 = vmatprep.mubr.f32.mxu1 %v16809_v13  ;;  %v14589_v51 = vpack.c.bf16 %v5575_v7, %v5568_v58  ;;  %v16244_v13 = vand.u32 4294901760, %v14594_v11 }
 0x502   : > { %10588 = vmatprep.subr.bf16.mxu0 %v14589_v51 }
 0x503   : > { %9668 = vmatmul.mubr.f32.gmra.mrb[48].mxu1 %v16810_v52  ;;  %v5651_v52 = vsub.f32 %v14592_v53, %v16245_v2 }
 0x504   : > { %9670 = vmatprep.mubr.f32.mxu1 %v16811_v56  ;;  %v5658_v56 = vsub.f32 %v14594_v11, %v16244_v13 }
 0x507   : > { %9671 = vmatmul.mubr.f32.gmra.mrb[50].mxu1 %v16812_v44  ;;  %v14604_v44 = vsub.f32 %v5153_v14, %v5205_v6  ;;  %v14716_v14 = vpack.c.bf16 %v14594_v11, %v14592_v53 }
 0x508   : > { %9673 = vmatprep.mubr.f32.mxu1 %v16813_v49  ;;  %v14606_v49 = vsub.f32 %v5154_v0, %v5208_v30 }
 0x50b   : > { %9674 = vmatmul.mubr.f32.gmra.mrb[52].mxu1 %v16814_v62  ;;  %v5652_v62 = vand.u32 4294901760, %v5651_v52 }
 0x50c   : > { %9676 = vmatprep.mubr.f32.mxu1 %v16815_v25  ;;  %v5659_v25 = vand.u32 4294901760, %v5658_v56 }
 0x50f   : > { %9677 = vmatmul.mubr.f32.gmra.mrb[54].mxu1 %v16816_v31  ;;  %v14608_v31 = vpack.c.bf16 %v5659_v25, %v5652_v62 }
 0x510   : > { %9679 = vmatprep.mubr.f32.mxu1 %v16817_v9  ;;  %v14612_v9 = vpack.c.bf16 %v14579_v15, %v14574_v45 }
 0x513   : > { %9680 = vmatmul.mubr.f32.gmra.mrb[56].mxu1 %v16818_v5  ;;  %v14617_v5 = vsub.f32 %v14404_v41, %v5169_v18  ;;  %v14650_v18 = vsub.f32 %v14436_v33, %v5184_v40 }
 0x514   : > { %9682 = vmatprep.mubr.f32.mxu1 %v16819_v4  ;;  %v14622_v4 = vsub.f32 %v14409_v34, %v5172_v39  ;;  %v14645_v34 = vsub.f32 %v14434_v43, %v5181_v38  ;;  %v14664_v39 = vsub.f32 %v14455_v17, %v5190_v48  ;;  %v14678_v43 = vsub.f32 %v14473_v23, %v5196_v35 }
 0x515   : > { %16831 = vst [vmem:[#allocation32_spill] sm:$0xff] %v14617_v5  ;;  %16836 = vst [vmem:[#allocation76_spill] sm:$0xff] %v14650_v18  ;;  %v16253_v38 = vand.u32 4294901760, %v14617_v5  ;;  %v16246_v48 = vand.u32 4294901760, %v14650_v18 }
 0x516   : > { %16832 = vst [vmem:[#allocation34_spill] sm:$0xff] %v14622_v4  ;;  %16835 = vst [vmem:[#allocation72_spill] sm:$0xff] %v14645_v34  ;;  %v16252_v40 = vand.u32 4294901760, %v14622_v4  ;;  %v16248_v52 = vand.u32 4294901760, %v14664_v39 }
 0x517   : > { %9683 = vmatmul.mubr.f32.gmra.mrb[58].mxu1 %v16820_v8  ;;  %v14626_v8 = vpack.c.bf16 %v14622_v4, %v14617_v5  ;;  %16838 = vst [vmem:[#allocation42_spill] sm:$0xff] %v14664_v39  ;;  %16840 = vst [vmem:[#allocation20_spill] sm:$0xff] %v14678_v43  ;;  %v5581_v23 = vsub.f32 %v14617_v5, %v16253_v38  ;;  %v5616_v28 = vsub.f32 %v14650_v18, %v16246_v48 }
 0x518   : > { %9685 = vmatprep.mubr.f32.mxu1 %v16821_v61  ;;  %v14631_v61 = vsub.f32 %v14412_v24, %v5175_v50  ;;  %v14654_v24 = vpack.c.bf16 %v14650_v18, %v14645_v34 }
 0x519   : > { %v5582_v6 = vand.u32 4294901760, %v5581_v23 }
 0x51a   : > { %16833 = vst [vmem:[#allocation66_spill] sm:$0xff] %v14631_v61 }
 0x51b   : > { %9686 = vmatmul.mubr.f32.gmra.mrb[60].mxu1 %v16822_v57  ;;  %v14636_v57 = vsub.f32 %v14414_v12, %v5178_v60  ;;  %v14659_v12 = vsub.f32 %v14453_v29, %v5187_v3  ;;  %v14673_v60 = vsub.f32 %v14471_v20, %v5193_v1  ;;  %v16251_v29 = vand.u32 4294901760, %v14631_v61  ;;  %v14693_v20 = vld [vmem:[%s15952_s9] ss:$0 sm:$0xff] }
 0x51c   : > { %9688 = vmatprep.mubr.f32.mxu1 %v16823_v32  ;;  %v16247_v3 = vand.u32 4294901760, %v14645_v34  ;;  %v5588_v1 = vsub.f32 %v14622_v4, %v16252_v40 }
 0x51d   : > { %16834 = vst [vmem:[#allocation69_spill] sm:$0xff] %v14636_v57  ;;  %v14640_v41 = vpack.c.bf16 %v14636_v57, %v14631_v61  ;;  %16837 = vst [vmem:[#allocation77_spill] sm:$0xff] %v14659_v12  ;;  %v14668_v50 = vpack.c.bf16 %v14664_v39, %v14659_v12  ;;  %v14682_v33 = vpack.c.bf16 %v14678_v43, %v14673_v60  ;;  %v16250_v17 = vand.u32 4294901760, %v14636_v57 }
 0x51e   : > { %16839 = vst [vmem:[#allocation49_spill] sm:$0xff] %v14673_v60  ;;  %v5595_v35 = vsub.f32 %v14631_v61, %v16251_v29  ;;  %v5609_v42 = vsub.f32 %v14645_v34, %v16247_v3  ;;  %v5589_v30 = vand.u32 4294901760, %v5588_v1  ;;  %v16249_v27 = vand.u32 4294901760, %v14659_v12 }
 0x51f   : > { %9689 = vmatmul.mubr.f32.gmra.mrb[62].mxu1 %v16824_v16  ;;  %v5602_v32 = vsub.f32 %v14636_v57, %v16250_v17 }
 0x520   : > { %v5596_v58 = vand.u32 4294901760, %v5595_v35  ;;  %v5610_v25 = vand.u32 4294901760, %v5609_v42  ;;  %v14727_v1 = vpack.c.bf16 %v5589_v30, %v5582_v6  ;;  %v14732_v35 = vsub.f32 %v14659_v12, %v16249_v27 }
 0x521   : > { %v5603_v7 = vand.u32 4294901760, %v5602_v32  ;;  %v16259_v30 = vand.u32 4294901760, %v14673_v60 }
 0x5b6   : > { %v9645_v16 = vpop.f32.mrb[32].mxu1 }
 0x5b7   : > { %v10811_v55 = vadd.f32 %v9645_v16, %v14693_v20  ;;  %v4917_v46 = vpop.f32.mrb[33].mxu1  ;;  %v5617_v16 = vand.u32 4294901760, %v5616_v28  ;;  %v14737_v28 = vpack.c.bf16 %v5603_v7, %v5596_v58  ;;  %v16262_v7 = vand.u32 4294901760, %v14678_v43 }
 0x5b8   : > { %v10812_v0 = vadd.f32 %v14693_v20, %v4917_v46 }
 0x5b9   : > { %v5108_v19 = vmax.f32 %v10811_v55, 0.0  ;;  %v14742_v55 = vsub.f32 %v14664_v39, %v16248_v52  ;;  %v14747_v6 = vpack.c.bf16 %v5617_v16, %v5610_v25  ;;  %v5624_v25 = vand.u32 4294901760, %v14732_v35 }
 0x5ba   : > { %v5107_v56 = vmax.f32 %v10812_v0, 0.0  ;;  %v9648_v62 = vpop.f32.mrb[34].mxu1  ;;  %v5637_v35 = vsub.f32 %v14673_v60, %v16259_v30 }
 0x5bb   : > { %v14721_v13 = vand.u32 4294901760, %v5108_v19  ;;  %v10813_v2 = vadd.f32 %v9648_v62, %v14693_v20  ;;  %v4929_v48 = vpop.f32.mrb[35].mxu1 }
 0x5bc   : > { %v14724_v3 = vand.u32 4294901760, %v5107_v56  ;;  %v10814_v23 = vadd.f32 %v14693_v20, %v4929_v48 }
 0x5bd   : > { %v14735_v32 = vsub.f32 %v5108_v19, %v14721_v13  ;;  %v5110_v42 = vmax.f32 %v10813_v2, 0.0 }
 0x5be   : > { %v14745_v48 = vsub.f32 %v5107_v56, %v14724_v3  ;;  %v5109_v46 = vmax.f32 %v10814_v23, 0.0  ;;  %v9651_v0 = vpop.f32.mrb[36].mxu1 }
 0x5bf   : > { %v16254_v19 = vand.u32 4294901760, %v14735_v32  ;;  %v14751_v62 = vand.u32 4294901760, %v5110_v42  ;;  %v10815_v2 = vadd.f32 %v9651_v0, %v14693_v20  ;;  %v4941_v58 = vpop.f32.mrb[37].mxu1  ;;  %v5631_v0 = vand.u32 4294901760, %v14742_v55 }
 0x5c0   : > { %v14755_v52 = vand.u32 4294901760, %v5109_v46  ;;  %v10816_v56 = vadd.f32 %v14693_v20, %v4941_v58  ;;  %v16256_v23 = vand.u32 4294901760, %v14745_v48 }
 0x5c1   : > { %v5256_v16 = vsub.f32 %v14735_v32, %v16254_v19  ;;  %v14764_v27 = vsub.f32 %v5110_v42, %v14751_v62  ;;  %v5112_v17 = vmax.f32 %v10815_v2, 0.0 }
 0x5c2   : > { %v14768_v29 = vsub.f32 %v5109_v46, %v14755_v52  ;;  %v5111_v40 = vmax.f32 %v10816_v56, 0.0  ;;  %v9654_v38 = vpop.f32.mrb[38].mxu1  ;;  %v5246_v58 = vsub.f32 %v14745_v48, %v16256_v23  ;;  %v5644_v46 = vsub.f32 %v14678_v43, %v16262_v7 }
 0x5c3   : > { %v14776_v19 = vand.u32 4294901760, %v5112_v17  ;;  %v10817_v42 = vadd.f32 %v9654_v38, %v14693_v20  ;;  %v4953_v2 = vpop.f32.mrb[39].mxu1  ;;  %v16265_v55 = vand.u32 4294901760, %v14764_v27  ;;  %v5257_v11 = vand.u32 4294901760, %v5256_v16 }
 0x5c4   : > { %v14783_v56 = vand.u32 4294901760, %v5111_v40  ;;  %v10818_v26 = vadd.f32 %v14693_v20, %v4953_v2  ;;  %v5247_v23 = vand.u32 4294901760, %v5246_v58  ;;  %v16267_v47 = vand.u32 4294901760, %v14768_v29 }
 0x5c5   : > { %v14788_v30 = vsub.f32 %v5112_v17, %v14776_v19  ;;  %v5114_v53 = vmax.f32 %v10817_v42, 0.0  ;;  %v5276_v38 = vsub.f32 %v14764_v27, %v16265_v55  ;;  %v5638_v2 = vand.u32 4294901760, %v5637_v35 }
 0x5c6   : > { %v14794_v60 = vsub.f32 %v5111_v40, %v14783_v56  ;;  %v5113_v7 = vmax.f32 %v10818_v26, 0.0  ;;  %v9657_v43 = vpop.f32.mrb[40].mxu1  ;;  %9723 = vmatprep.mubr.f32.mxu0 %v5247_v23  ;;  %v5266_v58 = vsub.f32 %v14768_v29, %v16267_v47  ;;  %v5645_v55 = vand.u32 4294901760, %v5644_v46 }
 0x5c7   : > { %16841 = vst [vmem:[#allocation82_spill] sm:$0xff] %v14788_v30  ;;  %v14799_v16 = vand.u32 4294901760, %v5114_v53  ;;  %v10819_v17 = vadd.f32 %v9657_v43, %v14693_v20  ;;  %v4965_v42 = vpop.f32.mrb[41].mxu1  ;;  %9724 = vmatmul.mubr.f32.vlgmr.msra.gmra.mrb[32].mxu0 %v5257_v11  ;;  %v16269_v39 = vand.u32 4294901760, %v14788_v30  ;;  %v5277_v18 = vand.u32 4294901760, %v5276_v38 }
 0x5c8   : > { %16842 = vst [vmem:[#allocation86_spill] sm:$0xff] %v14794_v60  ;;  %v14803_v12 = vand.u32 4294901760, %v5113_v7  ;;  %v10820_v26 = vadd.f32 %v14693_v20, %v4965_v42  ;;  %10590 = vmatpush3.bf16.msra.mxu0 %v14589_v51  ;;  %v5267_v40 = vand.u32 4294901760, %v5266_v58  ;;  %v16271_v23 = vand.u32 4294901760, %v14794_v60 }
 0x5c9   : > { %v14809_v35 = vsub.f32 %v5114_v53, %v14799_v16  ;;  %v5116_v47 = vmax.f32 %v10819_v17, 0.0  ;;  %v5296_v11 = vsub.f32 %v14788_v30, %v16269_v39  ;;  %10592 = vmatprep.subr.bf16.mxu0 %v14727_v1  ;;  %v14821_v53 = vpack.c.bf16 %v5631_v0, %v5624_v25 }
 0x5ca   : > { %v14816_v43 = vsub.f32 %v5113_v7, %v14803_v12  ;;  %v5115_v46 = vmax.f32 %v10820_v26, 0.0  ;;  %v9660_v42 = vpop.f32.mrb[42].mxu1  ;;  %9726 = vmatprep.mubr.f32.mxu0 %v5267_v40  ;;  %v5286_v51 = vsub.f32 %v14794_v60, %v16271_v23  ;;  %v14827_v34 = vpack.c.bf16 %v5645_v55, %v5638_v2 }
 0x5cb   : > { %16843 = vst [vmem:[#allocation30_spill] sm:$0xff] %v14809_v35  ;;  %v14823_v58 = vand.u32 4294901760, %v5116_v47  ;;  %v10821_v38 = vadd.f32 %v9660_v42, %v14693_v20  ;;  %v4977_v17 = vpop.f32.mrb[43].mxu1  ;;  %9727 = vmatmul.mubr.f32.gmra.mrb[34].mxu0 %v5277_v18  ;;  %v16272_v39 = vand.u32 4294901760, %v14809_v35  ;;  %v5297_v42 = vand.u32 4294901760, %v5296_v11 }
 0x5cc   : > { %16844 = vst [vmem:[#allocation47_spill] sm:$0xff] %v14816_v43  ;;  %v14829_v7 = vand.u32 4294901760, %v5115_v46  ;;  %v10822_v26 = vadd.f32 %v14693_v20, %v4977_v17  ;;  %v5287_v40 = vand.u32 4294901760, %v5286_v51  ;;  %10594 = vmatpush3.bf16.msra.mxu0 %v14727_v1  ;;  %v16275_v25 = vand.u32 4294901760, %v14816_v43 }
 0x5cd   : > { %v14835_v0 = vsub.f32 %v5116_v47, %v14823_v58  ;;  %v5118_v23 = vmax.f32 %v10821_v38, 0.0  ;;  %v5316_v18 = vsub.f32 %v14809_v35, %v16272_v39  ;;  %10596 = vmatprep.subr.bf16.mxu0 %v14737_v28 }
 0x5ce   : > { %v14842_v55 = vsub.f32 %v5115_v46, %v14829_v7  ;;  %v5117_v2 = vmax.f32 %v10822_v26, 0.0  ;;  %v9663_v51 = vpop.f32.mrb[44].mxu1  ;;  %9729 = vmatprep.mubr.f32.mxu0 %v5287_v40  ;;  %v5306_v1 = vsub.f32 %v14816_v43, %v16275_v25 }
 0x5cf   : > { %16845 = vst [vmem:[#allocation48_spill] sm:$0xff] %v14835_v0  ;;  %v14848_v38 = vand.u32 4294901760, %v5118_v23  ;;  %v10823_v11 = vadd.f32 %v9663_v51, %v14693_v20  ;;  %v4989_v17 = vpop.f32.mrb[45].mxu1  ;;  %9730 = vmatmul.mubr.f32.gmra.mrb[36].mxu0 %v5297_v42  ;;  %v16276_v39 = vand.u32 4294901760, %v14835_v0  ;;  %v5317_v51 = vand.u32 4294901760, %v5316_v18 }
 0x5d0   : > { %16846 = vst [vmem:[#allocation97_spill] sm:$0xff] %v14842_v55  ;;  %v14853_v57 = vand.u32 4294901760, %v5117_v2  ;;  %v10824_v26 = vadd.f32 %v14693_v20, %v4989_v17  ;;  %v5307_v40 = vand.u32 4294901760, %v5306_v1  ;;  %v16279_v61 = vand.u32 4294901760, %v14842_v55  ;;  %10598 = vmatpush3.bf16.msra.mxu0 %v14737_v28 }
 0x5d1   : > { %16847 = vst [vmem:[#allocation104_spill] sm:$0xff] %v14848_v38  ;;  %v14859_v25 = vsub.f32 %v5118_v23, %v14848_v38  ;;  %v5120_v47 = vmax.f32 %v10823_v11, 0.0  ;;  %v5336_v42 = vsub.f32 %v14835_v0, %v16276_v39  ;;  %10600 = vmatprep.subr.bf16.mxu0 %v14747_v6  ;;  %v16850_v23 = vand.u32 4294901760, %v14604_v44 }
 0x5d2   : > { %v14866_v46 = vsub.f32 %v5117_v2, %v14853_v57  ;;  %v5119_v17 = vmax.f32 %v10824_v26, 0.0  ;;  %v9666_v1 = vpop.f32.mrb[46].mxu1  ;;  %9732 = vmatprep.mubr.f32.mxu0 %v5307_v40  ;;  %v5326_v28 = vsub.f32 %v14842_v55, %v16279_v61  ;;  %v16852_v26 = vand.u32 4294901760, %v14606_v49 }
 0x5d3   : > { %16848 = vst [vmem:[#allocation108_spill] sm:$0xff] %v14859_v25  ;;  %v5665_v18 = vsub.f32 %v14604_v44, %v16850_v23  ;;  %v14874_v11 = vand.u32 4294901760, %v5120_v47  ;;  %v10825_v39 = vadd.f32 %v9666_v1, %v14693_v20  ;;  %v5001_v4 = vpop.f32.mrb[47].mxu1  ;;  %9733 = vmatmul.mubr.f32.gmra.mrb[38].mxu0 %v5317_v51  ;;  %v16286_v2 = vand.u32 4294901760, %v14859_v25 }
 0x5d4   : > { %16849 = vst [vmem:[#allocation110_spill] sm:$0xff] %v14866_v46  ;;  %v5672_v40 = vsub.f32 %v14606_v49, %v16852_v26  ;;  %v14881_v5 = vand.u32 4294901760, %v5119_v17  ;;  %v10826_v61 = vadd.f32 %v14693_v20, %v5001_v4  ;;  %v5327_v15 = vand.u32 4294901760, %v5326_v28  ;;  %10602 = vmatpush3.bf16.msra.mxu0 %v14747_v6 }
 0x5d5   : > { %16851 = vst [vmem:[#allocation111_spill] sm:$0xff] %v14874_v11  ;;  %v16291_v45 = vand.u32 4294901760, %v14866_v46  ;;  %v14887_v23 = vsub.f32 %v5120_v47, %v14874_v11  ;;  %v5122_v1 = vmax.f32 %v10825_v39, 0.0  ;;  %v5337_v51 = vand.u32 4294901760, %v5336_v42  ;;  %10604 = vmatprep.subr.bf16.mxu0 %v14821_v53 }
 0x5d6   : > { %16853 = vst [vmem:[#allocation23_spill] sm:$0xff] %v14881_v5  ;;  %v5356_v37 = vsub.f32 %v14859_v25, %v16286_v2  ;;  %v14894_v26 = vsub.f32 %v5119_v17, %v14881_v5  ;;  %v5121_v4 = vmax.f32 %v10826_v61, 0.0  ;;  %v9669_v28 = vpop.f32.mrb[48].mxu1  ;;  %9735 = vmatprep.mubr.f32.mxu0 %v5327_v15  ;;  %v5666_v47 = vand.u32 4294901760, %v5665_v18 }
 0x5d7   : > { %16854 = vst [vmem:[#allocation25_spill] sm:$0xff] %v14887_v23  ;;  %v5346_v6 = vsub.f32 %v14866_v46, %v16291_v45  ;;  %v14899_v59 = vand.u32 4294901760, %v5122_v1  ;;  %v10827_v39 = vadd.f32 %v9669_v28, %v14693_v20  ;;  %v5013_v42 = vpop.f32.mrb[49].mxu1  ;;  %9736 = vmatmul.mubr.f32.gmra.mrb[40].mxu0 %v5337_v51  ;;  %v16294_v2 = vand.u32 4294901760, %v14887_v23 }
 0x5d8   : > { %16855 = vst [vmem:[#allocation26_spill] sm:$0xff] %v14894_v26  ;;  %v5673_v25 = vand.u32 4294901760, %v5672_v40  ;;  %v14903_v10 = vand.u32 4294901760, %v5121_v4  ;;  %v10828_v61 = vadd.f32 %v14693_v20, %v5013_v42  ;;  %v16297_v15 = vand.u32 4294901760, %v14894_v26  ;;  %10606 = vmatpush3.bf16.msra.mxu0 %v14821_v53 }
 0x5d9   : > { %16856 = vst [vmem:[#allocation28_spill] sm:$0xff] %v14899_v59  ;;  %v5347_v17 = vand.u32 4294901760, %v5346_v6  ;;  %v14909_v18 = vsub.f32 %v5122_v1, %v14899_v59  ;;  %v5124_v45 = vmax.f32 %v10827_v39, 0.0  ;;  %v5357_v46 = vand.u32 4294901760, %v5356_v37  ;;  %10608 = vmatprep.subr.bf16.mxu0 %v14827_v34 }
 0x5da   : > { %16857 = vst [vmem:[#allocation33_spill] sm:$0xff] %v14903_v10  ;;  %v5376_v51 = vsub.f32 %v14887_v23, %v16294_v2  ;;  %v14916_v40 = vsub.f32 %v5121_v4, %v14903_v10  ;;  %v5123_v28 = vmax.f32 %v10828_v61, 0.0  ;;  %v9672_v6 = vpop.f32.mrb[50].mxu1  ;;  %v5366_v53 = vsub.f32 %v14894_v26, %v16297_v15 }
 0x5db   : > { %16858 = vst [vmem:[#allocation36_spill] sm:$0xff] %v14909_v18  ;;  %9738 = vmatprep.mubr.f32.mxu0 %v5347_v17  ;;  %v14921_v1 = vand.u32 4294901760, %v5124_v45  ;;  %v10829_v37 = vadd.f32 %v9672_v6, %v14693_v20  ;;  %v5025_v39 = vpop.f32.mrb[51].mxu1  ;;  %v16302_v42 = vand.u32 4294901760, %v14909_v18  ;;  %v10615_v2 = vpack.c.bf16 %v5673_v25, %v5666_v47 }
 0x5dc   : > { %16859 = vst [vmem:[#allocation38_spill] sm:$0xff] %v14916_v40  ;;  %9739 = vmatmul.mubr.f32.gmra.mrb[42].mxu0 %v5357_v46  ;;  %v14925_v23 = vand.u32 4294901760, %v5123_v28  ;;  %v10830_v4 = vadd.f32 %v14693_v20, %v5025_v39  ;;  %v5367_v61 = vand.u32 4294901760, %v5366_v53  ;;  %v16303_v17 = vand.u32 4294901760, %v14916_v40 }
 0x5dd   : > { %16860 = vst [vmem:[#allocation39_spill] sm:$0xff] %v14921_v1  ;;  %10610 = vmatpush3.bf16.msra.mxu0 %v14827_v34  ;;  %v14931_v15 = vsub.f32 %v5124_v45, %v14921_v1  ;;  %v5126_v26 = vmax.f32 %v10829_v37, 0.0  ;;  %v5377_v0 = vand.u32 4294901760, %v5376_v51  ;;  %v5396_v46 = vsub.f32 %v14909_v18, %v16302_v42 }
 0x5de   : > { %16861 = vst [vmem:[#allocation62_spill] sm:$0xff] %v14925_v23  ;;  %10612 = vmatprep.subr.bf16.mxu0 %v14608_v31  ;;  %v14938_v25 = vsub.f32 %v5123_v28, %v14925_v23  ;;  %v5125_v47 = vmax.f32 %v10830_v4, 0.0  ;;  %v9675_v6 = vpop.f32.mrb[52].mxu1  ;;  %9741 = vmatprep.mubr.f32.mxu0 %v5367_v61  ;;  %v5386_v34 = vsub.f32 %v14916_v40, %v16303_v17 }
 0x5df   : > { %16862 = vst [vmem:[#allocation22_spill] sm:$0xff] %v14931_v15  ;;  %v14943_v45 = vand.u32 4294901760, %v5126_v26  ;;  %v10831_v51 = vadd.f32 %v9675_v6, %v14693_v20  ;;  %v5037_v53 = vpop.f32.mrb[53].mxu1  ;;  %v16308_v37 = vand.u32 4294901760, %v14931_v15  ;;  %v5397_v18 = vand.u32 4294901760, %v5396_v46 }
 0x5e0   : > { %16863 = vst [vmem:[#allocation64_spill] sm:$0xff] %v14938_v25  ;;  %9742 = vmatmul.mubr.f32.gmra.mrb[44].mxu0 %v5377_v0  ;;  %v14947_v39 = vand.u32 4294901760, %v5125_v47  ;;  %v10832_v28 = vadd.f32 %v14693_v20, %v5037_v53  ;;  %v5387_v42 = vand.u32 4294901760, %v5386_v34  ;;  %v16311_v4 = vand.u32 4294901760, %v14938_v25 }
 0x5e1   : > { %16864 = vst [vmem:[#allocation67_spill] sm:$0xff] %v14943_v45  ;;  %10614 = vmatpush3.bf16.msra.mxu0 %v14608_v31  ;;  %v14953_v61 = vsub.f32 %v5126_v26, %v14943_v45  ;;  %v5128_v17 = vmax.f32 %v10831_v51, 0.0  ;;  %v5416_v0 = vsub.f32 %v14931_v15, %v16308_v37 }
 0x5e2   : > { %16865 = vst [vmem:[#allocation37_spill] sm:$0xff] %v14947_v39  ;;  %10616 = vmatprep.subr.bf16.mxu0 %v10615_v2  ;;  %v14959_v6 = vsub.f32 %v5125_v47, %v14947_v39  ;;  %v5127_v40 = vmax.f32 %v10832_v28, 0.0  ;;  %v9678_v53 = vpop.f32.mrb[54].mxu1  ;;  %9744 = vmatprep.mubr.f32.mxu0 %v5387_v42  ;;  %v5406_v31 = vsub.f32 %v14938_v25, %v16311_v4 }
 0x5e3   : > { %16866 = vst [vmem:[#allocation70_spill] sm:$0xff] %v14953_v61  ;;  %v14964_v34 = vand.u32 4294901760, %v5128_v17  ;;  %v10833_v26 = vadd.f32 %v9678_v53, %v14693_v20  ;;  %v5049_v46 = vpop.f32.mrb[55].mxu1  ;;  %v16316_v51 = vand.u32 4294901760, %v14953_v61  ;;  %v5417_v25 = vand.u32 4294901760, %v5416_v0 }
 0x5e4   : > { %16867 = vst [vmem:[#allocation74_spill] sm:$0xff] %v14959_v6  ;;  %9745 = vmatmul.mubr.f32.gmra.mrb[46].mxu0 %v5397_v18  ;;  %v14968_v37 = vand.u32 4294901760, %v5127_v40  ;;  %v10834_v47 = vadd.f32 %v14693_v20, %v5049_v46  ;;  %v5407_v15 = vand.u32 4294901760, %v5406_v31  ;;  %v16321_v28 = vand.u32 4294901760, %v14959_v6 }
 0x5e5   : > { %16868 = vst [vmem:[#allocation24_spill] sm:$0xff] %v14964_v34  ;;  %10618 = vmatpush3.bf16.msra.mxu0 %v10615_v2  ;;  %v14973_v42 = vsub.f32 %v5128_v17, %v14964_v34  ;;  %v5130_v4 = vmax.f32 %v10833_v26, 0.0  ;;  %v5436_v53 = vsub.f32 %v14953_v61, %v16316_v51 }
 0x5e6   : > { %16869 = vst [vmem:[#allocation75_spill] sm:$0xff] %v14968_v37  ;;  %10620 = vmatprep.subr.bf16.mxu0 %v14612_v9  ;;  %v14980_v18 = vsub.f32 %v5127_v40, %v14968_v37  ;;  %v5129_v22 = vmax.f32 %v10834_v47, 0.0  ;;  %v9681_v46 = vpop.f32.mrb[56].mxu1  ;;  %9747 = vmatprep.mubr.f32.mxu0 %v5407_v15  ;;  %v5426_v2 = vsub.f32 %v14959_v6, %v16321_v28 }
 0x5e7   : > { %16870 = vst [vmem:[#allocation80_spill] sm:$0xff] %v14973_v42  ;;  %v14985_v17 = vand.u32 4294901760, %v5130_v4  ;;  %v10835_v0 = vadd.f32 %v9681_v46, %v14693_v20  ;;  %v5061_v31 = vpop.f32.mrb[57].mxu1  ;;  %v16328_v26 = vand.u32 4294901760, %v14973_v42  ;;  %v5437_v28 = vand.u32 4294901760, %v5436_v53 }
 0x5e8   : > { %16871 = vst [vmem:[#allocation40_spill] sm:$0xff] %v14980_v18  ;;  %9748 = vmatmul.mubr.f32.gmra.mrb[48].mxu0 %v5417_v25  ;;  %v14989_v51 = vand.u32 4294901760, %v5129_v22  ;;  %v10836_v40 = vadd.f32 %v14693_v20, %v5061_v31  ;;  %v5427_v61 = vand.u32 4294901760, %v5426_v2  ;;  %v16331_v47 = vand.u32 4294901760, %v14980_v18 }
 0x5e9   : > { %16872 = vst [vmem:[#allocation27_spill] sm:$0xff] %v14985_v17  ;;  %v14994_v15 = vsub.f32 %v5130_v4, %v14985_v17  ;;  %v5132_v55 = vmax.f32 %v10835_v0, 0.0  ;;  %v5456_v46 = vsub.f32 %v14973_v42, %v16328_v26 }
 0x5ea   : > { %16873 = vst [vmem:[#allocation83_spill] sm:$0xff] %v14989_v51  ;;  %v15000_v25 = vsub.f32 %v5129_v22, %v14989_v51  ;;  %v5131_v6 = vmax.f32 %v10836_v40, 0.0  ;;  %v9684_v35 = vpop.f32.mrb[58].mxu1  ;;  %9750 = vmatprep.mubr.f32.mxu0 %v5427_v61  ;;  %v5446_v2 = vsub.f32 %v14980_v18, %v16331_v47 }
 0x5eb   : > { %16874 = vst [vmem:[#allocation87_spill] sm:$0xff] %v14994_v15  ;;  %v15005_v31 = vand.u32 4294901760, %v5132_v55  ;;  %v10837_v4 = vadd.f32 %v9684_v35, %v14693_v20  ;;  %v5073_v0 = vpop.f32.mrb[59].mxu1  ;;  %v16338_v53 = vand.u32 4294901760, %v14994_v15  ;;  %v5457_v47 = vand.u32 4294901760, %v5456_v46 }
 0x5ec   : > { %16875 = vst [vmem:[#allocation89_spill] sm:$0xff] %v15000_v25  ;;  %9751 = vmatmul.mubr.f32.gmra.mrb[50].mxu0 %v5437_v28  ;;  %v15009_v36 = vand.u32 4294901760, %v5131_v6  ;;  %v10838_v22 = vadd.f32 %v14693_v20, %v5073_v0  ;;  %v5447_v26 = vand.u32 4294901760, %v5446_v2  ;;  %v16341_v40 = vand.u32 4294901760, %v15000_v25 }
 0x5ed   : > { %16876 = vst [vmem:[#allocation90_spill] sm:$0xff] %v15005_v31  ;;  %v15014_v61 = vsub.f32 %v5132_v55, %v15005_v31  ;;  %v5134_v42 = vmax.f32 %v10837_v4, 0.0  ;;  %v5476_v35 = vsub.f32 %v14994_v15, %v16338_v53 }
 0x5ee   : > { %16877 = vst [vmem:[#allocation91_spill] sm:$0xff] %v15009_v36  ;;  %v15020_v28 = vsub.f32 %v5131_v6, %v15009_v36  ;;  %v5133_v18 = vmax.f32 %v10838_v22, 0.0  ;;  %v9687_v43 = vpop.f32.mrb[60].mxu1  ;;  %9753 = vmatprep.mubr.f32.mxu0 %v5447_v26  ;;  %v5466_v2 = vsub.f32 %v15000_v25, %v16341_v40 }
 0x5ef   : > { %16878 = vst [vmem:[#allocation93_spill] sm:$0xff] %v15014_v61  ;;  %v15025_v0 = vand.u32 4294901760, %v5134_v42  ;;  %v10839_v55 = vadd.f32 %v9687_v43, %v14693_v20  ;;  %v5085_v4 = vpop.f32.mrb[61].mxu1  ;;  %v16348_v46 = vand.u32 4294901760, %v15014_v61  ;;  %v5477_v40 = vand.u32 4294901760, %v5476_v35 }
 0x5f0   : > { %16879 = vst [vmem:[#allocation95_spill] sm:$0xff] %v15020_v28  ;;  %9754 = vmatmul.mubr.f32.gmra.mrb[52].mxu0 %v5457_v47  ;;  %v15029_v30 = vand.u32 4294901760, %v5133_v18  ;;  %v10840_v6 = vadd.f32 %v14693_v20, %v5085_v4  ;;  %v5467_v53 = vand.u32 4294901760, %v5466_v2  ;;  %v16351_v22 = vand.u32 4294901760, %v15020_v28 }
 0x5f1   : > { %16880 = vst [vmem:[#allocation99_spill] sm:$0xff] %v15025_v0  ;;  %v15034_v26 = vsub.f32 %v5134_v42, %v15025_v0  ;;  %v5136_v15 = vmax.f32 %v10839_v55, 0.0  ;;  %v5496_v43 = vsub.f32 %v15014_v61, %v16348_v46 }
 0x5f2   : > { %16881 = vst [vmem:[#allocation102_spill] sm:$0xff] %v15029_v30  ;;  %v15040_v47 = vsub.f32 %v5133_v18, %v15029_v30  ;;  %v5135_v25 = vmax.f32 %v10840_v6, 0.0  ;;  %v9690_v21 = vpop.f32.mrb[62].mxu1  ;;  %9756 = vmatprep.mubr.f32.mxu0 %v5467_v53  ;;  %v5486_v2 = vsub.f32 %v15020_v28, %v16351_v22 }
 0x5f3   : > { %16882 = vst [vmem:[#allocation105_spill] sm:$0xff] %v15034_v26  ;;  %v15045_v4 = vand.u32 4294901760, %v5136_v15  ;;  %v10841_v42 = vadd.f32 %v9690_v21, %v14693_v20  ;;  %v5097_v55 = vpop.f32.mrb[63].mxu1  ;;  %v16354_v35 = vand.u32 4294901760, %v15034_v26  ;;  %v5497_v22 = vand.u32 4294901760, %v5496_v43 }
 0x5f4   : > { %9757 = vmatmul.mubr.f32.gmra.mrb[54].mxu0 %v5477_v40  ;;  %v15049_v60 = vand.u32 4294901760, %v5135_v25  ;;  %v10842_v18 = vadd.f32 %v14693_v20, %v5097_v55  ;;  %v5487_v46 = vand.u32 4294901760, %v5486_v2  ;;  %v16355_v6 = vand.u32 4294901760, %v15040_v47 }
 0x5f5   : > { %16883 = vst [vmem:[#allocation106_spill] sm:$0xff] %v15045_v4  ;;  %v15054_v53 = vsub.f32 %v5136_v15, %v15045_v4  ;;  %v5138_v61 = vmax.f32 %v10841_v42, 0.0  ;;  %v5516_v21 = vsub.f32 %v15034_v26, %v16354_v35 }
 0x5f6   : > { %16884 = vst [vmem:[#allocation109_spill] sm:$0xff] %v15049_v60  ;;  %v15060_v40 = vsub.f32 %v5135_v25, %v15049_v60  ;;  %v5137_v28 = vmax.f32 %v10842_v18, 0.0  ;;  %9759 = vmatprep.mubr.f32.mxu0 %v5487_v46  ;;  %v5506_v20 = vsub.f32 %v15040_v47, %v16355_v6 }
 0x5f7   : > { %v15065_v2 = vand.u32 4294901760, %v5138_v61  ;;  %v16358_v15 = vand.u32 4294901760, %v15054_v53  ;;  %v5517_v25 = vand.u32 4294901760, %v5516_v21 }
 0x5f8   : > { %9760 = vmatmul.mubr.f32.gmra.mrb[56].mxu0 %v5497_v22  ;;  %v15068_v42 = vand.u32 4294901760, %v5137_v28  ;;  %v5507_v43 = vand.u32 4294901760, %v5506_v20  ;;  %v16361_v55 = vand.u32 4294901760, %v15060_v40 }
 0x5f9   : > { %16885 = vst [vmem:[#allocation112_spill] sm:$0xff] %v15065_v2  ;;  %v15072_v35 = vsub.f32 %v5138_v61, %v15065_v2  ;;  %v5536_v46 = vsub.f32 %v15054_v53, %v16358_v15 }
 0x5fa   : > { %16886 = vst [vmem:[#allocation114_spill] sm:$0xff] %v15068_v42  ;;  %v15078_v18 = vsub.f32 %v5137_v28, %v15068_v42  ;;  %9762 = vmatprep.mubr.f32.mxu0 %v5507_v43  ;;  %v5526_v22 = vsub.f32 %v15060_v40, %v16361_v55 }
 0x5fb   : > { %v16359_v20 = vand.u32 4294901760, %v15072_v35  ;;  %v5537_v26 = vand.u32 4294901760, %v5536_v46  ;;  %v16897_v46 = vld [vmem:[#allocation43_spill] sm:$0xff] }
 0x5fc   : > { %9763 = vmatmul.mubr.f32.gmra.mrb[58].mxu0 %v5517_v25  ;;  %v5527_v6 = vand.u32 4294901760, %v5526_v22  ;;  %v16360_v61 = vand.u32 4294901760, %v15078_v18  ;;  %v16896_v25 = vld [vmem:[#allocation110_spill] sm:$0xff]  ;;  %v16898_v22 = vld [vmem:[#allocation108_spill] sm:$0xff] }
 0x5fd   : > { %v5556_v21 = vsub.f32 %v15072_v35, %v16359_v20  ;;  %v16903_v20 = vld [vmem:[#allocation46_spill] sm:$0xff] }
 0x5fe   : > { %9765 = vmatprep.mubr.f32.mxu0 %v5527_v6  ;;  %v5546_v28 = vsub.f32 %v15078_v18, %v16360_v61  ;;  %v16894_v6 = vld [vmem:[#allocation41_spill] sm:$0xff]  ;;  %v16904_v61 = vld [vmem:[#allocation50_spill] sm:$0xff] }
 0x5ff   : > { %v5557_v15 = vand.u32 4294901760, %v5556_v21  ;;  %v16899_v21 = vld [vmem:[#allocation26_spill] sm:$0xff]  ;;  %v16905_v55 = vand.u32 4294901760, %v16904_v61  ;;  %v16915_v61 = vld [vmem:[#allocation89_spill] sm:$0xff] }
 0x600   : > { %9766 = vmatmul.mubr.f32.gmra.mrb[60].mxu0 %v5537_v26  ;;  %v5547_v43 = vand.u32 4294901760, %v5546_v28  ;;  %v16893_v26 = vld [vmem:[#allocation97_spill] sm:$0xff]  ;;  %v16900_v28 = vld [vmem:[#allocation44_spill] sm:$0xff] }
 0x602   : > { %9768 = vmatprep.mubr.f32.mxu0 %v5547_v43  ;;  %v16901_v43 = vld [vmem:[#allocation25_spill] sm:$0xff] }
 0x604   : > { %9769 = vmatmul.mubr.f32.gmra.mrb[62].mxu0 %v5557_v15  ;;  %v16895_v15 = vld [vmem:[#allocation48_spill] sm:$0xff] }
 0x605   : > { %9803 = vmatprep.mubr.f32.mxu0 %v14724_v3 }
 0x608   : > { %9804 = vmatmul.mubr.f32.vlgmr.msra.gmra.mrb[32].mxu0 %v14721_v13 }
 0x609   : > { %9806 = vmatprep.mubr.f32.mxu0 %v14755_v52  ;;  %10622 = vmatpush3.bf16.msra.mxu0 %v14612_v9  ;;  %v10647_v9 = vpack.c.bf16 %v14606_v49, %v14604_v44 }
 0x60a   : > { %10624 = vmatprep.subr.bf16.mxu0 %v14626_v8 }
 0x60c   : > { %9807 = vmatmul.mubr.f32.gmra.mrb[34].mxu0 %v14751_v62 }
 0x60d   : > { %9809 = vmatprep.mubr.f32.mxu0 %v14783_v56  ;;  %10626 = vmatpush3.bf16.msra.mxu0 %v14626_v8  ;;  %v16887_v8 = vld [vmem:[#allocation86_spill] sm:$0xff] }
 0x60e   : > { %10628 = vmatprep.subr.bf16.mxu0 %v14640_v41 }
 0x610   : > { %9810 = vmatmul.mubr.f32.gmra.mrb[36].mxu0 %v14776_v19 }
 0x611   : > { %9812 = vmatprep.mubr.f32.mxu0 %v14803_v12  ;;  %10630 = vmatpush3.bf16.msra.mxu0 %v14640_v41  ;;  %v16888_v41 = vld [vmem:[#allocation35_spill] sm:$0xff] }
 0x612   : > { %10632 = vmatprep.subr.bf16.mxu0 %v14654_v24 }
 0x614   : > { %9813 = vmatmul.mubr.f32.gmra.mrb[38].mxu0 %v14799_v16 }
 0x615   : > { %9815 = vmatprep.mubr.f32.mxu0 %v14829_v7  ;;  %10634 = vmatpush3.bf16.msra.mxu0 %v14654_v24  ;;  %v16889_v24 = vld [vmem:[#allocation82_spill] sm:$0xff] }
 0x616   : > { %10636 = vmatprep.subr.bf16.mxu0 %v14668_v50 }
 0x618   : > { %9816 = vmatmul.mubr.f32.gmra.mrb[40].mxu0 %v14823_v58 }
 0x619   : > { %9818 = vmatprep.mubr.f32.mxu0 %v14853_v57  ;;  %10638 = vmatpush3.bf16.msra.mxu0 %v14668_v50  ;;  %v16890_v50 = vld [vmem:[#allocation47_spill] sm:$0xff] }
 0x61a   : > { %10640 = vmatprep.subr.bf16.mxu0 %v14682_v33 }
 0x61c   : > { %9819 = vmatmul.mubr.f32.gmra.mrb[42].mxu0 %v14848_v38 }
 0x61d   : > { %9821 = vmatprep.mubr.f32.mxu0 %v14881_v5  ;;  %10642 = vmatpush3.bf16.msra.mxu0 %v14682_v33  ;;  %v16891_v33 = vld [vmem:[#allocation52_spill] sm:$0xff]  ;;  %v16929_v5 = vld [vmem:[#allocation69_spill] sm:$0xff] }
 0x61e   : > { %10644 = vmatprep.subr.bf16.mxu0 %v14716_v14  ;;  %v16930_v38 = vand.u32 4294901760, %v16929_v5  ;;  %v16939_v5 = vld [vmem:[#allocation77_spill] sm:$0xff] }
 0x620   : > { %9822 = vmatmul.mubr.f32.gmra.mrb[44].mxu0 %v14874_v11  ;;  %v16927_v11 = vld [vmem:[#allocation66_spill] sm:$0xff] }
 0x621   : > { %9824 = vmatprep.mubr.f32.mxu0 %v14903_v10  ;;  %10646 = vmatpush3.bf16.msra.mxu0 %v14716_v14  ;;  %v16892_v14 = vld [vmem:[#allocation30_spill] sm:$0xff]  ;;  %v16926_v10 = vand.u32 4294901760, %v14768_v29 }
 0x622   : > { %10648 = vmatprep.subr.bf16.mxu0 %v10647_v9 }
 0x624   : > { %9825 = vmatmul.mubr.f32.gmra.mrb[46].mxu0 %v14899_v59 }
 0x625   : > { %9827 = vmatprep.mubr.f32.mxu0 %v14925_v23  ;;  %10650 = vmatpush3.bf16.msra.mxu0 %v10647_v9  ;;  %v16902_v9 = vld [vmem:[#allocation38_spill] sm:$0xff] }
 0x626   : > { %10652 = vmatprep.subr.bf16.mxu0 %v14421_v63 }
 0x628   : > { %9828 = vmatmul.mubr.f32.gmra.mrb[48].mxu0 %v14921_v1  ;;  %v16923_v1 = vld [vmem:[#allocation34_spill] sm:$0xff] }
 0x629   : > { %9830 = vmatprep.mubr.f32.mxu0 %v14947_v39  ;;  %v16924_v23 = vand.u32 4294901760, %v16923_v1  ;;  %v16935_v1 = vld [vmem:[#allocation76_spill] sm:$0xff] }
 0x62c   : > { %9831 = vmatmul.mubr.f32.gmra.mrb[50].mxu0 %v14943_v45  ;;  %v16921_v45 = vld [vmem:[#allocation32_spill] sm:$0xff] }
 0x62d   : > { %9833 = vmatprep.mubr.f32.mxu0 %v14968_v37  ;;  %v16920_v37 = vand.u32 4294901760, %v14745_v48  ;;  %v16922_v39 = vand.u32 4294901760, %v16921_v45  ;;  %v16932_v45 = vand.u32 4294901760, %v16887_v8 }
 0x62f   : > { %v10687_v59 = vpack.c.bf16 %v16924_v23, %v16922_v39 }
 0x630   : > { %9834 = vmatmul.mubr.f32.gmra.mrb[52].mxu0 %v14964_v34  ;;  %v16919_v34 = vld [vmem:[#allocation105_spill] sm:$0xff] }
 0x631   : > { %9836 = vmatprep.mubr.f32.mxu0 %v14989_v51  ;;  %v16914_v51 = vld [vmem:[#allocation80_spill] sm:$0xff] }
 0x634   : > { %9837 = vmatmul.mubr.f32.gmra.mrb[54].mxu0 %v14985_v17  ;;  %v16913_v17 = vld [vmem:[#allocation40_spill] sm:$0xff] }
 0x635   : > { %9839 = vmatprep.mubr.f32.mxu0 %v15009_v36  ;;  %v16912_v36 = vld [vmem:[#allocation70_spill] sm:$0xff] }
 0x638   : > { %9840 = vmatmul.mubr.f32.gmra.mrb[56].mxu0 %v15005_v31  ;;  %v16911_v31 = vld [vmem:[#allocation74_spill] sm:$0xff] }
 0x639   : > { %9842 = vmatprep.mubr.f32.mxu0 %v15029_v30  ;;  %v16910_v30 = vld [vmem:[#allocation22_spill] sm:$0xff] }
 0x63c   : > { %9843 = vmatmul.mubr.f32.gmra.mrb[58].mxu0 %v15025_v0  ;;  %v16909_v0 = vld [vmem:[#allocation64_spill] sm:$0xff] }
 0x63d   : > { %9845 = vmatprep.mubr.f32.mxu0 %v15049_v60  ;;  %v16908_v60 = vld [vmem:[#allocation36_spill] sm:$0xff] }
 0x640   : > { %9846 = vmatmul.mubr.f32.gmra.mrb[60].mxu0 %v15045_v4 }
 0x641   : > { %9848 = vmatprep.mubr.f32.mxu0 %v15068_v42 }
 0x644   : > { %9849 = vmatmul.mubr.f32.gmra.mrb[62].mxu0 %v15065_v2  ;;  %v16906_v2 = vld [vmem:[#allocation51_spill] sm:$0xff] }
 0x645   : > { %9883 = vmatprep.mubr.f32.mxu0 %v14745_v48  ;;  %v16907_v42 = vand.u32 4294901760, %v16906_v2  ;;  %v16916_v2 = vld [vmem:[#allocation87_spill] sm:$0xff]  ;;  %v16931_v48 = vand.u32 4294901760, %v14764_v27 }
 0x647   : > { %v10683_v4 = vpack.c.bf16 %v16907_v42, %v16905_v55  ;;  %v16917_v42 = vld [vmem:[#allocation95_spill] sm:$0xff]  ;;  %v16918_v55 = vld [vmem:[#allocation93_spill] sm:$0xff] }
 0x648   : > { %9884 = vmatmul.mubr.f32.vlgmr.msra.gmra.mrb[32].mxu0 %v14735_v32 }
 0x649   : > { %9886 = vmatprep.mubr.f32.mxu0 %v14768_v29  ;;  %10654 = vmatpush3.bf16.msra.mxu0 %v14421_v63  ;;  %v16936_v29 = vand.u32 4294901760, %v16935_v1 }
 0x64a   : > { %10656 = vmatprep.subr.bf16.mxu0 %v14428_v54 }
 0x64c   : > { %9887 = vmatmul.mubr.f32.gmra.mrb[34].mxu0 %v14764_v27  ;;  %v16940_v27 = vand.u32 4294901760, %v16939_v5  ;;  %v16960_v5 = vand.u32 4294901760, %v16902_v9 }
 0x64d   : > { %9889 = vmatprep.mubr.f32.mxu0 %v16887_v8  ;;  %10658 = vmatpush3.bf16.msra.mxu0 %v14428_v54  ;;  %v16945_v8 = vld [vmem:[#allocation49_spill] sm:$0xff] }
 0x64e   : > { %10660 = vmatprep.subr.bf16.mxu0 %v16888_v41 }
 0x650   : > { %9890 = vmatmul.mubr.f32.gmra.mrb[36].mxu0 %v16889_v24 }
 0x651   : > { %9892 = vmatprep.mubr.f32.mxu0 %v16890_v50  ;;  %10662 = vmatpush3.bf16.msra.mxu0 %v16888_v41 }
 0x652   : > { %10664 = vmatprep.subr.bf16.mxu0 %v16891_v33 }
 0x654   : > { %9893 = vmatmul.mubr.f32.gmra.mrb[38].mxu0 %v16892_v14 }
 0x655   : > { %9895 = vmatprep.mubr.f32.mxu0 %v16893_v26  ;;  %10666 = vmatpush3.bf16.msra.mxu0 %v16891_v33 }
 0x656   : > { %10668 = vmatprep.subr.bf16.mxu0 %v16894_v6 }
 0x658   : > { %9896 = vmatmul.mubr.f32.gmra.mrb[40].mxu0 %v16895_v15 }
 0x659   : > { %9898 = vmatprep.mubr.f32.mxu0 %v16896_v25  ;;  %10670 = vmatpush3.bf16.msra.mxu0 %v16894_v6 }
 0x65a   : > { %10672 = vmatprep.subr.bf16.mxu0 %v16897_v46 }
 0x65c   : > { %9899 = vmatmul.mubr.f32.gmra.mrb[42].mxu0 %v16898_v22 }
 0x65d   : > { %9901 = vmatprep.mubr.f32.mxu0 %v16899_v21  ;;  %10674 = vmatpush3.bf16.msra.mxu0 %v16897_v46 }
 0x65e   : > { %10676 = vmatprep.subr.bf16.mxu0 %v16900_v28 }
 0x660   : > { %9902 = vmatmul.mubr.f32.gmra.mrb[44].mxu0 %v16901_v43 }
 0x661   : > { %9904 = vmatprep.mubr.f32.mxu0 %v16902_v9  ;;  %10678 = vmatpush3.bf16.msra.mxu0 %v16900_v28  ;;  %v16928_v28 = vand.u32 4294901760, %v16927_v11  ;;  %v16938_v11 = vand.u32 4294901760, %v16890_v50  ;;  %v16966_v9 = vand.u32 4294901760, %v16913_v17 }
 0x662   : > { %10680 = vmatprep.subr.bf16.mxu0 %v16903_v20 }
 0x663   : > { %v10691_v46 = vpack.c.bf16 %v16930_v38, %v16928_v28  ;;  %v16941_v38 = vld [vmem:[#allocation42_spill] sm:$0xff]  ;;  %v16947_v28 = vld [vmem:[#allocation20_spill] sm:$0xff] }
 0x664   : > { %9905 = vmatmul.mubr.f32.gmra.mrb[46].mxu0 %v16908_v60  ;;  %v16942_v39 = vand.u32 4294901760, %v16941_v38  ;;  %v16948_v50 = vand.u32 4294901760, %v16947_v28  ;;  %v16990_v38 = vld [vmem:[#allocation75_spill] sm:$0xff] }
 0x665   : > { %9907 = vmatprep.mubr.f32.mxu0 %v16909_v0  ;;  %10682 = vmatpush3.bf16.msra.mxu0 %v16903_v20  ;;  %v16925_v20 = vand.u32 4294901760, %v14735_v32  ;;  %v16933_v32 = vld [vmem:[#allocation72_spill] sm:$0xff]  ;;  %v16997_v28 = vld [vmem:[#allocation99_spill] sm:$0xff] }
 0x666   : > { %10684 = vmatprep.subr.bf16.mxu0 %v10683_v4  ;;  %v16934_v23 = vand.u32 4294901760, %v16933_v32 }
 0x668   : > { %9908 = vmatmul.mubr.f32.gmra.mrb[48].mxu0 %v16910_v30 }
 0x669   : > { %9910 = vmatprep.mubr.f32.mxu0 %v16911_v31 }
 0x66c   : > { %9911 = vmatmul.mubr.f32.gmra.mrb[50].mxu0 %v16912_v36 }
 0x66d   : > { %9913 = vmatprep.mubr.f32.mxu0 %v16913_v17  ;;  %v16973_v17 = vand.u32 4294901760, %v16919_v34 }
 0x670   : > { %9914 = vmatmul.mubr.f32.gmra.mrb[52].mxu0 %v16914_v51 }
 0x671   : > { %9916 = vmatprep.mubr.f32.mxu0 %v16915_v61 }
 0x674   : > { %9917 = vmatmul.mubr.f32.gmra.mrb[54].mxu0 %v16916_v2 }
 0x675   : > { %9919 = vmatprep.mubr.f32.mxu0 %v16917_v42 }
 0x678   : > { %9920 = vmatmul.mubr.f32.gmra.mrb[56].mxu0 %v16918_v55 }
 0x679   : > { %9922 = vmatprep.mubr.f32.mxu0 %v15040_v47 }
 0x67c   : > { %9923 = vmatmul.mubr.f32.gmra.mrb[58].mxu0 %v16919_v34  ;;  %v16980_v34 = vld [vmem:[#allocation23_spill] sm:$0xff] }
 0x67d   : > { %9925 = vmatprep.mubr.f32.mxu0 %v15060_v40 }
 0x680   : > { %9926 = vmatmul.mubr.f32.gmra.mrb[60].mxu0 %v15054_v53 }
 0x681   : > { %9928 = vmatprep.mubr.f32.mxu0 %v15078_v18 }
 0x684   : > { %9929 = vmatmul.mubr.f32.gmra.mrb[62].mxu0 %v15072_v35 }
 0x685   : > { %9963 = vmatprep.mubr.f32.mxu0 %v16920_v37  ;;  %v16937_v37 = vand.u32 4294901760, %v16889_v24  ;;  %v16946_v24 = vand.u32 4294901760, %v16945_v8  ;;  %v16995_v8 = vld [vmem:[#allocation90_spill] sm:$0xff] }
 0x688   : > { %9964 = vmatmul.mubr.f32.vlgmr.msra.gmra.mrb[32].mxu0 %v16925_v20  ;;  %v16944_v20 = vand.u32 4294901760, %v16893_v26 }
 0x689   : > { %9966 = vmatprep.mubr.f32.mxu0 %v16926_v10  ;;  %10686 = vmatpush3.bf16.msra.mxu0 %v10683_v4  ;;  %v10695_v10 = vpack.c.bf16 %v16936_v29, %v16934_v23  ;;  %v10699_v4 = vpack.c.bf16 %v16942_v39, %v16940_v27  ;;  %v16953_v23 = vld [vmem:[#allocation21_spill] sm:$0xff]  ;;  %v16955_v29 = vand.u32 4294901760, %v16898_v22  ;;  %v16961_v22 = vand.u32 4294901760, %v16908_v60  ;;  %v16991_v39 = vld [vmem:[#allocation24_spill] sm:$0xff] }
 0x68a   : > { %10688 = vmatprep.subr.bf16.mxu0 %v10687_v59  ;;  %v16954_v26 = vand.u32 4294901760, %v16953_v23  ;;  %v16967_v60 = vand.u32 4294901760, %v16914_v51  ;;  %v16969_v27 = vand.u32 4294901760, %v16916_v2  ;;  %v16974_v51 = vand.u32 4294901760, %v15060_v40  ;;  %v16984_v40 = vld [vmem:[#allocation46_spill] sm:$0xff] }
 0x68b   : > { %v16976_v2 = vand.u32 4294901760, %v15078_v18  ;;  %v16985_v18 = vld [vmem:[#allocation28_spill] sm:$0xff] }
 0x68c   : > { %9967 = vmatmul.mubr.f32.gmra.mrb[34].mxu0 %v16931_v48  ;;  %v10703_v48 = vpack.c.bf16 %v16948_v50, %v16946_v24  ;;  %v16996_v24 = vld [vmem:[#allocation102_spill] sm:$0xff]  ;;  %v16998_v50 = vld [vmem:[#allocation109_spill] sm:$0xff] }
 0x68d   : > { %9969 = vmatprep.mubr.f32.mxu0 %v16932_v45  ;;  %10690 = vmatpush3.bf16.msra.mxu0 %v10687_v59  ;;  %v16943_v59 = vand.u32 4294901760, %v16892_v14  ;;  %v16950_v45 = vand.u32 4294901760, %v16896_v25  ;;  %v16951_v14 = vld [vmem:[#allocation31_spill] sm:$0xff]  ;;  %v16958_v25 = vand.u32 4294901760, %v14606_v49  ;;  %v16964_v49 = vand.u32 4294901760, %v16911_v31 }
 0x68e   : > { %10692 = vmatprep.subr.bf16.mxu0 %v10691_v46  ;;  %v16952_v32 = vand.u32 4294901760, %v16951_v14  ;;  %v16971_v31 = vand.u32 4294901760, %v16918_v55  ;;  %v16989_v55 = vld [vmem:[#allocation67_spill] sm:$0xff] }
 0x690   : > { %9970 = vmatmul.mubr.f32.gmra.mrb[36].mxu0 %v16937_v37  ;;  %v10707_v1 = vpack.c.bf16 %v16954_v26, %v16952_v32  ;;  %v17005_v32 = vld [vmem:[#allocation29_spill] sm:$0xff] }
 0x691   : > { %9972 = vmatprep.mubr.f32.mxu0 %v16938_v11  ;;  %10694 = vmatpush3.bf16.msra.mxu0 %v10691_v46  ;;  %v16949_v46 = vand.u32 4294901760, %v16895_v15  ;;  %v16957_v15 = vand.u32 4294901760, %v14604_v44  ;;  %v16959_v11 = vand.u32 4294901760, %v16901_v43  ;;  %v16963_v44 = vand.u32 4294901760, %v16910_v30 }
 0x692   : > { %10696 = vmatprep.subr.bf16.mxu0 %v10695_v10  ;;  %v16965_v43 = vand.u32 4294901760, %v16912_v36  ;;  %v16970_v30 = vand.u32 4294901760, %v16917_v42  ;;  %v16972_v36 = vand.u32 4294901760, %v15040_v47  ;;  %v16977_v42 = vand.u32 4294901760, %v15072_v35  ;;  %v16981_v47 = vld [vmem:[#allocation44_spill] sm:$0xff]  ;;  %v16982_v35 = vld [vmem:[#allocation111_spill] sm:$0xff] }
 0x693   : > { %v10711_v37 = vpack.c.bf16 %v16958_v25, %v16957_v15  ;;  %v17007_v15 = vld [vmem:[#allocation55_spill] sm:$0xff] }
 0x694   : > { %9973 = vmatmul.mubr.f32.gmra.mrb[38].mxu0 %v16943_v59  ;;  %v16993_v59 = vld [vmem:[#allocation27_spill] sm:$0xff] }
 0x695   : > { %9975 = vmatprep.mubr.f32.mxu0 %v16944_v20  ;;  %10698 = vmatpush3.bf16.msra.mxu0 %v10695_v10  ;;  %v16956_v10 = vand.u32 4294901760, %v16899_v21  ;;  %v16962_v21 = vand.u32 4294901760, %v16909_v0  ;;  %v16968_v0 = vand.u32 4294901760, %v16915_v61  ;;  %v16975_v61 = vand.u32 4294901760, %v15054_v53  ;;  %v16983_v53 = vld [vmem:[#allocation33_spill] sm:$0xff]  ;;  %v16994_v20 = vld [vmem:[#allocation91_spill] sm:$0xff] }
 0x696   : > { %10700 = vmatprep.subr.bf16.mxu0 %v10699_v4 }
 0x698   : > { %9976 = vmatmul.mubr.f32.gmra.mrb[40].mxu0 %v16949_v46  ;;  %v17000_v46 = vld [vmem:[#allocation114_spill] sm:$0xff] }
 0x699   : > { %9978 = vmatprep.mubr.f32.mxu0 %v16950_v45  ;;  %10702 = vmatpush3.bf16.msra.mxu0 %v10699_v4  ;;  %v16992_v4 = vld [vmem:[#allocation83_spill] sm:$0xff]  ;;  %v17001_v45 = vld [vmem:[#allocation112_spill] sm:$0xff] }
 0x69a   : > { %10704 = vmatprep.subr.bf16.mxu0 %v10703_v48 }
 0x69c   : > { %9979 = vmatmul.mubr.f32.gmra.mrb[42].mxu0 %v16955_v29  ;;  %v17006_v29 = vld [vmem:[#allocation56_spill] sm:$0xff] }
 0x69d   : > { %9981 = vmatprep.mubr.f32.mxu0 %v16956_v10  ;;  %10706 = vmatpush3.bf16.msra.mxu0 %v10703_v48  ;;  %v16999_v48 = vld [vmem:[#allocation106_spill] sm:$0xff] }
 0x69e   : > { %10708 = vmatprep.subr.bf16.mxu0 %v10707_v1 }
 0x6a0   : > { %9982 = vmatmul.mubr.f32.gmra.mrb[44].mxu0 %v16959_v11 }
 0x6a1   : > { %9984 = vmatprep.mubr.f32.mxu0 %v16960_v5  ;;  %10710 = vmatpush3.bf16.msra.mxu0 %v10707_v1 }
 0x6a2   : > { %10712 = vmatprep.subr.bf16.mxu0 %v10711_v37 }
 0x6a4   : > { %9985 = vmatmul.mubr.f32.gmra.mrb[46].mxu0 %v16961_v22 }
 0x6a5   : > { %9987 = vmatprep.mubr.f32.mxu0 %v16962_v21  ;;  %10714 = vmatpush3.bf16.msra.mxu0 %v10711_v37 }
 0x6a6   : > { %10716 = vmatprep.subr.bf16.mxu0 %v14421_v63 }
 0x6a8   : > { %9988 = vmatmul.mubr.f32.gmra.mrb[48].mxu0 %v16963_v44 }
 0x6a9   : > { %9990 = vmatprep.mubr.f32.mxu0 %v16964_v49  ;;  %v17008_v49 = vld [vmem:[#allocation58_spill] sm:$0xff] }
 0x6ac   : > { %9991 = vmatmul.mubr.f32.gmra.mrb[50].mxu0 %v16965_v43 }
 0x6ad   : > { %9993 = vmatprep.mubr.f32.mxu0 %v16966_v9  ;;  %v17009_v9 = vld [vmem:[#allocation57_spill] sm:$0xff] }
 0x6b0   : > { %9994 = vmatmul.mubr.f32.gmra.mrb[52].mxu0 %v16967_v60 }
 0x6b1   : > { %9996 = vmatprep.mubr.f32.mxu0 %v16968_v0 }
 0x6b4   : > { %9997 = vmatmul.mubr.f32.gmra.mrb[54].mxu0 %v16969_v27 }
 0x6b5   : > { %9999 = vmatprep.mubr.f32.mxu0 %v16970_v30 }
 0x6b8   : > { %10000 = vmatmul.mubr.f32.gmra.mrb[56].mxu0 %v16971_v31 }
 0x6b9   : > { %10002 = vmatprep.mubr.f32.mxu0 %v16972_v36 }
 0x6bc   : > { %10003 = vmatmul.mubr.f32.gmra.mrb[58].mxu0 %v16973_v17 }
 0x6bd   : > { %10005 = vmatprep.mubr.f32.mxu0 %v16974_v51  ;;  %v17010_v51 = vld [vmem:[#allocation60_spill] sm:$0xff] }
 0x6c0   : > { %10006 = vmatmul.mubr.f32.gmra.mrb[60].mxu0 %v16975_v61 }
 0x6c1   : > { %10008 = vmatprep.mubr.f32.mxu0 %v16976_v2  ;;  %v17011_v2 = vld [vmem:[#allocation59_spill] sm:$0xff] }
 0x6c4   : > { %10009 = vmatmul.mubr.f32.gmra.mrb[62].mxu0 %v16977_v42 }
 0x6c5   : > { %10043 = vmatprep.mubr.f32.mxu0 %v14724_v3 }
 0x6c8   : > { %10044 = vmatmul.mubr.f32.vlgmr.msra.gmra.mrb[32].mxu0 %v14721_v13 }
 0x6c9   : > { %10046 = vmatprep.mubr.f32.mxu0 %v14755_v52  ;;  %10718 = vmatpush3.bf16.msra.mxu0 %v14421_v63  ;;  %v16978_v63 = vld [vmem:[#allocation43_spill] sm:$0xff] }
 0x6ca   : > { %10720 = vmatprep.subr.bf16.mxu0 %v14428_v54 }
 0x6cc   : > { %10047 = vmatmul.mubr.f32.gmra.mrb[34].mxu0 %v14751_v62 }
 0x6cd   : > { %10049 = vmatprep.mubr.f32.mxu0 %v14783_v56  ;;  %10722 = vmatpush3.bf16.msra.mxu0 %v14428_v54  ;;  %v16979_v54 = vld [vmem:[#allocation104_spill] sm:$0xff] }
 0x6ce   : > { %10724 = vmatprep.subr.bf16.mxu0 %v16888_v41 }
 0x6d0   : > { %10050 = vmatmul.mubr.f32.gmra.mrb[36].mxu0 %v14776_v19 }
 0x6d1   : > { %10052 = vmatprep.mubr.f32.mxu0 %v14803_v12  ;;  %10726 = vmatpush3.bf16.msra.mxu0 %v16888_v41  ;;  %v16986_v41 = vld [vmem:[#allocation62_spill] sm:$0xff] }
 0x6d2   : > { %10728 = vmatprep.subr.bf16.mxu0 %v16891_v33 }
 0x6d4   : > { %10053 = vmatmul.mubr.f32.gmra.mrb[38].mxu0 %v14799_v16 }
 0x6d5   : > { %10055 = vmatprep.mubr.f32.mxu0 %v14829_v7  ;;  %10730 = vmatpush3.bf16.msra.mxu0 %v16891_v33  ;;  %v16987_v33 = vld [vmem:[#allocation39_spill] sm:$0xff] }
 0x6d6   : > { %10732 = vmatprep.subr.bf16.mxu0 %v16894_v6 }
 0x6d8   : > { %10056 = vmatmul.mubr.f32.gmra.mrb[40].mxu0 %v14823_v58 }
 0x6d9   : > { %10058 = vmatprep.mubr.f32.mxu0 %v14853_v57  ;;  %10734 = vmatpush3.bf16.msra.mxu0 %v16894_v6  ;;  %v16988_v6 = vld [vmem:[#allocation37_spill] sm:$0xff] }
 0x6da   : > { %10736 = vmatprep.subr.bf16.mxu0 %v16978_v63 }
 0x6dc   : > { %10059 = vmatmul.mubr.f32.gmra.mrb[42].mxu0 %v16979_v54 }
 0x6dd   : > { %10061 = vmatprep.mubr.f32.mxu0 %v16980_v34  ;;  %10738 = vmatpush3.bf16.msra.mxu0 %v16978_v63 }
 0x6de   : > { %10740 = vmatprep.subr.bf16.mxu0 %v16981_v47 }
 0x6e0   : > { %10062 = vmatmul.mubr.f32.gmra.mrb[44].mxu0 %v16982_v35 }
 0x6e1   : > { %10064 = vmatprep.mubr.f32.mxu0 %v16983_v53  ;;  %10742 = vmatpush3.bf16.msra.mxu0 %v16981_v47 }
 0x6e2   : > { %10744 = vmatprep.subr.bf16.mxu0 %v16984_v40 }
 0x6e4   : > { %10065 = vmatmul.mubr.f32.gmra.mrb[46].mxu0 %v16985_v18 }
 0x6e5   : > { %10067 = vmatprep.mubr.f32.mxu0 %v16986_v41  ;;  %10746 = vmatpush3.bf16.msra.mxu0 %v16984_v40  ;;  %v17012_v40 = vld [vmem:[#allocation63_spill] sm:$0xff] }
 0x6e8   : > { %10068 = vmatmul.mubr.f32.gmra.mrb[48].mxu0 %v16987_v33 }
 0x6e9   : > { %10070 = vmatprep.mubr.f32.mxu0 %v16988_v6 }
 0x6ec   : > { %10071 = vmatmul.mubr.f32.gmra.mrb[50].mxu0 %v16989_v55 }
 0x6ed   : > { %10073 = vmatprep.mubr.f32.mxu0 %v16990_v38 }
 0x6f0   : > { %10074 = vmatmul.mubr.f32.gmra.mrb[52].mxu0 %v16991_v39 }
 0x6f1   : > { %10076 = vmatprep.mubr.f32.mxu0 %v16992_v4 }
 0x6f4   : > { %10077 = vmatmul.mubr.f32.gmra.mrb[54].mxu0 %v16993_v59 }
 0x6f5   : > { %10079 = vmatprep.mubr.f32.mxu0 %v16994_v20 }
 0x6f8   : > { %10080 = vmatmul.mubr.f32.gmra.mrb[56].mxu0 %v16995_v8 }
 0x6f9   : > { %10082 = vmatprep.mubr.f32.mxu0 %v16996_v24 }
 0x6fc   : > { %10083 = vmatmul.mubr.f32.gmra.mrb[58].mxu0 %v16997_v28 }
 0x6fd   : > { %10085 = vmatprep.mubr.f32.mxu0 %v16998_v50 }
 0x700   : > { %10086 = vmatmul.mubr.f32.gmra.mrb[60].mxu0 %v16999_v48 }
 0x701   : > { %10088 = vmatprep.mubr.f32.mxu0 %v17000_v46 }
 0x704   : > { %10089 = vmatmul.mubr.f32.gmra.mrb[62].mxu0 %v17001_v45 }
 0x705   : > { %10123 = vmatprep.mubr.f32.mxu0 %v14724_v3 }
 0x708   : > { %10124 = vmatmul.mubr.f32.vlgmr.msra.gmra.mrb[32].mxu0 %v14721_v13  ;;  %v15365_v13 = vld [vmem:[%s17002_s28] ss:$0 sm:$0xff] }
 0x709   : > { %10126 = vmatprep.mubr.f32.mxu0 %v14755_v52 }
 0x70c   : > { %10127 = vmatmul.mubr.f32.gmra.mrb[34].mxu0 %v14751_v62 }
 0x70d   : > { %10129 = vmatprep.mubr.f32.mxu0 %v14783_v56  ;;  %v17004_v56 = vld [vmem:[#allocation53_spill] sm:$0xff] }
 0x710   : > { %10130 = vmatmul.mubr.f32.gmra.mrb[36].mxu0 %v14776_v19  ;;  %v17003_v19 = vld [vmem:[#allocation54_spill] sm:$0xff] }
 0x711   : > { %10132 = vmatprep.mubr.f32.mxu0 %v14803_v12 }
 0x714   : > { %10133 = vmatmul.mubr.f32.gmra.mrb[38].mxu0 %v14799_v16 }
 0x715   : > { %10135 = vmatprep.mubr.f32.mxu0 %v14829_v7 }
 0x718   : > { %10136 = vmatmul.mubr.f32.gmra.mrb[40].mxu0 %v14823_v58 }
 0x719   : > { %10138 = vmatprep.mubr.f32.mxu0 %v14853_v57 }
 0x71c   : > { %10139 = vmatmul.mubr.f32.gmra.mrb[42].mxu0 %v16979_v54 }
 0x71d   : > { %10141 = vmatprep.mubr.f32.mxu0 %v16980_v34 }
 0x720   : > { %10142 = vmatmul.mubr.f32.gmra.mrb[44].mxu0 %v16982_v35 }
 0x721   : > { %10144 = vmatprep.mubr.f32.mxu0 %v16983_v53 }
 0x724   : > { %10145 = vmatmul.mubr.f32.gmra.mrb[46].mxu0 %v16985_v18 }
 0x725   : > { %10147 = vmatprep.mubr.f32.mxu0 %v16986_v41  ;;  %v17013_v41 = vld [vmem:[#allocation61_spill] sm:$0xff] }
 0x728   : > { %10148 = vmatmul.mubr.f32.gmra.mrb[48].mxu0 %v16987_v33 }
 0x729   : > { %10150 = vmatprep.mubr.f32.mxu0 %v16988_v6 }
 0x72c   : > { %10151 = vmatmul.mubr.f32.gmra.mrb[50].mxu0 %v16989_v55 }
 0x72d   : > { %10153 = vmatprep.mubr.f32.mxu0 %v16990_v38 }
 0x730   : > { %10154 = vmatmul.mubr.f32.gmra.mrb[52].mxu0 %v16991_v39 }
 0x731   : > { %10156 = vmatprep.mubr.f32.mxu0 %v16992_v4 }
 0x734   : > { %10157 = vmatmul.mubr.f32.gmra.mrb[54].mxu0 %v16993_v59 }
 0x735   : > { %10159 = vmatprep.mubr.f32.mxu0 %v16994_v20  ;;  %v17014_v20 = vld [vmem:[#allocation68_spill] sm:$0xff] }
 0x738   : > { %10160 = vmatmul.mubr.f32.gmra.mrb[56].mxu0 %v16995_v8 }
 0x739   : > { %10162 = vmatprep.mubr.f32.mxu0 %v16996_v24  ;;  %v17015_v24 = vld [vmem:[#allocation65_spill] sm:$0xff] }
 0x73c   : > { %10163 = vmatmul.mubr.f32.gmra.mrb[58].mxu0 %v16997_v28 }
 0x73d   : > { %10165 = vmatprep.mubr.f32.mxu0 %v16998_v50 }
 0x740   : > { %10166 = vmatmul.mubr.f32.gmra.mrb[60].mxu0 %v16999_v48 }
 0x741   : > { %10168 = vmatprep.mubr.f32.mxu0 %v17000_v46 }
 0x744   : > { %10169 = vmatmul.mubr.f32.gmra.mrb[62].mxu0 %v17001_v45 }
 0x7db   : > { %v10125_v57 = vpop.f32.mrb[32].mxu0 }
 0x7dc   : > { %v10843_v12 = vadd.f32 %v10125_v57, %v15365_v13  ;;  %v6946_v3 = vpop.f32.mrb[33].mxu0 }
 0x7dd   : > { %v10844_v52 = vadd.f32 %v15365_v13, %v6946_v3  ;;  %v17016_v3 = vld [vmem:[#allocation73_spill] sm:$0xff] }
 0x7de   : > { %v15370_v62 = vadd.f32 %v10843_v12, %v17003_v19  ;;  %v17017_v19 = vld [vmem:[#allocation71_spill] sm:$0xff] }
 0x7df   : > { %v15373_v16 = vadd.f32 %v10844_v52, %v17004_v56  ;;  %v10128_v58 = vpop.f32.mrb[34].mxu0 }
 0x7e0   : > { %v10845_v7 = vadd.f32 %v10128_v58, %v15365_v13  ;;  %v6958_v14 = vpop.f32.mrb[35].mxu0  ;;  %v7169_v23 = vmul.f32 %v17005_v32, %v15370_v62 }
 0x7e1   : > { %v10846_v26 = vadd.f32 %v15365_v13, %v6958_v14  ;;  %v7168_v1 = vmul.f32 %v17005_v32, %v15373_v16 }
 0x7e2   : > { %v15382_v10 = vadd.f32 %v10845_v7, %v17006_v29  ;;  %7202 = vadd.xlane.f32.xlu1 %v7169_v23  ;;  %v17018_v29 = vld [vmem:[#allocation79_spill] sm:$0xff] }
 0x7e3   : > { %v15385_v25 = vadd.f32 %v10846_v26, %v17007_v15  ;;  %v10131_v37 = vpop.f32.mrb[36].mxu0  ;;  %7200 = vadd.xlane.f32.xlu0 %v7168_v1 }
 0x7e4   : > { %v10847_v11 = vadd.f32 %v10131_v37, %v15365_v13  ;;  %v6970_v5 = vpop.f32.mrb[37].mxu0  ;;  %v7171_v22 = vmul.f32 %v17005_v32, %v15382_v10  ;;  %v17019_v37 = vld [vmem:[#allocation78_spill] sm:$0xff] }
 0x7e5   : > { %v10848_v21 = vadd.f32 %v15365_v13, %v6970_v5  ;;  %v7170_v44 = vmul.f32 %v17005_v32, %v15385_v25 }
 0x7e6   : > { %v15394_v43 = vadd.f32 %v10847_v11, %v17008_v49  ;;  %7206 = vadd.xlane.f32.xlu1 %v7171_v22 }
 0x7e7   : > { %v15397_v60 = vadd.f32 %v10848_v21, %v17009_v9  ;;  %v10134_v0 = vpop.f32.mrb[38].mxu0  ;;  %7204 = vadd.xlane.f32.xlu0 %v7170_v44 }
 0x7e8   : > { %v10849_v27 = vadd.f32 %v10134_v0, %v15365_v13  ;;  %v6982_v30 = vpop.f32.mrb[39].mxu0  ;;  %v7173_v31 = vmul.f32 %v17005_v32, %v15394_v43  ;;  %v17020_v0 = vld [vmem:[#allocation84_spill] sm:$0xff] }
 0x7e9   : > { %v10850_v36 = vadd.f32 %v15365_v13, %v6982_v30  ;;  %v7172_v17 = vmul.f32 %v17005_v32, %v15397_v60  ;;  %v17021_v30 = vld [vmem:[#allocation81_spill] sm:$0xff] }
 0x7ea   : > { %v15406_v61 = vadd.f32 %v10849_v27, %v17010_v51  ;;  %7210 = vadd.xlane.f32.xlu1 %v7173_v31 }
 0x7eb   : > { %v15409_v42 = vadd.f32 %v10850_v36, %v17011_v2  ;;  %v10137_v63 = vpop.f32.mrb[40].mxu0  ;;  %7208 = vadd.xlane.f32.xlu0 %v7172_v17 }
 0x7ec   : > { %v10851_v54 = vadd.f32 %v10137_v63, %v15365_v13  ;;  %v6994_v34 = vpop.f32.mrb[41].mxu0  ;;  %v7175_v47 = vmul.f32 %v17005_v32, %v15406_v61 }
 0x7ed   : > { %v10852_v35 = vadd.f32 %v15365_v13, %v6994_v34  ;;  %v7174_v53 = vmul.f32 %v17005_v32, %v15409_v42  ;;  %v17022_v34 = vld [vmem:[#allocation85_spill] sm:$0xff] }
 0x7ee   : > { %v15418_v18 = vadd.f32 %v10851_v54, %v17012_v40  ;;  %7214 = vadd.xlane.f32.xlu1 %v7175_v47 }
 0x7ef   : > { %v15421_v33 = vadd.f32 %v10852_v35, %v17013_v41  ;;  %v10140_v6 = vpop.f32.mrb[42].mxu0  ;;  %7212 = vadd.xlane.f32.xlu0 %v7174_v53  ;;  %v17023_v35 = vld [vmem:[#allocation45_spill] sm:$0xff] }
 0x7f0   : > { %v10853_v55 = vadd.f32 %v10140_v6, %v15365_v13  ;;  %v7006_v38 = vpop.f32.mrb[43].mxu0  ;;  %v7177_v39 = vmul.f32 %v17005_v32, %v15418_v18 }
 0x7f1   : > { %v10854_v4 = vadd.f32 %v15365_v13, %v7006_v38  ;;  %v7176_v59 = vmul.f32 %v17005_v32, %v15421_v33 }
 0x7f2   : > { %v15430_v8 = vadd.f32 %v10853_v55, %v17014_v20  ;;  %7218 = vadd.xlane.f32.xlu1 %v7177_v39  ;;  %v17025_v20 = vld [vmem:[#allocation88_spill] sm:$0xff] }
 0x7f3   : > { %v15433_v28 = vadd.f32 %v10854_v4, %v17015_v24  ;;  %v10143_v50 = vpop.f32.mrb[44].mxu0  ;;  %7216 = vadd.xlane.f32.xlu0 %v7176_v59  ;;  %v17024_v4 = vld [vmem:[#allocation92_spill] sm:$0xff] }
 0x7f4   : > { %v10855_v48 = vadd.f32 %v10143_v50, %v15365_v13  ;;  %v7018_v46 = vpop.f32.mrb[45].mxu0  ;;  %v7179_v45 = vmul.f32 %v17005_v32, %v15430_v8 }
 0x7f5   : > { %v10856_v57 = vadd.f32 %v15365_v13, %v7018_v46  ;;  %v7178_v12 = vmul.f32 %v17005_v32, %v15433_v28 }
 0x7f6   : > { %v15442_v52 = vadd.f32 %v10855_v48, %v17016_v3  ;;  %7222 = vadd.xlane.f32.xlu1 %v7179_v45  ;;  %v17026_v3 = vld [vmem:[#allocation96_spill] sm:$0xff] }
 0x7f7   : > { %v15445_v56 = vadd.f32 %v10856_v57, %v17017_v19  ;;  %v10146_v58 = vpop.f32.mrb[46].mxu0  ;;  %7220 = vadd.xlane.f32.xlu0 %v7178_v12 }
 0x7f8   : > { %v10857_v7 = vadd.f32 %v10146_v58, %v15365_v13  ;;  %v7030_v14 = vpop.f32.mrb[47].mxu0  ;;  %v7181_v23 = vmul.f32 %v17005_v32, %v15442_v52  ;;  %v17027_v58 = vld [vmem:[#allocation94_spill] sm:$0xff] }
 0x7f9   : > { %v10858_v26 = vadd.f32 %v15365_v13, %v7030_v14  ;;  %v7180_v1 = vmul.f32 %v17005_v32, %v15445_v56 }
 0x7fa   : > { %v15454_v15 = vadd.f32 %v10857_v7, %v17018_v29  ;;  %7226 = vadd.xlane.f32.xlu1 %v7181_v23 }
 0x7fb   : > { %v15457_v11 = vadd.f32 %v10858_v26, %v17019_v37  ;;  %v10149_v5 = vpop.f32.mrb[48].mxu0  ;;  %7224 = vadd.xlane.f32.xlu0 %v7180_v1 }
 0x7fc   : > { %v10859_v22 = vadd.f32 %v10149_v5, %v15365_v13  ;;  %v7042_v21 = vpop.f32.mrb[49].mxu0  ;;  %v7183_v44 = vmul.f32 %v17005_v32, %v15454_v15  ;;  %v17028_v5 = vld [vmem:[#allocation100_spill] sm:$0xff] }
 0x7fd   : > { %v10860_v49 = vadd.f32 %v15365_v13, %v7042_v21  ;;  %v7182_v9 = vmul.f32 %v17005_v32, %v15457_v11  ;;  %v17029_v21 = vld [vmem:[#allocation98_spill] sm:$0xff] }
 0x7fe   : > { %v15466_v27 = vadd.f32 %v10859_v22, %v17020_v0  ;;  %7230 = vadd.xlane.f32.xlu1 %v7183_v44 }
 0x7ff   : > { %v15469_v31 = vadd.f32 %v10860_v49, %v17021_v30  ;;  %v10152_v36 = vpop.f32.mrb[50].mxu0  ;;  %7228 = vadd.xlane.f32.xlu0 %v7182_v9 }
 0x800   : > { %v10861_v17 = vadd.f32 %v10152_v36, %v15365_v13  ;;  %v7054_v51 = vpop.f32.mrb[51].mxu0  ;;  %v7185_v2 = vmul.f32 %v17005_v32, %v15466_v27 }
 0x801   : > { %v10862_v63 = vadd.f32 %v15365_v13, %v7054_v51  ;;  %v7184_v54 = vmul.f32 %v17005_v32, %v15469_v31  ;;  %v17030_v51 = vld [vmem:[#allocation103_spill] sm:$0xff] }
 0x802   : > { %v15478_v47 = vadd.f32 %v10861_v17, %v17022_v34  ;;  %7234 = vadd.xlane.f32.xlu1 %v7185_v2 }
 0x803   : > { %v15481_v53 = vadd.f32 %v10862_v63, %v17023_v35  ;;  %v10155_v40 = vpop.f32.mrb[52].mxu0  ;;  %7232 = vadd.xlane.f32.xlu0 %v7184_v54  ;;  %v17031_v63 = vld [vmem:[#allocation101_spill] sm:$0xff] }
 0x804   : > { %v10863_v41 = vadd.f32 %v10155_v40, %v15365_v13  ;;  %v7066_v6 = vpop.f32.mrb[53].mxu0  ;;  %v7187_v55 = vmul.f32 %v17005_v32, %v15478_v47 }
 0x805   : > { %v10864_v38 = vadd.f32 %v15365_v13, %v7066_v6  ;;  %v7186_v39 = vmul.f32 %v17005_v32, %v15481_v53 }
 0x806   : > { %v15490_v59 = vadd.f32 %v10863_v41, %v17024_v4  ;;  %7238 = vadd.xlane.f32.xlu1 %v7187_v55  ;;  %v17033_v4 = vld [vmem:[#allocation107_spill] sm:$0xff] }
 0x807   : > { %v15493_v24 = vadd.f32 %v10864_v38, %v17025_v20  ;;  %v10158_v50 = vpop.f32.mrb[54].mxu0  ;;  %7236 = vadd.xlane.f32.xlu0 %v7186_v39  ;;  %v17032_v38 = vld [vmem:[#allocation113_spill] sm:$0xff] }
 0x808   : > { %v10865_v48 = vadd.f32 %v10158_v50, %v15365_v13  ;;  %v7078_v46 = vpop.f32.mrb[55].mxu0  ;;  %v7189_v45 = vmul.f32 %v17005_v32, %v15490_v59 }
 0x809   : > { %v10866_v57 = vadd.f32 %v15365_v13, %v7078_v46  ;;  %v7188_v12 = vmul.f32 %v17005_v32, %v15493_v24 }
 0x80a   : > { %v15502_v19 = vadd.f32 %v10865_v48, %v17026_v3  ;;  %7242 = vadd.xlane.f32.xlu1 %v7189_v45  ;;  %v17034_v3 = vld [vmem:[#allocation117_spill] sm:$0xff] }
 0x80b   : > { %v15505_v7 = vadd.f32 %v10866_v57, %v17027_v58  ;;  %v10161_v14 = vpop.f32.mrb[56].mxu0  ;;  %7240 = vadd.xlane.f32.xlu0 %v7188_v12 }
 0x80c   : > { %v10867_v23 = vadd.f32 %v10161_v14, %v15365_v13  ;;  %v7090_v26 = vpop.f32.mrb[57].mxu0  ;;  %v7191_v1 = vmul.f32 %v17005_v32, %v15502_v19  ;;  %v17035_v14 = vld [vmem:[#allocation115_spill] sm:$0xff] }
 0x80d   : > { %v10868_v29 = vadd.f32 %v15365_v13, %v7090_v26  ;;  %v7190_v37 = vmul.f32 %v17005_v32, %v15505_v7 }
 0x80e   : > { %v15514_v22 = vadd.f32 %v10867_v23, %v17028_v5  ;;  %7246 = vadd.xlane.f32.xlu1 %v7191_v1 }
 0x80f   : > { %v15517_v44 = vadd.f32 %v10868_v29, %v17029_v21  ;;  %v10164_v49 = vpop.f32.mrb[58].mxu0  ;;  %7244 = vadd.xlane.f32.xlu0 %v7190_v37 }
 0x810   : > { %v10869_v9 = vadd.f32 %v10164_v49, %v15365_v13  ;;  %v7102_v0 = vpop.f32.mrb[59].mxu0  ;;  %v7193_v30 = vmul.f32 %v17005_v32, %v15514_v22 }
 0x811   : > { %v10870_v36 = vadd.f32 %v15365_v13, %v7102_v0  ;;  %v7192_v17 = vmul.f32 %v17005_v32, %v15517_v44 }
 0x812   : > { %v15526_v2 = vadd.f32 %v10869_v9, %v17030_v51  ;;  %7250 = vadd.xlane.f32.xlu1 %v7193_v30 }
 0x813   : > { %v15529_v54 = vadd.f32 %v10870_v36, %v17031_v63  ;;  %v10167_v34 = vpop.f32.mrb[60].mxu0  ;;  %7248 = vadd.xlane.f32.xlu0 %v7192_v17 }
 0x814   : > { %v10871_v35 = vadd.f32 %v10167_v34, %v15365_v13  ;;  %v7114_v40 = vpop.f32.mrb[61].mxu0  ;;  %v7195_v41 = vmul.f32 %v17005_v32, %v15526_v2 }
 0x815   : > { %v10872_v6 = vadd.f32 %v15365_v13, %v7114_v40  ;;  %v7194_v55 = vmul.f32 %v17005_v32, %v15529_v54 }
 0x816   : > { %v15538_v39 = vadd.f32 %v10871_v35, %v17032_v38  ;;  %7254 = vadd.xlane.f32.xlu1 %v7195_v41 }
 0x817   : > { %v15541_v20 = vadd.f32 %v10872_v6, %v17033_v4  ;;  %v10170_v50 = vpop.f32.mrb[62].mxu0  ;;  %7252 = vadd.xlane.f32.xlu0 %v7194_v55 }
 0x818   : > { %v10873_v48 = vadd.f32 %v10170_v50, %v15365_v13  ;;  %v7126_v46 = vpop.f32.mrb[63].mxu0  ;;  %v7197_v45 = vmul.f32 %v17005_v32, %v15538_v39 }
 0x819   : > { %v10874_v57 = vadd.f32 %v15365_v13, %v7126_v46  ;;  %v7196_v12 = vmul.f32 %v17005_v32, %v15541_v20 }
 0x81a   : > { %v15550_v58 = vadd.f32 %v10873_v48, %v17034_v3  ;;  %7258 = vadd.xlane.f32.xlu1 %v7197_v45 }
 0x81b   : > { %v15553_v23 = vadd.f32 %v10874_v57, %v17035_v14  ;;  %7256 = vadd.xlane.f32.xlu0 %v7196_v12 }
 0x81c   : > { %v7199_v26 = vmul.f32 %v17005_v32, %v15550_v58 }
 0x81d   : > { %v7198_v1 = vmul.f32 %v17005_v32, %v15553_v23 }
 0x81e   : > { %7262 = vadd.xlane.f32.xlu1 %v7199_v26 }
 0x81f   : > { %7260 = vadd.xlane.f32.xlu0 %v7198_v1 }
 0x86f   : > { %v7203_v13 = vpop.xlane.xlu1 %7202 }
 0x870   : > { %v7265_v29 = vmul.f32 0.03125, %v7203_v13  ;;  %v7201_v37 = vpop.xlane.xlu0 %7200 }
 0x871   : > { %v7264_v5 = vmul.f32 0.03125, %v7201_v37 }
 0x872   : > { %v7297_v21 = vsub.f32 %v15370_v62, %v7265_v29 }
 0x873   : > { %v7296_v49 = vsub.f32 %v15373_v16, %v7264_v5  ;;  %v7207_v9 = vpop.xlane.xlu1 %7206 }
 0x874   : > { %v7267_v0 = vmul.f32 0.03125, %v7207_v9  ;;  %v7205_v30 = vpop.xlane.xlu0 %7204  ;;  %v15562_v36 = vmul.f32 %v17005_v32, %v7297_v21 }
 0x875   : > { %v7266_v17 = vmul.f32 0.03125, %v7205_v30  ;;  %v15565_v51 = vmul.f32 %v17005_v32, %v7296_v49 }
 0x876   : > { %v7299_v63 = vsub.f32 %v15382_v10, %v7267_v0  ;;  %v7361_v34 = vmul.f32 %v15562_v36, %v15562_v36 }
 0x877   : > { %v7298_v35 = vsub.f32 %v15385_v25, %v7266_v17  ;;  %v7211_v62 = vpop.xlane.xlu1 %7210  ;;  %v7360_v16 = vmul.f32 %v15565_v51, %v15565_v51 }
 0x878   : > { %v15574_v40 = vmul.f32 %v17005_v32, %v7299_v63  ;;  %v7269_v41 = vmul.f32 0.03125, %v7211_v62  ;;  %7394 = vadd.xlane.f32.xlu1 %v7361_v34  ;;  %v7209_v6 = vpop.xlane.xlu0 %7208 }
 0x879   : > { %v15577_v55 = vmul.f32 %v17005_v32, %v7298_v35  ;;  %v7268_v38 = vmul.f32 0.03125, %v7209_v6  ;;  %7392 = vadd.xlane.f32.xlu0 %v7360_v16 }
 0x87a   : > { %v7301_v10 = vsub.f32 %v15394_v43, %v7269_v41  ;;  %v7363_v25 = vmul.f32 %v15574_v40, %v15574_v40 }
 0x87b   : > { %v7300_v4 = vsub.f32 %v15397_v60, %v7268_v38  ;;  %v7215_v50 = vpop.xlane.xlu1 %7214  ;;  %v7362_v48 = vmul.f32 %v15577_v55, %v15577_v55 }
 0x87c   : > { %v15586_v46 = vmul.f32 %v17005_v32, %v7301_v10  ;;  %v7271_v45 = vmul.f32 0.03125, %v7215_v50  ;;  %7398 = vadd.xlane.f32.xlu1 %v7363_v25  ;;  %v7213_v57 = vpop.xlane.xlu0 %7212 }
 0x87d   : > { %v15589_v12 = vmul.f32 %v17005_v32, %v7300_v4  ;;  %v7270_v3 = vmul.f32 0.03125, %v7213_v57  ;;  %7396 = vadd.xlane.f32.xlu0 %v7362_v48 }
 0x87e   : > { %v7303_v43 = vsub.f32 %v15406_v61, %v7271_v45  ;;  %v7365_v60 = vmul.f32 %v15586_v46, %v15586_v46 }
 0x87f   : > { %v7302_v14 = vsub.f32 %v15409_v42, %v7270_v3  ;;  %v7219_v26 = vpop.xlane.xlu1 %7218  ;;  %v7364_v1 = vmul.f32 %v15589_v12, %v15589_v12 }
 0x880   : > { %v15598_v13 = vmul.f32 %v17005_v32, %v7303_v43  ;;  %v7273_v29 = vmul.f32 0.03125, %v7219_v26  ;;  %7402 = vadd.xlane.f32.xlu1 %v7365_v60  ;;  %v7217_v37 = vpop.xlane.xlu0 %7216 }
 0x881   : > { %v15601_v5 = vmul.f32 %v17005_v32, %v7302_v14  ;;  %v7272_v21 = vmul.f32 0.03125, %v7217_v37  ;;  %7400 = vadd.xlane.f32.xlu0 %v7364_v1 }
 0x882   : > { %v7305_v61 = vsub.f32 %v15418_v18, %v7273_v29  ;;  %v7367_v42 = vmul.f32 %v15598_v13, %v15598_v13 }
 0x883   : > { %v7304_v49 = vsub.f32 %v15421_v33, %v7272_v21  ;;  %v7223_v9 = vpop.xlane.xlu1 %7222  ;;  %v7366_v0 = vmul.f32 %v15601_v5, %v15601_v5 }
 0x884   : > { %v15610_v30 = vmul.f32 %v17005_v32, %v7305_v61  ;;  %v7275_v17 = vmul.f32 0.03125, %v7223_v9  ;;  %7406 = vadd.xlane.f32.xlu1 %v7367_v42  ;;  %v7221_v63 = vpop.xlane.xlu0 %7220 }
 0x885   : > { %v15613_v34 = vmul.f32 %v17005_v32, %v7304_v49  ;;  %v7274_v35 = vmul.f32 0.03125, %v7221_v63  ;;  %7404 = vadd.xlane.f32.xlu0 %v7366_v0 }
 0x886   : > { %v7307_v18 = vsub.f32 %v15430_v8, %v7275_v17  ;;  %v7369_v33 = vmul.f32 %v15610_v30, %v15610_v30 }
 0x887   : > { %v7306_v62 = vsub.f32 %v15433_v28, %v7274_v35  ;;  %v7227_v16 = vpop.xlane.xlu1 %7226  ;;  %v7368_v41 = vmul.f32 %v15613_v34, %v15613_v34 }
 0x888   : > { %v15622_v6 = vmul.f32 %v17005_v32, %v7307_v18  ;;  %v7277_v38 = vmul.f32 0.03125, %v7227_v16  ;;  %7410 = vadd.xlane.f32.xlu1 %v7369_v33  ;;  %v7225_v10 = vpop.xlane.xlu0 %7224 }
 0x889   : > { %v15625_v25 = vmul.f32 %v17005_v32, %v7306_v62  ;;  %v7276_v4 = vmul.f32 0.03125, %v7225_v10  ;;  %7408 = vadd.xlane.f32.xlu0 %v7368_v41 }
 0x88a   : > { %v7309_v8 = vsub.f32 %v15442_v52, %v7277_v38  ;;  %v7371_v28 = vmul.f32 %v15622_v6, %v15622_v6 }
 0x88b   : > { %v7308_v50 = vsub.f32 %v15445_v56, %v7276_v4  ;;  %v7231_v48 = vpop.xlane.xlu1 %7230  ;;  %v7370_v45 = vmul.f32 %v15625_v25, %v15625_v25 }
 0x88c   : > { %v15634_v57 = vmul.f32 %v17005_v32, %v7309_v8  ;;  %v7279_v3 = vmul.f32 0.03125, %v7231_v48  ;;  %7414 = vadd.xlane.f32.xlu1 %v7371_v28  ;;  %v7229_v43 = vpop.xlane.xlu0 %7228 }
 0x88d   : > { %v15637_v60 = vmul.f32 %v17005_v32, %v7308_v50  ;;  %v7278_v14 = vmul.f32 0.03125, %v7229_v43  ;;  %7412 = vadd.xlane.f32.xlu0 %v7370_v45 }
 0x88e   : > { %v7311_v52 = vsub.f32 %v15454_v15, %v7279_v3  ;;  %v7373_v56 = vmul.f32 %v15634_v57, %v15634_v57 }
 0x88f   : > { %v7310_v26 = vsub.f32 %v15457_v11, %v7278_v14  ;;  %v7235_v1 = vpop.xlane.xlu1 %7234  ;;  %v7372_v29 = vmul.f32 %v15637_v60, %v15637_v60 }
 0x890   : > { %v15646_v37 = vmul.f32 %v17005_v32, %v7311_v52  ;;  %v7281_v21 = vmul.f32 0.03125, %v7235_v1  ;;  %7418 = vadd.xlane.f32.xlu1 %v7373_v56  ;;  %v7233_v61 = vpop.xlane.xlu0 %7232 }
 0x891   : > { %v15649_v42 = vmul.f32 %v17005_v32, %v7310_v26  ;;  %v7280_v49 = vmul.f32 0.03125, %v7233_v61  ;;  %7416 = vadd.xlane.f32.xlu0 %v7372_v29 }
 0x892   : > { %v7313_v15 = vsub.f32 %v15466_v27, %v7281_v21  ;;  %v7375_v11 = vmul.f32 %v15646_v37, %v15646_v37 }
 0x893   : > { %v7312_v9 = vsub.f32 %v15469_v31, %v7280_v49  ;;  %v7239_v0 = vpop.xlane.xlu1 %7238  ;;  %v7374_v17 = vmul.f32 %v15649_v42, %v15649_v42 }
 0x894   : > { %v15658_v63 = vmul.f32 %v17005_v32, %v7313_v15  ;;  %v7283_v35 = vmul.f32 0.03125, %v7239_v0  ;;  %7422 = vadd.xlane.f32.xlu1 %v7375_v11  ;;  %v7237_v18 = vpop.xlane.xlu0 %7236 }
 0x895   : > { %v15661_v33 = vmul.f32 %v17005_v32, %v7312_v9  ;;  %v7282_v62 = vmul.f32 0.03125, %v7237_v18  ;;  %7420 = vadd.xlane.f32.xlu0 %v7374_v17 }
 0x896   : > { %v7315_v27 = vsub.f32 %v15478_v47, %v7283_v35  ;;  %v7377_v31 = vmul.f32 %v15658_v63, %v15658_v63 }
 0x897   : > { %v7314_v16 = vsub.f32 %v15481_v53, %v7282_v62  ;;  %v7243_v41 = vpop.xlane.xlu1 %7242  ;;  %v7376_v38 = vmul.f32 %v15661_v33, %v15661_v33 }
 0x898   : > { %v15670_v10 = vmul.f32 %v17005_v32, %v7315_v27  ;;  %v7285_v4 = vmul.f32 0.03125, %v7243_v41  ;;  %7426 = vadd.xlane.f32.xlu1 %v7377_v31  ;;  %v7241_v8 = vpop.xlane.xlu0 %7240 }
 0x899   : > { %v15673_v28 = vmul.f32 %v17005_v32, %v7314_v16  ;;  %v7284_v50 = vmul.f32 0.03125, %v7241_v8  ;;  %7424 = vadd.xlane.f32.xlu0 %v7376_v38 }
 0x89a   : > { %v7317_v47 = vsub.f32 %v15490_v59, %v7285_v4  ;;  %v7379_v53 = vmul.f32 %v15670_v10, %v15670_v10 }
 0x89b   : > { %v7316_v48 = vsub.f32 %v15493_v24, %v7284_v50  ;;  %v7247_v45 = vpop.xlane.xlu1 %7246  ;;  %v7378_v3 = vmul.f32 %v15673_v28, %v15673_v28 }
 0x89c   : > { %v15682_v43 = vmul.f32 %v17005_v32, %v7317_v47  ;;  %v7287_v14 = vmul.f32 0.03125, %v7247_v45  ;;  %7430 = vadd.xlane.f32.xlu1 %v7379_v53  ;;  %v7245_v52 = vpop.xlane.xlu0 %7244 }
 0x89d   : > { %v15685_v56 = vmul.f32 %v17005_v32, %v7316_v48  ;;  %v7286_v26 = vmul.f32 0.03125, %v7245_v52  ;;  %7428 = vadd.xlane.f32.xlu0 %v7378_v3 }
 0x89e   : > { %v7319_v59 = vsub.f32 %v15502_v19, %v7287_v14  ;;  %v7381_v24 = vmul.f32 %v15682_v43, %v15682_v43 }
 0x89f   : > { %v7318_v1 = vsub.f32 %v15505_v7, %v7286_v26  ;;  %v7251_v29 = vpop.xlane.xlu1 %7250  ;;  %v7380_v21 = vmul.f32 %v15685_v56, %v15685_v56 }
 0x8a0   : > { %v15694_v61 = vmul.f32 %v17005_v32, %v7319_v59  ;;  %v7289_v49 = vmul.f32 0.03125, %v7251_v29  ;;  %7434 = vadd.xlane.f32.xlu1 %v7381_v24  ;;  %v7249_v15 = vpop.xlane.xlu0 %7248 }
 0x8a1   : > { %v15697_v11 = vmul.f32 %v17005_v32, %v7318_v1  ;;  %v7288_v9 = vmul.f32 0.03125, %v7249_v15  ;;  %7432 = vadd.xlane.f32.xlu0 %v7380_v21 }
 0x8a2   : > { %v7321_v19 = vsub.f32 %v15514_v22, %v7289_v49  ;;  %v7383_v7 = vmul.f32 %v15694_v61, %v15694_v61 }
 0x8a3   : > { %v7320_v0 = vsub.f32 %v15517_v44, %v7288_v9  ;;  %v7255_v17 = vpop.xlane.xlu1 %7254  ;;  %v7382_v35 = vmul.f32 %v15697_v11, %v15697_v11 }
 0x8a4   : > { %v15706_v18 = vmul.f32 %v17005_v32, %v7321_v19  ;;  %v7291_v62 = vmul.f32 0.03125, %v7255_v17  ;;  %7438 = vadd.xlane.f32.xlu1 %v7383_v7  ;;  %v7253_v27 = vpop.xlane.xlu0 %7252 }
 0x8a5   : > { %v15709_v31 = vmul.f32 %v17005_v32, %v7320_v0  ;;  %v7290_v16 = vmul.f32 0.03125, %v7253_v27  ;;  %7436 = vadd.xlane.f32.xlu0 %v7382_v35 }
 0x8a6   : > { %v7323_v22 = vsub.f32 %v15526_v2, %v7291_v62  ;;  %v7385_v44 = vmul.f32 %v15706_v18, %v15706_v18 }
 0x8a7   : > { %v7322_v41 = vsub.f32 %v15529_v54, %v7290_v16  ;;  %v7259_v38 = vpop.xlane.xlu1 %7258  ;;  %v7384_v4 = vmul.f32 %v15709_v31, %v15709_v31 }
 0x8a8   : > { %v15718_v8 = vmul.f32 %v17005_v32, %v7323_v22  ;;  %v7293_v50 = vmul.f32 0.03125, %v7259_v38  ;;  %7442 = vadd.xlane.f32.xlu1 %v7385_v44  ;;  %v7257_v47 = vpop.xlane.xlu0 %7256 }
 0x8a9   : > { %v15721_v53 = vmul.f32 %v17005_v32, %v7322_v41  ;;  %v7292_v48 = vmul.f32 0.03125, %v7257_v47  ;;  %7440 = vadd.xlane.f32.xlu0 %v7384_v4 }
 0x8aa   : > { %v7325_v2 = vsub.f32 %v15538_v39, %v7293_v50  ;;  %v7387_v54 = vmul.f32 %v15718_v8, %v15718_v8 }
 0x8ab   : > { %v7324_v45 = vsub.f32 %v15541_v20, %v7292_v48  ;;  %v7263_v3 = vpop.xlane.xlu1 %7262  ;;  %v7386_v14 = vmul.f32 %v15721_v53, %v15721_v53 }
 0x8ac   : > { %v15730_v52 = vmul.f32 %v17005_v32, %v7325_v2  ;;  %v7295_v26 = vmul.f32 0.03125, %v7263_v3  ;;  %7446 = vadd.xlane.f32.xlu1 %v7387_v54  ;;  %v7261_v59 = vpop.xlane.xlu0 %7260 }
 0x8ad   : > { %v15733_v24 = vmul.f32 %v17005_v32, %v7324_v45  ;;  %v7294_v1 = vmul.f32 0.03125, %v7261_v59  ;;  %7444 = vadd.xlane.f32.xlu0 %v7386_v14 }
 0x8ae   : > { %v7327_v39 = vsub.f32 %v15550_v58, %v7295_v26  ;;  %v7389_v20 = vmul.f32 %v15730_v52, %v15730_v52  ;;  %v15754_v26 = vld [vmem:[%s17036_s6] ss:$0 sm:$0xff] }
 0x8af   : > { %v7326_v29 = vsub.f32 %v15553_v23, %v7294_v1  ;;  %v7388_v21 = vmul.f32 %v15733_v24, %v15733_v24 }
 0x8b0   : > { %v15742_v49 = vmul.f32 %v17005_v32, %v7327_v39  ;;  %7450 = vadd.xlane.f32.xlu1 %v7389_v20 }
 0x8b1   : > { %v15745_v15 = vmul.f32 %v17005_v32, %v7326_v29  ;;  %7448 = vadd.xlane.f32.xlu0 %v7388_v21  ;;  %v15760_v21 = vld [vmem:[%s17037_s15] ss:$0 sm:$0xff] }
 0x8b2   : > { %v7391_v9 = vmul.f32 %v15742_v49, %v15742_v49 }
 0x8b3   : > { %v7390_v58 = vmul.f32 %v15745_v15, %v15745_v15 }
 0x8b4   : > { %7454 = vadd.xlane.f32.xlu1 %v7391_v9 }
 0x8b5   : > { %7452 = vadd.xlane.f32.xlu0 %v7390_v58 }
 0x905   : > { %v7395_v23 = vpop.xlane.xlu1 %7394 }
 0x906   : > { %v7457_v19 = vmul.f32 0.03125, %v7395_v23  ;;  %v7393_v7 = vpop.xlane.xlu0 %7392 }
 0x907   : > { %v7456_v0 = vmul.f32 0.03125, %v7393_v7 }
 0x908   : > { %v7489_v17 = vadd.f32 1e-05, %v7457_v19 }
 0x909   : > { %v7488_v35 = vadd.f32 1e-05, %v7456_v0  ;;  %v7399_v62 = vpop.xlane.xlu1 %7398 }
 0x90a   : > { %11474 = vrsqrt.f32 %v7489_v17  ;;  %v7459_v27 = vmul.f32 0.03125, %v7399_v62  ;;  %v7397_v32 = vpop.xlane.xlu0 %7396 }
 0x90b   : > { %11476 = vrsqrt.f32 %v7488_v35  ;;  %v7458_v16 = vmul.f32 0.03125, %v7397_v32 }
 0x90c   : > { %v7491_v22 = vadd.f32 1e-05, %v7459_v27 }
 0x90d   : > { %v7490_v44 = vadd.f32 1e-05, %v7458_v16  ;;  %v7403_v41 = vpop.xlane.xlu1 %7402 }
 0x90e   : > { %11478 = vrsqrt.f32 %v7491_v22  ;;  %v7461_v38 = vmul.f32 0.03125, %v7403_v41  ;;  %v7401_v4 = vpop.xlane.xlu0 %7400 }
 0x90f   : > { %11480 = vrsqrt.f32 %v7490_v44  ;;  %v7460_v50 = vmul.f32 0.03125, %v7401_v4 }
 0x910   : > { %v7493_v47 = vadd.f32 1e-05, %v7461_v38 }
 0x911   : > { %v7492_v48 = vadd.f32 1e-05, %v7460_v50  ;;  %v7407_v2 = vpop.xlane.xlu1 %7406 }
 0x912   : > { %11482 = vrsqrt.f32 %v7493_v47  ;;  %v7463_v54 = vmul.f32 0.03125, %v7407_v2  ;;  %v7405_v45 = vpop.xlane.xlu0 %7404 }
 0x913   : > { %11484 = vrsqrt.f32 %v7492_v48  ;;  %v7462_v3 = vmul.f32 0.03125, %v7405_v45 }
 0x914   : > { %v11475_v14 = vpop.eup %11474  ;;  %v7495_v59 = vadd.f32 1e-05, %v7463_v54 }
 0x915   : > { %v11477_v1 = vpop.eup %11476  ;;  %v7553_v39 = vmul.f32 %v11475_v14, %v15562_v36  ;;  %v7494_v20 = vadd.f32 1e-05, %v7462_v3  ;;  %v7411_v29 = vpop.xlane.xlu1 %7410 }
 0x916   : > { %v7552_v9 = vmul.f32 %v11477_v1, %v15565_v51  ;;  %11486 = vrsqrt.f32 %v7495_v59  ;;  %v7465_v58 = vmul.f32 0.03125, %v7411_v29  ;;  %v7409_v23 = vpop.xlane.xlu0 %7408 }
 0x917   : > { %v7592_v19 = vmul.f32 %v15754_v26, %v7553_v39  ;;  %11488 = vrsqrt.f32 %v7494_v20  ;;  %v7464_v7 = vmul.f32 0.03125, %v7409_v23 }
 0x918   : > { %v11479_v0 = vpop.eup %11478  ;;  %v7591_v36 = vmul.f32 %v15754_v26, %v7552_v9  ;;  %v7497_v17 = vadd.f32 1e-05, %v7465_v58 }
 0x919   : > { %v11481_v35 = vpop.eup %11480  ;;  %v7631_v62 = vadd.f32 %v15760_v21, %v7592_v19  ;;  %v7555_v27 = vmul.f32 %v11479_v0, %v15574_v40  ;;  %v7496_v32 = vadd.f32 1e-05, %v7464_v7  ;;  %v7415_v16 = vpop.xlane.xlu1 %7414 }
 0x91a   : > { %v7630_v51 = vadd.f32 %v15760_v21, %v7591_v36  ;;  %v7554_v22 = vmul.f32 %v11481_v35, %v15577_v55  ;;  %11490 = vrsqrt.f32 %v7497_v17  ;;  %v7467_v44 = vmul.f32 0.03125, %v7415_v16  ;;  %v7413_v41 = vpop.xlane.xlu0 %7412 }
 0x91b   : > { %7663 = vst [vmem:[%s15770_s2 + $0x8] sm:$0xff] %v7631_v62  ;;  %v7594_v38 = vmul.f32 %v15754_v26, %v7555_v27  ;;  %11492 = vrsqrt.f32 %v7496_v32  ;;  %v7466_v4 = vmul.f32 0.03125, %v7413_v41 }
 0x91c   : > { %v11483_v40 = vpop.eup %11482  ;;  %7662 = vst [vmem:[%s15770_s2] sm:$0xff] %v7630_v51  ;;  %v7593_v50 = vmul.f32 %v15754_v26, %v7554_v22  ;;  %v7499_v47 = vadd.f32 1e-05, %v7467_v44 }
 0x91d   : > { %v11485_v55 = vpop.eup %11484  ;;  %v7633_v48 = vadd.f32 %v15760_v21, %v7594_v38  ;;  %v7557_v2 = vmul.f32 %v11483_v40, %v15586_v46  ;;  %v7498_v54 = vadd.f32 1e-05, %v7466_v4  ;;  %v7419_v45 = vpop.xlane.xlu1 %7418 }
 0x91e   : > { %v7632_v3 = vadd.f32 %v15760_v21, %v7593_v50  ;;  %v7556_v14 = vmul.f32 %v11485_v55, %v15589_v12  ;;  %11494 = vrsqrt.f32 %v7499_v47  ;;  %v7469_v59 = vmul.f32 0.03125, %v7419_v45  ;;  %v7417_v1 = vpop.xlane.xlu0 %7416 }
 0x91f   : > { %7665 = vst [vmem:[%s15770_s2 + $0x18] sm:$0xff] %v7633_v48  ;;  %v7596_v39 = vmul.f32 %v15754_v26, %v7557_v2  ;;  %11496 = vrsqrt.f32 %v7498_v54  ;;  %v7468_v20 = vmul.f32 0.03125, %v7417_v1 }
 0x920   : > { %v11487_v29 = vpop.eup %11486  ;;  %7664 = vst [vmem:[%s15770_s2 + $0x10] sm:$0xff] %v7632_v3  ;;  %v7595_v9 = vmul.f32 %v15754_v26, %v7556_v14  ;;  %v7501_v46 = vadd.f32 1e-05, %v7469_v59 }
 0x921   : > { %v11489_v58 = vpop.eup %11488  ;;  %v7635_v23 = vadd.f32 %v15760_v21, %v7596_v39  ;;  %v7559_v12 = vmul.f32 %v11487_v29, %v15598_v13  ;;  %v7500_v19 = vadd.f32 1e-05, %v7468_v20  ;;  %v7423_v7 = vpop.xlane.xlu1 %7422 }
 0x922   : > { %v7634_v0 = vadd.f32 %v15760_v21, %v7595_v9  ;;  %v7558_v36 = vmul.f32 %v11489_v58, %v15601_v5  ;;  %11498 = vrsqrt.f32 %v7501_v46  ;;  %v7471_v17 = vmul.f32 0.03125, %v7423_v7  ;;  %v7421_v35 = vpop.xlane.xlu0 %7420 }
 0x923   : > { %7667 = vst [vmem:[%s15770_s2 + $0x28] sm:$0xff] %v7635_v23  ;;  %v7598_v62 = vmul.f32 %v15754_v26, %v7559_v12  ;;  %11500 = vrsqrt.f32 %v7500_v19  ;;  %v7470_v27 = vmul.f32 0.03125, %v7421_v35 }
 0x924   : > { %v11491_v32 = vpop.eup %11490  ;;  %7666 = vst [vmem:[%s15770_s2 + $0x20] sm:$0xff] %v7634_v0  ;;  %v7597_v16 = vmul.f32 %v15754_v26, %v7558_v36  ;;  %v7503_v13 = vadd.f32 1e-05, %v7471_v17 }
 0x925   : > { %v11493_v51 = vpop.eup %11492  ;;  %v7637_v22 = vadd.f32 %v15760_v21, %v7598_v62  ;;  %v7561_v5 = vmul.f32 %v11491_v32, %v15610_v30  ;;  %v7502_v44 = vadd.f32 1e-05, %v7470_v27  ;;  %v7427_v41 = vpop.xlane.xlu1 %7426 }
 0x926   : > { %v7636_v38 = vadd.f32 %v15760_v21, %v7597_v16  ;;  %v7560_v4 = vmul.f32 %v11493_v51, %v15613_v34  ;;  %11502 = vrsqrt.f32 %v7503_v13  ;;  %v7473_v40 = vmul.f32 0.03125, %v7427_v41  ;;  %v7425_v50 = vpop.xlane.xlu0 %7424 }
 0x927   : > { %7669 = vst [vmem:[%s15770_s2 + $0x38] sm:$0xff] %v7637_v22  ;;  %v7600_v47 = vmul.f32 %v15754_v26, %v7561_v5  ;;  %11504 = vrsqrt.f32 %v7502_v44  ;;  %v7472_v55 = vmul.f32 0.03125, %v7425_v50 }
 0x928   : > { %v11495_v48 = vpop.eup %11494  ;;  %7668 = vst [vmem:[%s15770_s2 + $0x30] sm:$0xff] %v7636_v38  ;;  %v7599_v2 = vmul.f32 %v15754_v26, %v7560_v4  ;;  %v7505_v30 = vadd.f32 1e-05, %v7473_v40 }
 0x929   : > { %v11497_v54 = vpop.eup %11496  ;;  %v7639_v45 = vadd.f32 %v15760_v21, %v7600_v47  ;;  %v7563_v34 = vmul.f32 %v11495_v48, %v15622_v6  ;;  %v7504_v3 = vadd.f32 1e-05, %v7472_v55  ;;  %v7431_v14 = vpop.xlane.xlu1 %7430 }
 0x92a   : > { %v7638_v59 = vadd.f32 %v15760_v21, %v7599_v2  ;;  %v7562_v1 = vmul.f32 %v11497_v54, %v15625_v25  ;;  %11506 = vrsqrt.f32 %v7505_v30  ;;  %v7475_v39 = vmul.f32 0.03125, %v7431_v14  ;;  %v7429_v20 = vpop.xlane.xlu0 %7428 }
 0x92b   : > { %7671 = vst [vmem:[%s15770_s2 + $0x48] sm:$0xff] %v7639_v45  ;;  %v7602_v29 = vmul.f32 %v15754_v26, %v7563_v34  ;;  %11508 = vrsqrt.f32 %v7504_v3  ;;  %v7474_v9 = vmul.f32 0.03125, %v7429_v20 }
 0x92c   : > { %v11499_v46 = vpop.eup %11498  ;;  %7670 = vst [vmem:[%s15770_s2 + $0x40] sm:$0xff] %v7638_v59  ;;  %v7601_v58 = vmul.f32 %v15754_v26, %v7562_v1  ;;  %v7507_v6 = vadd.f32 1e-05, %v7475_v39 }
 0x92d   : > { %v11501_v23 = vpop.eup %11500  ;;  %v7641_v12 = vadd.f32 %v15760_v21, %v7602_v29  ;;  %v7565_v25 = vmul.f32 %v11499_v46, %v15634_v57  ;;  %v7506_v19 = vadd.f32 1e-05, %v7474_v9  ;;  %v7435_v7 = vpop.xlane.xlu1 %7434 }
 0x92e   : > { %v7640_v0 = vadd.f32 %v15760_v21, %v7601_v58  ;;  %v7564_v36 = vmul.f32 %v11501_v23, %v15637_v60  ;;  %11510 = vrsqrt.f32 %v7507_v6  ;;  %v7477_v17 = vmul.f32 0.03125, %v7435_v7  ;;  %v7433_v35 = vpop.xlane.xlu0 %7432 }
 0x92f   : > { %7673 = vst [vmem:[%s15770_s2 + $0x58] sm:$0xff] %v7641_v12  ;;  %v7604_v62 = vmul.f32 %v15754_v26, %v7565_v25  ;;  %11512 = vrsqrt.f32 %v7506_v19  ;;  %v7476_v27 = vmul.f32 0.03125, %v7433_v35 }
 0x930   : > { %v11503_v32 = vpop.eup %11502  ;;  %7672 = vst [vmem:[%s15770_s2 + $0x50] sm:$0xff] %v7640_v0  ;;  %v7603_v16 = vmul.f32 %v15754_v26, %v7564_v36  ;;  %v7509_v57 = vadd.f32 1e-05, %v7477_v17 }
 0x931   : > { %v11505_v13 = vpop.eup %11504  ;;  %v7643_v51 = vadd.f32 %v15760_v21, %v7604_v62  ;;  %v7567_v60 = vmul.f32 %v11503_v32, %v15646_v37  ;;  %v7508_v22 = vadd.f32 1e-05, %v7476_v27  ;;  %v7439_v5 = vpop.xlane.xlu1 %7438 }
 0x932   : > { %v7642_v44 = vadd.f32 %v15760_v21, %v7603_v16  ;;  %v7566_v41 = vmul.f32 %v11505_v13, %v15649_v42  ;;  %11514 = vrsqrt.f32 %v7509_v57  ;;  %v7479_v38 = vmul.f32 0.03125, %v7439_v5  ;;  %v7437_v4 = vpop.xlane.xlu0 %7436 }
 0x933   : > { %7675 = vst [vmem:[%s15770_s2 + $0x68] sm:$0xff] %v7643_v51  ;;  %v7606_v40 = vmul.f32 %v15754_v26, %v7567_v60  ;;  %11516 = vrsqrt.f32 %v7508_v22  ;;  %v7478_v50 = vmul.f32 0.03125, %v7437_v4 }
 0x934   : > { %v11507_v47 = vpop.eup %11506  ;;  %7674 = vst [vmem:[%s15770_s2 + $0x60] sm:$0xff] %v7642_v44  ;;  %v7605_v55 = vmul.f32 %v15754_v26, %v7566_v41  ;;  %v7511_v37 = vadd.f32 1e-05, %v7479_v38 }
 0x935   : > { %v11509_v48 = vpop.eup %11508  ;;  %v7645_v2 = vadd.f32 %v15760_v21, %v7606_v40  ;;  %v7569_v42 = vmul.f32 %v11507_v47, %v15658_v63  ;;  %v7510_v30 = vadd.f32 1e-05, %v7478_v50  ;;  %v7443_v54 = vpop.xlane.xlu1 %7442 }
 0x936   : > { %v7644_v45 = vadd.f32 %v15760_v21, %v7605_v55  ;;  %v7568_v34 = vmul.f32 %v11509_v48, %v15661_v33  ;;  %11518 = vrsqrt.f32 %v7511_v37  ;;  %v7481_v3 = vmul.f32 0.03125, %v7443_v54  ;;  %v7441_v14 = vpop.xlane.xlu0 %7440 }
 0x937   : > { %7677 = vst [vmem:[%s15770_s2 + $0x78] sm:$0xff] %v7645_v2  ;;  %v7608_v59 = vmul.f32 %v15754_v26, %v7569_v42  ;;  %11520 = vrsqrt.f32 %v7510_v30  ;;  %v7480_v1 = vmul.f32 0.03125, %v7441_v14 }
 0x938   : > { %v11511_v39 = vpop.eup %11510  ;;  %7676 = vst [vmem:[%s15770_s2 + $0x70] sm:$0xff] %v7644_v45  ;;  %v7607_v20 = vmul.f32 %v15754_v26, %v7568_v34  ;;  %v7513_v63 = vadd.f32 1e-05, %v7481_v3 }
 0x939   : > { %v11513_v29 = vpop.eup %11512  ;;  %v7647_v9 = vadd.f32 %v15760_v21, %v7608_v59  ;;  %v7571_v33 = vmul.f32 %v11511_v39, %v15670_v10  ;;  %v7512_v46 = vadd.f32 1e-05, %v7480_v1  ;;  %v7447_v58 = vpop.xlane.xlu1 %7446 }
 0x93a   : > { %v7646_v6 = vadd.f32 %v15760_v21, %v7607_v20  ;;  %v7570_v23 = vmul.f32 %v11513_v29, %v15673_v28  ;;  %11522 = vrsqrt.f32 %v7513_v63  ;;  %v7483_v12 = vmul.f32 0.03125, %v7447_v58  ;;  %v7445_v25 = vpop.xlane.xlu0 %7444 }
 0x93b   : > { %7679 = vst [vmem:[%s15770_s2 + $0x88] sm:$0xff] %v7647_v9  ;;  %v7610_v19 = vmul.f32 %v15754_v26, %v7571_v33  ;;  %11524 = vrsqrt.f32 %v7512_v46  ;;  %v7482_v7 = vmul.f32 0.03125, %v7445_v25 }
 0x93c   : > { %v11515_v0 = vpop.eup %11514  ;;  %7678 = vst [vmem:[%s15770_s2 + $0x80] sm:$0xff] %v7646_v6  ;;  %v7609_v36 = vmul.f32 %v15754_v26, %v7570_v23  ;;  %v7515_v10 = vadd.f32 1e-05, %v7483_v12 }
 0x93d   : > { %v11517_v17 = vpop.eup %11516  ;;  %v7649_v35 = vadd.f32 %v15760_v21, %v7610_v19  ;;  %v7573_v28 = vmul.f32 %v11515_v0, %v15682_v43  ;;  %v7514_v62 = vadd.f32 1e-05, %v7482_v7  ;;  %v7451_v27 = vpop.xlane.xlu1 %7450 }
 0x93e   : > { %v7648_v32 = vadd.f32 %v15760_v21, %v7609_v36  ;;  %v7572_v16 = vmul.f32 %v11517_v17, %v15685_v56  ;;  %11526 = vrsqrt.f32 %v7515_v10  ;;  %v7485_v57 = vmul.f32 0.03125, %v7451_v27  ;;  %v7449_v13 = vpop.xlane.xlu0 %7448 }
 0x93f   : > { %7681 = vst [vmem:[%s15770_s2 + $0x98] sm:$0xff] %v7649_v35  ;;  %v7612_v51 = vmul.f32 %v15754_v26, %v7573_v28  ;;  %11528 = vrsqrt.f32 %v7514_v62  ;;  %v7484_v60 = vmul.f32 0.03125, %v7449_v13 }
 0x940   : > { %v11519_v22 = vpop.eup %11518  ;;  %7680 = vst [vmem:[%s15770_s2 + $0x90] sm:$0xff] %v7648_v32  ;;  %v7611_v5 = vmul.f32 %v15754_v26, %v7572_v16  ;;  %v7517_v43 = vadd.f32 1e-05, %v7485_v57 }
 0x941   : > { %v11521_v44 = vpop.eup %11520  ;;  %v7651_v41 = vadd.f32 %v15760_v21, %v7612_v51  ;;  %v7575_v56 = vmul.f32 %v11519_v22, %v15694_v61  ;;  %v7516_v38 = vadd.f32 1e-05, %v7484_v60  ;;  %v7455_v4 = vpop.xlane.xlu1 %7454 }
 0x942   : > { %v7650_v40 = vadd.f32 %v15760_v21, %v7611_v5  ;;  %v7574_v50 = vmul.f32 %v11521_v44, %v15697_v11  ;;  %11530 = vrsqrt.f32 %v7517_v43  ;;  %v7487_v47 = vmul.f32 0.03125, %v7455_v4  ;;  %v7453_v55 = vpop.xlane.xlu0 %7452 }
 0x943   : > { %7683 = vst [vmem:[%s15770_s2 + $0xa8] sm:$0xff] %v7651_v41  ;;  %v7614_v37 = vmul.f32 %v15754_v26, %v7575_v56  ;;  %11532 = vrsqrt.f32 %v7516_v38  ;;  %v7486_v48 = vmul.f32 0.03125, %v7453_v55 }
 0x944   : > { %v11523_v2 = vpop.eup %11522  ;;  %7682 = vst [vmem:[%s15770_s2 + $0xa0] sm:$0xff] %v7650_v40  ;;  %v7613_v61 = vmul.f32 %v15754_v26, %v7574_v50  ;;  %v7519_v42 = vadd.f32 1e-05, %v7487_v47 }
 0x945   : > { %v11525_v30 = vpop.eup %11524  ;;  %v7653_v54 = vadd.f32 %v15760_v21, %v7614_v37  ;;  %v7577_v11 = vmul.f32 %v11523_v2, %v15706_v18  ;;  %v7518_v45 = vadd.f32 1e-05, %v7486_v48 }
 0x946   : > { %v7652_v34 = vadd.f32 %v15760_v21, %v7613_v61  ;;  %v7576_v3 = vmul.f32 %v11525_v30, %v15709_v31  ;;  %11534 = vrsqrt.f32 %v7519_v42 }
 0x947   : > { %7685 = vst [vmem:[%s15770_s2 + $0xb8] sm:$0xff] %v7653_v54  ;;  %v7616_v14 = vmul.f32 %v15754_v26, %v7577_v11  ;;  %11536 = vrsqrt.f32 %v7518_v45 }
 0x948   : > { %v11527_v59 = vpop.eup %11526  ;;  %7684 = vst [vmem:[%s15770_s2 + $0xb0] sm:$0xff] %v7652_v34  ;;  %v7615_v1 = vmul.f32 %v15754_v26, %v7576_v3 }
 0x949   : > { %v11529_v39 = vpop.eup %11528  ;;  %v7655_v18 = vadd.f32 %v15760_v21, %v7616_v14  ;;  %v7579_v20 = vmul.f32 %v11527_v59, %v15718_v8 }
 0x94a   : > { %v7654_v63 = vadd.f32 %v15760_v21, %v7615_v1  ;;  %v7578_v31 = vmul.f32 %v11529_v39, %v15721_v53 }
 0x94b   : > { %7687 = vst [vmem:[%s15770_s2 + $0xc8] sm:$0xff] %v7655_v18  ;;  %v7618_v29 = vmul.f32 %v15754_v26, %v7579_v20 }
 0x94c   : > { %v11531_v9 = vpop.eup %11530  ;;  %7686 = vst [vmem:[%s15770_s2 + $0xc0] sm:$0xff] %v7654_v63  ;;  %v7617_v33 = vmul.f32 %v15754_v26, %v7578_v31 }
 0x94d   : > { %v11533_v46 = vpop.eup %11532  ;;  %v7657_v58 = vadd.f32 %v15760_v21, %v7618_v29  ;;  %v7581_v8 = vmul.f32 %v11531_v9, %v15730_v52 }
 0x94e   : > { %v7656_v6 = vadd.f32 %v15760_v21, %v7617_v33  ;;  %v7580_v53 = vmul.f32 %v11533_v46, %v15733_v24 }
 0x94f   : > { %7689 = vst [vmem:[%s15770_s2 + $0xd8] sm:$0xff] %v7657_v58  ;;  %v7620_v23 = vmul.f32 %v15754_v26, %v7581_v8 }
 0x950   : > { %v11535_v12 = vpop.eup %11534  ;;  %7688 = vst [vmem:[%s15770_s2 + $0xd0] sm:$0xff] %v7656_v6  ;;  %v7619_v25 = vmul.f32 %v15754_v26, %v7580_v53 }
 0x951   : > { %v11537_v19 = vpop.eup %11536  ;;  %v7659_v7 = vadd.f32 %v15760_v21, %v7620_v23  ;;  %v7583_v52 = vmul.f32 %v11535_v12, %v15742_v49 }
 0x952   : > { %v7658_v0 = vadd.f32 %v15760_v21, %v7619_v25  ;;  %v7582_v36 = vmul.f32 %v11537_v19, %v15745_v15 }
 0x953   : > { %7691 = vst [vmem:[%s15770_s2 + $0xe8] sm:$0xff] %v7659_v7  ;;  %v7622_v24 = vmul.f32 %v15754_v26, %v7583_v52 }
 0x954   : > { %7690 = vst [vmem:[%s15770_s2 + $0xe0] sm:$0xff] %v7658_v0  ;;  %v7621_v10 = vmul.f32 %v15754_v26, %v7582_v36 }
 0x955   : > { %v7661_v17 = vadd.f32 %v15760_v21, %v7622_v24 }
 0x956   : > { %v7660_v49 = vadd.f32 %v15760_v21, %v7621_v10 }
 0x957   : > { %7693 = vst [vmem:[%s15770_s2 + $0xf8] sm:$0xff] %v7661_v17 }
 0x958   : > { %7692 = vst [vmem:[%s15770_s2 + $0xf0] sm:$0xff] %v7660_v49 }
 0x959   : > { %11695 = shalt.err (!%p11692_p3)
}
 0x95a   : > { %s11696_s18 = scalar_lea.hbm %s15894_s13, 4096  ;;  %s11700_s0 = scalar_lea.hbm %s17038_s7, 8192 }
 0x95b   : > { %p11697_p9 = scmp.ne.s32.totalorder %s15894_s13, %s11696_s18  ;;  %p11701_p7 = scmp.lt.u32.totalorder %s15894_s13, %s17038_s7 }
 0x95c   : > { %p11702_p12 = scmp.lt.u32.totalorder %s11700_s0, %s11696_s18  ;;  %p11704_p2 = scmp.lt.u32.totalorder %s11696_s18, %s15894_s13 }
 0x95d   : > { %p11698_p13 = pnand %p11697_p9, %p11992_p5 }
 0x95e   : > { %p11703_p1 = por %p11702_p12, %p11701_p7 }
 0x95f   : > { %p11699_p11 = pneg %p11698_p13 }
 0x960   : > { %p11705_p4 = por %p11704_p2, %p11703_p1 }
 0x962   : > { %p11706_p0 = pnand %p11705_p4, %p11699_p11 }
 0x964   : > { %11709 = shalt.err (!%p11706_p0)
}
 0x965   : > { %s11771_s29 = smov 128   ;;  %s11772_s15 = smov 8  }
 0x966   : > { %11339 = dma.vmem_to_hbm [thread:$0]  (%p11992_p5), %s15896_s27, 4096, %s15894_s13, %s7695_s25, %s11771_s29, %s11771_s29, %s11772_s15  }
 0x967 PF: > { %s17039_s2 = sld [smem:[#allocation17_spill]]  ;;  %s17040_s17 = sld [smem:[#allocation18_spill]] }
 0x968   : > { %p17042_p6 = scmp.ge.s32.totalorder %s11760_s24, 2 }
 0x96d   : > { %s7723_s10 = sand.u32 1, %s17039_s2   ;;  %p17041_p8 = scmp.ne.s32.totalorder %s17040_s17, 0 }
 0x96e   : > { %s7724_s14 = scalar_lea.sflag [#allocation4], %s7723_s10 }
 0x96f   : > { %p11359_p10 = pnand %p17042_p6, %p17041_p8 }
 0x971   : > { %11743 = dma.done.wait (!%p11359_p10), %s7724_s14, 4096  }
 0x972   : > { %11745 = vsyncadd (!%p11359_p10), %s7724_s14, 4294963200  ;;  %s17043_s26 = sld [smem:[#allocation19_spill]]  ;;  %s17044_s20 = smov %s11978_s21 }
 0x973   : > { %p29_p3 = scmp.ge.s32.totalorder %s11978_s21, 4   ;;  %s17045_s21 = smov %s11752_s22 }
 0x974   : > { %s17046_s22 = smov %s11756_s23  ;;  %s17048_s24 = smov %s17044_s20 }
 0x975   :  { %31 = sbr.rel (!%p29_p3) target bundleno = 17 (0x11), region = 138 }
 0x978   : > { %s17047_s23 = smov %s17043_s26 }
 0x97c   :  { %7729 = vsyncpa [#allocation3], 1 }
 0x97d   :  { %7731 = vsyncpa [#allocation3 + $0x1], 1 }
 0x97e   :  { %7732 = vsyncpa [#allocation6], 1 }
 0x97f   :  { %7734 = vsyncpa [#allocation6 + $0x1], 1 }
 0x980   :  { %7735 = vsyncpa [#allocation9], 1 }
 0x981   :  { %7736 = vsyncpa [#allocation4], 1 }
 0x982   :  { %7738 = vsyncpa [#allocation4 + $0x1], 1 }

</bundles_post_ra>
